<compile_context>
chip_gen: v5e
topology: v5e:2x2
jax: 0.10.0
libtpu: 0.0.40
codegen_flags: <defaults>
</compile_context>

<pallas_src>
import jax
import jax.numpy as jnp
from jax.experimental import pallas as pl
from jax.experimental.pallas import tpu as pltpu

C_IN = 512
C_MID = 1024
C_OUT = 29
C_OUT_PAD = 32      # pad 29 -> 32 output channels (sublane-aligned; sliced off after)
MAX_TILE_T = 1024   # T positions per grid step (VMEM ~15 MiB at 1024; fits all gens)


def _fused_mlp_kernel(x_ref, w1t_ref, b1_ref, w2t_ref, b2_ref, o_ref):
    # x_ref  : (512, tT)   f32  — native NCHW channel-major input tile x[n, :, t0:t0+tT]
    # w1t_ref: (1024, 512) bf16     b1_ref: (1024, 1) f32
    # w2t_ref: (32, 1024)  bf16     b2_ref: (32, 1)   f32
    # o_ref  : (32, tT)    f32  — channel-major output tile (sliced/permuted in XLA)
    x = jnp.maximum(x_ref[...], 0.0).astype(jnp.bfloat16)             # module_1 ReLU + MXU cast
    h = jnp.dot(w1t_ref[...], x, preferred_element_type=jnp.float32)  # (1024, tT) conv1
    h = jnp.maximum(h + b1_ref[...], 0.0)                             # bias + module_3 ReLU (f32)
    o = jnp.dot(w2t_ref[...], h.astype(jnp.bfloat16),
                preferred_element_type=jnp.float32)                   # (32, tT) conv2
    o_ref[...] = (o + b2_ref[...]).astype(o_ref.dtype)


def _round_up(x, m):
    return ((x + m - 1) // m) * m


def _pick_tile_t(n_batch, t_len):
    """Largest T-tile <= MAX_TILE_T.  Only shrink (to give the two v7x TensorCores
    >= 2 parallel grid steps) when the whole problem would otherwise be a single step
    and the split is nearly free; single-TC v5e/v6e then pay just one extra ~0.35us
    pipeline step instead of losing a full tile's worth of overhead amortization."""
    if t_len <= MAX_TILE_T:
        tile_t = t_len                      # full-dim block: always layout-legal
    else:
        tile_t = MAX_TILE_T                 # multiple of 128 -> lane-aligned blocks
    n_t = pl.cdiv(t_len, tile_t)
    if n_batch * n_t == 1 and t_len >= 256:
        tile_t = _round_up(pl.cdiv(t_len, 2), 128)
        n_t = pl.cdiv(t_len, tile_t)
    return tile_t, n_t


def model_d_forward(x_nchw, w1, b1, w2, b2):
    """x_nchw: (N, 512, T, 1) f32.  w1: (512, 1024), b1: (1024,), w2: (1024, 29),
    b2: (29,) — dense matmul-layout weights of the two 1x1 convs.
    Returns (N, T, 29) f32 (== squeeze(dim=3) then permute(0, 2, 1))."""
    n_batch, c_in, t_len, w_dim = x_nchw.shape
    assert c_in == C_IN and w_dim == 1

    tile_t, n_t = _pick_tile_t(n_batch, t_len)
    t_pad = n_t * tile_t

    # Free layout change only: drop the trailing W=1 dim.  x stays channel-major in
    # HBM and is never copied by XLA (the old transpose/ReLU/cast pass is fused into
    # the kernel, which reads x exactly once).
    x3 = x_nchw.reshape(n_batch, C_IN, t_len)

    # One-time tiny weight prep (in a real deployment these would be stored this way).
    w1t = jnp.transpose(w1).astype(jnp.bfloat16)                          # (1024, 512)
    w2t = jnp.pad(jnp.transpose(w2),
                  ((0, C_OUT_PAD - C_OUT), (0, 0))).astype(jnp.bfloat16)  # (32, 1024)
    b1c = b1.reshape(C_MID, 1).astype(jnp.float32)                        # (1024, 1)
    b2c = jnp.pad(b2.reshape(C_OUT, 1),
                  ((0, C_OUT_PAD - C_OUT), (0, 0))).astype(jnp.float32)   # (32, 1)

    grid = (n_batch, n_t)

    flops = 2 * n_batch * t_pad * (C_IN * C_MID + C_MID * C_OUT_PAD)
    bytes_accessed = (n_batch * C_IN * t_len * 4            # f32 activations in (read once)
                      + n_batch * C_OUT_PAD * t_pad * 4     # f32 channel-major out
                      + C_MID * C_IN * 2 + C_OUT_PAD * C_MID * 2   # bf16 weights
                      + (C_MID + C_OUT_PAD) * 4)                   # f32 biases

    # VMEM @ tile_t=1024: x tile 2 MiB + out tile 0.125 MiB (x2 buffers each),
    # w1t 1 MiB + w2t 64 KiB + biases (x2, constant index_maps -> fetched once),
    # plus ~8 MiB of in-kernel f32/bf16 temporaries -> ~15 MiB << 32 MiB on all gens.
    out_cm = pl.pallas_call(
        _fused_mlp_kernel,
        out_shape=jax.ShapeDtypeStruct((n_batch, C_OUT_PAD, t_pad), jnp.float32),
        grid_spec=pltpu.PrefetchScalarGridSpec(
            num_scalar_prefetch=0,
            grid=grid,
            in_specs=[
                pl.BlockSpec((None, C_IN, tile_t), lambda n, t: (n, 0, t)),
                pl.BlockSpec((C_MID, C_IN), lambda n, t: (0, 0)),
                pl.BlockSpec((C_MID, 1), lambda n, t: (0, 0)),
                pl.BlockSpec((C_OUT_PAD, C_MID), lambda n, t: (0, 0)),
                pl.BlockSpec((C_OUT_PAD, 1), lambda n, t: (0, 0)),
            ],
            out_specs=pl.BlockSpec((None, C_OUT_PAD, tile_t), lambda n, t: (n, 0, t)),
        ),
        compiler_params=pltpu.CompilerParams(
            dimension_semantics=("parallel", "parallel"),
            vmem_limit_bytes=32 * 1024 * 1024,
        ),
        cost_estimate=pl.CostEstimate(
            flops=flops, transcendentals=0, bytes_accessed=bytes_accessed),
    )(x3, w1t, b1c, w2t, b2c)

    # Drop padded channels (29->32) / padded T columns and permute to (N, T, 29):
    # XLA fuses the slice + transpose into one small copy (29/512 of the input bytes).
    return jnp.transpose(out_cm[:, :C_OUT, :t_len], (0, 2, 1))


def _reference(x_nchw, w1, b1, w2, b2):
    # Pure-JAX f32 reference mirroring the PyTorch graph (NCHW 1x1 convs).
    x = jnp.maximum(x_nchw, 0.0)                                           # (N, 512, T, 1)
    x = jnp.einsum("ncHW,co->noHW", x, w1) + b1[None, :, None, None]
    x = jnp.maximum(x, 0.0)
    x = jnp.einsum("ncHW,co->noHW", x, w2) + b2[None, :, None, None]
    x = x[..., 0]                                                          # squeeze(3) -> (N, 29, T)
    return jnp.transpose(x, (0, 2, 1))                                     # permute(0,2,1) -> (N, T, 29)


if __name__ == "__main__":
    key = jax.random.PRNGKey(0)
    k_x, k_w1, k_b1, k_w2, k_b2 = jax.random.split(key, 5)

    N, T = 2, 16
    x = jax.random.normal(k_x, (N, C_IN, T, 1), dtype=jnp.float32)

    # Deterministic synthetic parameters.  Conv2d weights (out, in, 1, 1) are stored
    # here as dense (in, out) matmul weights.
    w1 = jax.random.normal(k_w1, (C_IN, C_MID), dtype=jnp.float32) * 0.02
    b1 = jax.random.normal(k_b1, (C_MID,), dtype=jnp.float32) * 0.01
    w2 = jax.random.normal(k_w2, (C_MID, C_OUT), dtype=jnp.float32) * 0.02
    b2 = jax.random.normal(k_b2, (C_OUT,), dtype=jnp.float32) * 0.01

    fwd = jax.jit(model_d_forward)
    out = jax.block_until_ready(fwd(x, w1, b1, w2, b2))
    ref = _reference(x, w1, b1, w2, b2)

    assert out.shape == (N, T, C_OUT), out.shape
    # bf16 MXU operands (x, h rounded to bf16) -> slightly looser tolerance than pure f32.
    assert jnp.allclose(out, ref, atol=3e-2, rtol=5e-2), float(jnp.max(jnp.abs(out - ref)))

    print("KERNEL_OK")
</pallas_src>

<mosaic_0001>
module attributes {stable_mosaic.version = 11 : i64} {
  func.func @_fused_mlp_kernel(%arg0: i32, %arg1: i32, %arg2: memref<1x512x16xf32, #tpu.memory_space<vmem>>, %arg3: memref<1024x512xbf16, #tpu.memory_space<vmem>>, %arg4: memref<1024x1xf32, #tpu.memory_space<vmem>>, %arg5: memref<32x1024xbf16, #tpu.memory_space<vmem>>, %arg6: memref<32x1xf32, #tpu.memory_space<vmem>>, %arg7: memref<1x32x16xf32, #tpu.memory_space<vmem>>) attributes {dimension_semantics = [#tpu.dimension_semantics<parallel>, #tpu.dimension_semantics<parallel>], iteration_bounds = array<i64: 2, 1>, scalar_prefetch = 0 : i64, scratch_operands = 0 : i64, tpu.core_type = #tpu.core_type<tc>, window_params = [{transform_indices = @transform_0, window_bounds = array<i64: 1, 512, 16>}, {pipeline_mode = #tpu.pipeline_mode<synchronous>, transform_indices = @transform_1, window_bounds = array<i64: 1024, 512>}, {pipeline_mode = #tpu.pipeline_mode<synchronous>, transform_indices = @transform_2, window_bounds = array<i64: 1024, 1>}, {pipeline_mode = #tpu.pipeline_mode<synchronous>, transform_indices = @transform_3, window_bounds = array<i64: 32, 1024>}, {pipeline_mode = #tpu.pipeline_mode<synchronous>, transform_indices = @transform_4, window_bounds = array<i64: 32, 1>}, {transform_indices = @transform_5, window_bounds = array<i64: 1, 32, 16>}]} {
    %c0 = arith.constant 0 : index
    %c0_0 = arith.constant 0 : index
    %c0_1 = arith.constant 0 : index
    %0 = vector.load %arg2[%c0, %c0_0, %c0_1] : memref<1x512x16xf32, #tpu.memory_space<vmem>>, vector<1x512x16xf32>
    %1 = vector.shape_cast %0 : vector<1x512x16xf32> to vector<512x16xf32>
    %cst = arith.constant 0.000000e+00 : f32
    %2 = vector.broadcast %cst : f32 to vector<512x16xf32>
    %3 = arith.maximumf %1, %2 : vector<512x16xf32>
    %4 = arith.truncf %3 : vector<512x16xf32> to vector<512x16xbf16>
    %c0_2 = arith.constant 0 : index
    %c0_3 = arith.constant 0 : index
    %5 = vector.load %arg3[%c0_2, %c0_3] : memref<1024x512xbf16, #tpu.memory_space<vmem>>, vector<1024x512xbf16>
    %cst_4 = arith.constant dense<0.000000e+00> : vector<1024x16xf32>
    %6 = tpu.matmul %5, %4, %cst_4 {dimension_numbers = #tpu.dot_dimension_numbers<[1], [0], [0], [1], [0, 0, 1, 1], [], []>} : vector<1024x512xbf16>, vector<512x16xbf16>, vector<1024x16xf32> -> vector<1024x16xf32>
    %c0_5 = arith.constant 0 : index
    %c0_6 = arith.constant 0 : index
    %7 = vector.load %arg4[%c0_5, %c0_6] : memref<1024x1xf32, #tpu.memory_space<vmem>>, vector<1024x1xf32>
    %8 = vector.broadcast %7 : vector<1024x1xf32> to vector<1024x16xf32>
    %9 = arith.addf %6, %8 : vector<1024x16xf32>
    %cst_7 = arith.constant 0.000000e+00 : f32
    %10 = vector.broadcast %cst_7 : f32 to vector<1024x16xf32>
    %11 = arith.maximumf %9, %10 : vector<1024x16xf32>
    %c0_8 = arith.constant 0 : index
    %c0_9 = arith.constant 0 : index
    %12 = vector.load %arg5[%c0_8, %c0_9] : memref<32x1024xbf16, #tpu.memory_space<vmem>>, vector<32x1024xbf16>
    %13 = arith.truncf %11 : vector<1024x16xf32> to vector<1024x16xbf16>
    %cst_10 = arith.constant dense<0.000000e+00> : vector<32x16xf32>
    %14 = tpu.matmul %12, %13, %cst_10 {dimension_numbers = #tpu.dot_dimension_numbers<[1], [0], [0], [1], [0, 0, 1, 1], [], []>} : vector<32x1024xbf16>, vector<1024x16xbf16>, vector<32x16xf32> -> vector<32x16xf32>
    %c0_11 = arith.constant 0 : index
    %c0_12 = arith.constant 0 : index
    %15 = vector.load %arg6[%c0_11, %c0_12] : memref<32x1xf32, #tpu.memory_space<vmem>>, vector<32x1xf32>
    %16 = vector.broadcast %15 : vector<32x1xf32> to vector<32x16xf32>
    %17 = arith.addf %14, %16 : vector<32x16xf32>
    %c0_13 = arith.constant 0 : index
    %c0_14 = arith.constant 0 : index
    %c0_15 = arith.constant 0 : index
    %18 = vector.load %arg7[%c0_13, %c0_14, %c0_15] : memref<1x32x16xf32, #tpu.memory_space<vmem>>, vector<1x32x16xf32>
    %19 = vector.shape_cast %18 : vector<1x32x16xf32> to vector<32x16xf32>
    %20 = vector.shape_cast %17 : vector<32x16xf32> to vector<1x32x16xf32>
    tpu.vector_store %arg7[%c0_13, %c0_14, %c0_15], %20 {strides = array<i32>} : memref<1x32x16xf32, #tpu.memory_space<vmem>>, vector<1x32x16xf32>,
    return
  }
  func.func @transform_0(%arg0: i32, %arg1: i32) -> (i32, i32, i32) {
    %c0_i32 = arith.constant 0 : i32
    %c0_i32_0 = arith.constant 0 : i32
    return %arg0, %c0_i32, %arg1 : i32, i32, i32
  }
  func.func @transform_1(%arg0: i32, %arg1: i32) -> (i32, i32) {
    %c0_i32 = arith.constant 0 : i32
    %c0_i32_0 = arith.constant 0 : i32
    %c0_i32_1 = arith.constant 0 : i32
    return %c0_i32, %c0_i32_0 : i32, i32
  }
  func.func @transform_2(%arg0: i32, %arg1: i32) -> (i32, i32) {
    %c0_i32 = arith.constant 0 : i32
    %c0_i32_0 = arith.constant 0 : i32
    %c0_i32_1 = arith.constant 0 : i32
    return %c0_i32, %c0_i32_0 : i32, i32
  }
  func.func @transform_3(%arg0: i32, %arg1: i32) -> (i32, i32) {
    %c0_i32 = arith.constant 0 : i32
    %c0_i32_0 = arith.constant 0 : i32
    %c0_i32_1 = arith.constant 0 : i32
    return %c0_i32, %c0_i32_0 : i32, i32
  }
  func.func @transform_4(%arg0: i32, %arg1: i32) -> (i32, i32) {
    %c0_i32 = arith.constant 0 : i32
    %c0_i32_0 = arith.constant 0 : i32
    %c0_i32_1 = arith.constant 0 : i32
    return %c0_i32, %c0_i32_0 : i32, i32
  }
  func.func @transform_5(%arg0: i32, %arg1: i32) -> (i32, i32, i32) {
    %c0_i32 = arith.constant 0 : i32
    %c0_i32_0 = arith.constant 0 : i32
    return %arg0, %c0_i32, %arg1 : i32, i32, i32
  }
}

</mosaic_0001>

<bundles_post_ra>
// kernel: model_d_forward.1
= control target key start
LH: loop header
LB: loop body
LE: loop exit
PB: predicated region body
PF: predicated region fallthrough
CT: control target
= control target key end

     0   :  { %s6044_s18 = smov 0   ;;  %s6046_s19 = smov 0   ;;  %s8713_s0 = inlined_call_operand.vmem [shape: f32[2,512,16], index: 0, kind: input, shape index: {}]   ;;  %s8714_s1 = inlined_call_operand.vmem [shape: bf16[1024,512], index: 1, kind: input, shape index: {}]   ;;  %s8715_s2 = inlined_call_operand.vmem [shape: f32[1024,1], index: 2, kind: input, shape index: {}]   ;;  %s8716_s3 = inlined_call_operand.vmem [shape: bf16[32,1024], index: 3, kind: input, shape index: {}]   ;;  %s8717_s4 = inlined_call_operand.vmem [shape: f32[32,1], index: 4, kind: input, shape index: {}]   ;;  %s8718_s5 = inlined_call_operand.vmem [shape: f32[2,32,16], index: 5, kind: output, shape index: {}]  }
   0x1   :  { %s6048_s20 = smov 0  }
   0x2 LB: > { %s27_s21 = sadd.s32 1, %s6007_s19  ;;  %p4592_p0 = scmp.ge.s32.totalorder %s6011_s20, 1  ;;  %s6011_s20 = sphi %s6048_s20, %s15_s20   ;;  %s6007_s19 = sphi %s6046_s19, %s8744_s19   ;;  %s6003_s18 = sphi %s6044_s18, %s8743_s18  }
   0x3   : > { %p29_p1 = scmp.ge.s32.totalorder %s27_s21, 2  ;;  %p206_p2 = scmp.lt.s32.totalorder %s6011_s20, 3 }
   0x5   : > { %s8746_s21 = smov (%p29_p1, %s27_s21), 0  ;;  %p207_p3 = pnand %p4592_p0, %p206_p2 }
   0x7   : > { %210 = sbr.rel (%p207_p3) target bundleno = 1401 (0x579), region = 40 }
   0xc   : > { %p240_p4 = scmp.lt.s32.totalorder %s6003_s18, 1  ;;  %vm4500_vm0 = vcmask 130048  }
   0xe   : > { %s8748_s18 = smov (!%p240_p4, %s6003_s18), 1 }
   0xf   : > { %s5687_s22 = sshll.u32 %s8748_s18, 9  ;;  %s5688_s9 = sshll.u32 %s8748_s18, 5 }
  0x10   : > { %s6068_s25 = scalar_lea.vmem %s8713_s0, %s5687_s22  ;;  %s8694_s12 = scalar_lea.vmem %s8718_s5, %s5688_s9 }
  0x11   : > { %v270_v0 = vld [vmem:[%s6068_s25 + $0x70] sm:$0xff]  ;;  %v271_v1 = vld [vmem:[%s6068_s25 + $0x78] sm:$0xff]  ;;  %v268_v14 = vld [vmem:[%s6068_s25 + $0x60] sm:$0xff] }
  0x12   : > { %v286_v2 = vld [vmem:[%s6068_s25 + $0xf0] sm:$0xff]  ;;  %v334_v3 = vmax.f32 %v270_v0, 0.0  ;;  %v335_v4 = vmax.f32 %v271_v1, 0.0  ;;  %v287_v5 = vld [vmem:[%s6068_s25 + $0xf8] sm:$0xff]  ;;  %v269_v18 = vld [vmem:[%s6068_s25 + $0x68] sm:$0xff]  ;;  %v332_v19 = vmax.f32 %v268_v14, 0.0 }
  0x13   : > { %v350_v6 = vmax.f32 %v286_v2, 0.0  ;;  %v302_v7 = vld [vmem:[%s6068_s25 + $0x170] sm:$0xff]  ;;  %v303_v8 = vld [vmem:[%s6068_s25 + $0x178] sm:$0xff]  ;;  %v351_v9 = vmax.f32 %v287_v5, 0.0  ;;  %v284_v20 = vld [vmem:[%s6068_s25 + $0xe0] sm:$0xff]  ;;  %v333_v24 = vmax.f32 %v269_v18, 0.0 }
  0x14   : > { %v366_v10 = vmax.f32 %v302_v7, 0.0  ;;  %v367_v11 = vmax.f32 %v303_v8, 0.0  ;;  %v318_v12 = vld [vmem:[%s6068_s25 + $0x1f0] sm:$0xff]  ;;  %v319_v13 = vld [vmem:[%s6068_s25 + $0x1f8] sm:$0xff]  ;;  %v391_v15 = vpack.c.bf16 %v335_v4, %v334_v3  ;;  %v285_v21 = vld [vmem:[%s6068_s25 + $0xe8] sm:$0xff]  ;;  %v348_v25 = vmax.f32 %v284_v20, 0.0 }
  0x15   : > { %v382_v16 = vmax.f32 %v318_v12, 0.0  ;;  %v383_v17 = vmax.f32 %v319_v13, 0.0  ;;  %v399_v22 = vpack.c.bf16 %v351_v9, %v350_v6  ;;  %v300_v26 = vld [vmem:[%s6068_s25 + $0x160] sm:$0xff]  ;;  %v301_v27 = vld [vmem:[%s6068_s25 + $0x168] sm:$0xff]  ;;  %v349_v30 = vmax.f32 %v285_v21, 0.0  ;;  %v266_v34 = vld [vmem:[%s6068_s25 + $0x50] sm:$0xff] }
  0x16   : > { %v407_v23 = vpack.c.bf16 %v367_v11, %v366_v10  ;;  %v316_v28 = vld [vmem:[%s6068_s25 + $0x1e0] sm:$0xff]  ;;  %2720 = vmatpush.bf16.msra.mxu0 %v391_v15  ;;  %v364_v31 = vmax.f32 %v300_v26, 0.0  ;;  %v365_v32 = vmax.f32 %v301_v27, 0.0  ;;  %v317_v33 = vld [vmem:[%s6068_s25 + $0x1e8] sm:$0xff]  ;;  %v267_v35 = vld [vmem:[%s6068_s25 + $0x58] sm:$0xff]  ;;  %v390_v36 = vpack.c.bf16 %v333_v24, %v332_v19 }
  0x17   : > { %v415_v29 = vpack.c.bf16 %v383_v17, %v382_v16  ;;  %3049 = vmatpush.bf16.msra.mxu1 %v399_v22  ;;  %v380_v37 = vmax.f32 %v316_v28, 0.0  ;;  %v381_v38 = vmax.f32 %v317_v33, 0.0  ;;  %v330_v39 = vmax.f32 %v266_v34, 0.0  ;;  %v282_v40 = vld [vmem:[%s6068_s25 + $0xd0] sm:$0xff]  ;;  %v283_v41 = vld [vmem:[%s6068_s25 + $0xd8] sm:$0xff]  ;;  %v264_v54 = vld [vmem:[%s6068_s25 + $0x40] sm:$0xff] }
  0x18   : > { %3378 = vmatpush.bf16.msra.mxu2 %v407_v23  ;;  %v298_v42 = vld [vmem:[%s6068_s25 + $0x150] sm:$0xff]  ;;  %v398_v43 = vpack.c.bf16 %v349_v30, %v348_v25  ;;  %v406_v44 = vpack.c.bf16 %v365_v32, %v364_v31  ;;  %v331_v45 = vmax.f32 %v267_v35, 0.0  ;;  %v346_v46 = vmax.f32 %v282_v40, 0.0  ;;  %v299_v47 = vld [vmem:[%s6068_s25 + $0x158] sm:$0xff]  ;;  %v265_v55 = vld [vmem:[%s6068_s25 + $0x48] sm:$0xff] }
  0x19   : > { %3707 = vmatpush.bf16.msra.mxu3 %v415_v29  ;;  %v314_v48 = vld [vmem:[%s6068_s25 + $0x1d0] sm:$0xff]  ;;  %v315_v49 = vld [vmem:[%s6068_s25 + $0x1d8] sm:$0xff]  ;;  %v414_v50 = vpack.c.bf16 %v381_v38, %v380_v37  ;;  %v347_v51 = vmax.f32 %v283_v41, 0.0  ;;  %v362_v52 = vmax.f32 %v298_v42, 0.0  ;;  %v363_v53 = vmax.f32 %v299_v47, 0.0  ;;  %v280_v56 = vld [vmem:[%s6068_s25 + $0xc0] sm:$0xff] }
  0x1a   : > { %2721 = vmatpush.bf16.msra.mxu0 %v390_v36  ;;  %v389_v57 = vpack.c.bf16 %v331_v45, %v330_v39  ;;  %v378_v58 = vmax.f32 %v314_v48, 0.0  ;;  %v379_v59 = vmax.f32 %v315_v49, 0.0  ;;  %v328_v60 = vmax.f32 %v264_v54, 0.0  ;;  %v281_v61 = vld [vmem:[%s6068_s25 + $0xc8] sm:$0xff]  ;;  %v296_v62 = vld [vmem:[%s6068_s25 + $0x140] sm:$0xff]  ;;  %v262_v6 = vld [vmem:[%s6068_s25 + $0x30] sm:$0xff] }
  0x1b   : > { %v297_v63 = vld [vmem:[%s6068_s25 + $0x148] sm:$0xff]  ;;  %3050 = vmatpush.bf16.msra.mxu1 %v398_v43  ;;  %v397_v0 = vpack.c.bf16 %v347_v51, %v346_v46  ;;  %v405_v1 = vpack.c.bf16 %v363_v53, %v362_v52  ;;  %v329_v2 = vmax.f32 %v265_v55, 0.0  ;;  %v344_v3 = vmax.f32 %v280_v56, 0.0  ;;  %v312_v4 = vld [vmem:[%s6068_s25 + $0x1c0] sm:$0xff]  ;;  %v263_v11 = vld [vmem:[%s6068_s25 + $0x38] sm:$0xff] }
  0x1c   : > { %3379 = vmatpush.bf16.msra.mxu2 %v406_v44  ;;  %v313_v5 = vld [vmem:[%s6068_s25 + $0x1c8] sm:$0xff]  ;;  %v413_v7 = vpack.c.bf16 %v379_v59, %v378_v58  ;;  %v345_v8 = vmax.f32 %v281_v61, 0.0  ;;  %v360_v9 = vmax.f32 %v296_v62, 0.0  ;;  %v361_v10 = vmax.f32 %v297_v63, 0.0  ;;  %v278_v12 = vld [vmem:[%s6068_s25 + $0xb0] sm:$0xff]  ;;  %v279_v13 = vld [vmem:[%s6068_s25 + $0xb8] sm:$0xff] }
  0x1d   : > { %3708 = vmatpush.bf16.msra.mxu3 %v414_v50  ;;  %v388_v14 = vpack.c.bf16 %v329_v2, %v328_v60  ;;  %v376_v15 = vmax.f32 %v312_v4, 0.0  ;;  %v377_v16 = vmax.f32 %v313_v5, 0.0  ;;  %v294_v17 = vld [vmem:[%s6068_s25 + $0x130] sm:$0xff]  ;;  %v295_v18 = vld [vmem:[%s6068_s25 + $0x138] sm:$0xff]  ;;  %v326_v21 = vmax.f32 %v262_v6, 0.0  ;;  %v260_v25 = vld [vmem:[%s6068_s25 + $0x20] sm:$0xff] }
  0x1e   : > { %v310_v19 = vld [vmem:[%s6068_s25 + $0x1b0] sm:$0xff]  ;;  %2722 = vmatpush.bf16.msra.mxu0 %v389_v57  ;;  %v396_v20 = vpack.c.bf16 %v345_v8, %v344_v3  ;;  %v327_v22 = vmax.f32 %v263_v11, 0.0  ;;  %v342_v23 = vmax.f32 %v278_v12, 0.0  ;;  %v311_v24 = vld [vmem:[%s6068_s25 + $0x1b8] sm:$0xff]  ;;  %v261_v26 = vld [vmem:[%s6068_s25 + $0x28] sm:$0xff]  ;;  %v404_v27 = vpack.c.bf16 %v361_v10, %v360_v9 }
  0x1f   : > { %3051 = vmatpush.bf16.msra.mxu1 %v397_v0  ;;  %v343_v28 = vmax.f32 %v279_v13, 0.0  ;;  %v358_v29 = vmax.f32 %v294_v17, 0.0  ;;  %v359_v30 = vmax.f32 %v295_v18, 0.0  ;;  %v276_v31 = vld [vmem:[%s6068_s25 + $0xa0] sm:$0xff]  ;;  %v412_v32 = vpack.c.bf16 %v377_v16, %v376_v15  ;;  %v277_v35 = vld [vmem:[%s6068_s25 + $0xa8] sm:$0xff]  ;;  %v258_v45 = vld [vmem:[%s6068_s25 + $0x10] sm:$0xff] }
  0x20   : > { %3380 = vmatpush.bf16.msra.mxu2 %v405_v1  ;;  %v374_v33 = vmax.f32 %v310_v19, 0.0  ;;  %v375_v34 = vmax.f32 %v311_v24, 0.0  ;;  %v292_v36 = vld [vmem:[%s6068_s25 + $0x120] sm:$0xff]  ;;  %v293_v37 = vld [vmem:[%s6068_s25 + $0x128] sm:$0xff]  ;;  %v324_v38 = vmax.f32 %v260_v25, 0.0  ;;  %v325_v39 = vmax.f32 %v261_v26, 0.0 }
  0x21   : > { %3709 = vmatpush.bf16.msra.mxu3 %v413_v7  ;;  %v308_v40 = vld [vmem:[%s6068_s25 + $0x1a0] sm:$0xff]  ;;  %v309_v41 = vld [vmem:[%s6068_s25 + $0x1a8] sm:$0xff]  ;;  %v387_v42 = vpack.c.bf16 %v327_v22, %v326_v21  ;;  %v395_v43 = vpack.c.bf16 %v343_v28, %v342_v23  ;;  %v340_v44 = vmax.f32 %v276_v31, 0.0  ;;  %v259_v46 = vld [vmem:[%s6068_s25 + $0x18] sm:$0xff]  ;;  %v403_v48 = vpack.c.bf16 %v359_v30, %v358_v29 }
  0x22   : > { %2723 = vmatpush.bf16.msra.mxu0 %v388_v14  ;;  %v274_v47 = vld [vmem:[%s6068_s25 + $0x90] sm:$0xff]  ;;  %v341_v49 = vmax.f32 %v277_v35, 0.0  ;;  %v356_v50 = vmax.f32 %v292_v36, 0.0  ;;  %v357_v51 = vmax.f32 %v293_v37, 0.0  ;;  %v275_v52 = vld [vmem:[%s6068_s25 + $0x98] sm:$0xff]  ;;  %v411_v55 = vpack.c.bf16 %v375_v34, %v374_v33  ;;  %v256_v3 = vld [vmem:[%s6068_s25] sm:$0xff] }
  0x23   : > { %3052 = vmatpush.bf16.msra.mxu1 %v396_v20  ;;  %v290_v53 = vld [vmem:[%s6068_s25 + $0x110] sm:$0xff]  ;;  %v291_v54 = vld [vmem:[%s6068_s25 + $0x118] sm:$0xff]  ;;  %v372_v56 = vmax.f32 %v308_v40, 0.0  ;;  %v373_v57 = vmax.f32 %v309_v41, 0.0  ;;  %v386_v58 = vpack.c.bf16 %v325_v39, %v324_v38  ;;  %v322_v59 = vmax.f32 %v258_v45, 0.0  ;;  %v257_v6 = vld [vmem:[%s6068_s25 + $0x8] sm:$0xff] }
  0x24   : > { %3381 = vmatpush.bf16.msra.mxu2 %v404_v27  ;;  %v323_v60 = vmax.f32 %v259_v46, 0.0  ;;  %v306_v61 = vld [vmem:[%s6068_s25 + $0x190] sm:$0xff]  ;;  %v307_v62 = vld [vmem:[%s6068_s25 + $0x198] sm:$0xff]  ;;  %v338_v63 = vmax.f32 %v274_v47, 0.0  ;;  %v339_v0 = vmax.f32 %v275_v52, 0.0  ;;  %v354_v1 = vmax.f32 %v290_v53, 0.0 }
  0x25   : > { %3710 = vmatpush.bf16.msra.mxu3 %v412_v32  ;;  %v355_v2 = vmax.f32 %v291_v54, 0.0  ;;  %v394_v4 = vpack.c.bf16 %v341_v49, %v340_v44  ;;  %v402_v5 = vpack.c.bf16 %v357_v51, %v356_v50  ;;  %v272_v7 = vld [vmem:[%s6068_s25 + $0x80] sm:$0xff]  ;;  %v410_v8 = vpack.c.bf16 %v373_v57, %v372_v56  ;;  %v273_v11 = vld [vmem:[%s6068_s25 + $0x88] sm:$0xff]  ;;  %v5691_v32 = vld [vmem:[%s8714_s1 + $0xc] sm:$0xf0] }
  0x26   : > { %2724 = vmatpush.bf16.msra.mxu0 %v387_v42  ;;  %v370_v9 = vmax.f32 %v306_v61, 0.0  ;;  %v371_v10 = vmax.f32 %v307_v62, 0.0  ;;  %v288_v12 = vld [vmem:[%s6068_s25 + $0x100] sm:$0xff]  ;;  %v289_v13 = vld [vmem:[%s6068_s25 + $0x108] sm:$0xff]  ;;  %v385_v14 = vpack.c.bf16 %v323_v60, %v322_v59  ;;  %v320_v15 = vmax.f32 %v256_v3, 0.0  ;;  %v674_v34 = vld [vmem:[%s8715_s2 + $0x10] sm:$0xff] }
  0x27   : > { %3053 = vmatpush.bf16.msra.mxu1 %v395_v43  ;;  %v304_v16 = vld [vmem:[%s6068_s25 + $0x180] sm:$0xff]  ;;  %v305_v17 = vld [vmem:[%s6068_s25 + $0x188] sm:$0xff]  ;;  %v393_v18 = vpack.c.bf16 %v339_v0, %v338_v63  ;;  %v401_v19 = vpack.c.bf16 %v355_v2, %v354_v1  ;;  %v321_v20 = vmax.f32 %v257_v6, 0.0  ;;  %v336_v21 = vmax.f32 %v272_v7, 0.0  ;;  %v4601_v37 = vld [vmem:[%s8714_s1 + $0x10] sm:$0xf0] }
  0x28   : > { %3382 = vmatpush.bf16.msra.mxu2 %v403_v48  ;;  %v672_v22 = vld [vmem:[%s8715_s2] sm:$0xff]  ;;  %v337_v23 = vmax.f32 %v273_v11, 0.0  ;;  %v352_v24 = vmax.f32 %v288_v12, 0.0  ;;  %v353_v25 = vmax.f32 %v289_v13, 0.0  ;;  %v409_v26 = vpack.c.bf16 %v371_v10, %v370_v9  ;;  %v4607_v38 = vld [vmem:[%s8714_s1 + $0x8] sm:$0xf] }
  0x29   : > { %3711 = vmatpush.bf16.msra.mxu3 %v411_v55  ;;  %v368_v27 = vmax.f32 %v304_v16, 0.0  ;;  %v369_v28 = vmax.f32 %v305_v17, 0.0  ;;  %v6013_v29 = vmov 0   ;;  %v4599_v30 = vld [vmem:[%s8714_s1] sm:$0xf]  ;;  %v384_v31 = vpack.c.bf16 %v321_v20, %v320_v15  ;;  %v673_v46 = vld [vmem:[%s8715_s2 + $0x8] sm:$0xff] }
  0x2a   : > { %2725 = vmatpush.bf16.msra.mxu0 %v386_v58  ;;  %5986 = vset.pattern.permute.xlu0 %v6013_v29  ;;  %v5689_v33 = vld [vmem:[%s8714_s1 + $0x4] sm:$0xf]  ;;  %v392_v35 = vpack.c.bf16 %v337_v23, %v336_v21  ;;  %v400_v36 = vpack.c.bf16 %v353_v25, %v352_v24  ;;  %v5692_v39 = vld [vmem:[%s8714_s1 + $0x14] sm:$0xf0]  ;;  %v5690_v41 = vld [vmem:[%s8714_s1 + $0xc] sm:$0xf]  ;;  %v4600_v43 = vor.u32 %v5691_v32, %v4599_v30 }
  0x2b   : > { %3054 = vmatpush.bf16.msra.mxu1 %v394_v4  ;;  %802 = vperm.xlu0 %5986, %v672_v22   ;;  %v408_v40 = vpack.c.bf16 %v369_v28, %v368_v27  ;;  %v4609_v42 = vld [vmem:[%s8714_s1 + $0x18] sm:$0xf0]  ;;  %v4604_v44 = vor.u32 %v5689_v33, %v4601_v37  ;;  %v4608_v45 = vor.u32 %v5692_v39, %v4607_v38  ;;  %v676_v49 = vld [vmem:[%s8715_s2 + $0x20] sm:$0xff]  ;;  %v678_v50 = vld [vmem:[%s8715_s2 + $0x30] sm:$0xff] }
  0x2c   : > { %3383 = vmatpush.bf16.msra.mxu2 %v402_v5  ;;  %5987 = vset.pattern.permute.xlu1 %v6013_v29  ;;  %v4612_v47 = vor.u32 %v5690_v41, %v4609_v42  ;;  %v675_v48 = vld [vmem:[%s8715_s2 + $0x18] sm:$0xff]  ;;  %v677_v51 = vld [vmem:[%s8715_s2 + $0x28] sm:$0xff]  ;;  %v4615_v52 = vld [vmem:[%s8714_s1 + $0x20] sm:$0xf] }
  0x2d   : > { %3712 = vmatpush.bf16.msra.mxu3 %v410_v8  ;;  %5988 = vset.pattern.permute.xlu2 %v6013_v29  ;;  %v5695_v53 = vld [vmem:[%s8714_s1 + $0x2c] sm:$0xf0]  ;;  %v5693_v54 = vld [vmem:[%s8714_s1 + $0x24] sm:$0xf]  ;;  %v4617_v55 = vld [vmem:[%s8714_s1 + $0x30] sm:$0xf0] }
  0x2e   : > { %2726 = vmatpush.bf16.msra.mxu0 %v385_v14  ;;  %812 = vperm.xlu1 %5987, %v674_v34   ;;  %v4623_v56 = vld [vmem:[%s8714_s1 + $0x28] sm:$0xf]  ;;  %v5696_v57 = vld [vmem:[%s8714_s1 + $0x34] sm:$0xf0]  ;;  %v5694_v58 = vld [vmem:[%s8714_s1 + $0x2c] sm:$0xf]  ;;  %v4616_v60 = vor.u32 %v5695_v53, %v4615_v52  ;;  %v4620_v61 = vor.u32 %v5693_v54, %v4617_v55 }
  0x2f   : > { %3055 = vmatpush.bf16.msra.mxu1 %v393_v18  ;;  %822 = vperm.xlu2 %5988, %v676_v49   ;;  %v4625_v59 = vld [vmem:[%s8714_s1 + $0x38] sm:$0xf0]  ;;  %v4624_v62 = vor.u32 %v5696_v57, %v4623_v56  ;;  %v681_v63 = vld [vmem:[%s8715_s2 + $0x48] sm:$0xff]  ;;  %v680_v1 = vld [vmem:[%s8715_s2 + $0x40] sm:$0xff] }
  0x30   : > { %3384 = vmatpush.bf16.msra.mxu2 %v401_v19  ;;  %v4628_v0 = vor.u32 %v5694_v58, %v4625_v59  ;;  %v684_v2 = vld [vmem:[%s8715_s2 + $0x60] sm:$0xff]  ;;  %v683_v3 = vld [vmem:[%s8715_s2 + $0x58] sm:$0xff]  ;;  %v5699_v5 = vld [vmem:[%s8714_s1 + $0x4c] sm:$0xf0] }
  0x31   : > { %3713 = vmatpush.bf16.msra.mxu3 %v409_v26  ;;  %v4631_v4 = vld [vmem:[%s8714_s1 + $0x40] sm:$0xf]  ;;  %v5697_v6 = vld [vmem:[%s8714_s1 + $0x44] sm:$0xf]  ;;  %v4633_v7 = vld [vmem:[%s8714_s1 + $0x50] sm:$0xf0] }
  0x32   : > { %2727 = vmatpush.bf16.msra.mxu0 %v384_v31  ;;  %v4639_v8 = vld [vmem:[%s8714_s1 + $0x48] sm:$0xf]  ;;  %v5700_v9 = vld [vmem:[%s8714_s1 + $0x54] sm:$0xf0]  ;;  %v5698_v10 = vld [vmem:[%s8714_s1 + $0x4c] sm:$0xf]  ;;  %v4632_v12 = vor.u32 %v5699_v5, %v4631_v4  ;;  %v4636_v13 = vor.u32 %v5697_v6, %v4633_v7 }
  0x33   : > { %3056 = vmatpush.bf16.msra.mxu1 %v392_v35  ;;  %807 = vperm.xlu0 %5986, %v673_v46   ;;  %v4641_v11 = vld [vmem:[%s8714_s1 + $0x58] sm:$0xf0]  ;;  %v4640_v14 = vor.u32 %v5700_v9, %v4639_v8  ;;  %v686_v18 = vld [vmem:[%s8715_s2 + $0x70] sm:$0xff]  ;;  %v689_v21 = vld [vmem:[%s8715_s2 + $0x88] sm:$0xff] }
  0x34   : > { %3385 = vmatpush.bf16.msra.mxu2 %v400_v36  ;;  %v687_v15 = vld [vmem:[%s8715_s2 + $0x78] sm:$0xff]  ;;  %v4644_v16 = vor.u32 %v5698_v10, %v4641_v11  ;;  %v690_v19 = vld [vmem:[%s8715_s2 + $0x90] sm:$0xff]  ;;  %v4647_v22 = vld [vmem:[%s8714_s1 + $0x60] sm:$0xf] }
  0x35   : > { %3714 = vmatpush.bf16.msra.mxu3 %v408_v40  ;;  %2728 = vmatmul.bf16.vlgmr.msra.gmra.mxu0 %v4600_v43  ;;  %v679_v17 = vld [vmem:[%s8715_s2 + $0x38] sm:$0xff]  ;;  %v682_v20 = vld [vmem:[%s8715_s2 + $0x50] sm:$0xff]  ;;  %v5701_v24 = vld [vmem:[%s8714_s1 + $0x64] sm:$0xf] }
  0x36   : > { %3057 = vmatmul.bf16.vlgmr.msra.gmra.mxu1 %v4604_v44  ;;  %817 = vperm.xlu1 %5987, %v675_v48   ;;  %v5703_v23 = vld [vmem:[%s8714_s1 + $0x6c] sm:$0xf0]  ;;  %v4649_v25 = vld [vmem:[%s8714_s1 + $0x70] sm:$0xf0]  ;;  %v4655_v26 = vld [vmem:[%s8714_s1 + $0x68] sm:$0xf] }
  0x37   : > { %3386 = vmatmul.bf16.vlgmr.msra.gmra.mxu2 %v4608_v45  ;;  %827 = vperm.xlu2 %5988, %v677_v51   ;;  %v5704_v27 = vld [vmem:[%s8714_s1 + $0x74] sm:$0xf0]  ;;  %v5702_v28 = vld [vmem:[%s8714_s1 + $0x6c] sm:$0xf]  ;;  %v4657_v29 = vld [vmem:[%s8714_s1 + $0x78] sm:$0xf0]  ;;  %v4648_v30 = vor.u32 %v5703_v23, %v4647_v22  ;;  %v4652_v31 = vor.u32 %v5701_v24, %v4649_v25 }
  0x38   : > { %3715 = vmatmul.bf16.vlgmr.msra.gmra.mxu3 %v4612_v47  ;;  %v4656_v32 = vor.u32 %v5704_v27, %v4655_v26  ;;  %v693_v33 = vld [vmem:[%s8715_s2 + $0xa8] sm:$0xff]  ;;  %v4660_v34 = vor.u32 %v5702_v28, %v4657_v29  ;;  %v692_v36 = vld [vmem:[%s8715_s2 + $0xa0] sm:$0xff]  ;;  %v695_v39 = vld [vmem:[%s8715_s2 + $0xb8] sm:$0xff] }
  0x39   : > { %v685_v35 = vld [vmem:[%s8715_s2 + $0x68] sm:$0xff]  ;;  %v696_v37 = vld [vmem:[%s8715_s2 + $0xc0] sm:$0xff]  ;;  %v5707_v41 = vld [vmem:[%s8714_s1 + $0x8c] sm:$0xf0] }
  0x3a   : > { %v688_v38 = vld [vmem:[%s8715_s2 + $0x80] sm:$0xff]  ;;  %v4665_v43 = vld [vmem:[%s8714_s1 + $0x90] sm:$0xf0]  ;;  %v4671_v44 = vld [vmem:[%s8714_s1 + $0x88] sm:$0xf] }
  0x3b   : > { %832 = vperm.xlu0 %5986, %v678_v50   ;;  %v4663_v40 = vld [vmem:[%s8714_s1 + $0x80] sm:$0xf]  ;;  %v5705_v42 = vld [vmem:[%s8714_s1 + $0x84] sm:$0xf]  ;;  %v5708_v45 = vld [vmem:[%s8714_s1 + $0x94] sm:$0xf0] }
  0x3c   : > { %v5706_v46 = vld [vmem:[%s8714_s1 + $0x8c] sm:$0xf]  ;;  %v4673_v47 = vld [vmem:[%s8714_s1 + $0x98] sm:$0xf0]  ;;  %v4664_v48 = vor.u32 %v5707_v41, %v4663_v40  ;;  %v4668_v49 = vor.u32 %v5705_v42, %v4665_v43  ;;  %v4672_v50 = vor.u32 %v5708_v45, %v4671_v44  ;;  %v698_v54 = vld [vmem:[%s8715_s2 + $0xd0] sm:$0xff] }
  0x3d   : > { %v699_v51 = vld [vmem:[%s8715_s2 + $0xd8] sm:$0xff]  ;;  %v4676_v52 = vor.u32 %v5706_v46, %v4673_v47  ;;  %v702_v55 = vld [vmem:[%s8715_s2 + $0xf0] sm:$0xff]  ;;  %v701_v57 = vld [vmem:[%s8715_s2 + $0xe8] sm:$0xff] }
  0x3e   : > { %837 = vperm.xlu1 %5987, %v679_v17   ;;  %v691_v53 = vld [vmem:[%s8715_s2 + $0x98] sm:$0xff]  ;;  %v694_v56 = vld [vmem:[%s8715_s2 + $0xb0] sm:$0xff]  ;;  %v4679_v58 = vld [vmem:[%s8714_s1 + $0xa0] sm:$0xf] }
  0x3f   : > { %842 = vperm.xlu2 %5988, %v680_v1   ;;  %v5711_v59 = vld [vmem:[%s8714_s1 + $0xac] sm:$0xf0]  ;;  %v4689_v1 = vld [vmem:[%s8714_s1 + $0xb8] sm:$0xf0]  ;;  %v705_v5 = vld [vmem:[%s8715_s2 + $0x108] sm:$0xff] }
  0x40   : > { %v697_v7 = vld [vmem:[%s8715_s2 + $0xc8] sm:$0xff]  ;;  %v704_v8 = vld [vmem:[%s8715_s2 + $0x100] sm:$0xff]  ;;  %v707_v11 = vld [vmem:[%s8715_s2 + $0x118] sm:$0xff] }
  0x41   : > { %v708_v9 = vld [vmem:[%s8715_s2 + $0x120] sm:$0xff]  ;;  %v5716_v17 = vld [vmem:[%s8714_s1 + $0xd4] sm:$0xf0]  ;;  %v714_v26 = vld [vmem:[%s8715_s2 + $0x150] sm:$0xff] }
  0x42   : > { %v700_v10 = vld [vmem:[%s8715_s2 + $0xe0] sm:$0xff]  ;;  %v711_v23 = vld [vmem:[%s8715_s2 + $0x138] sm:$0xff]  ;;  %v5719_v28 = vld [vmem:[%s8714_s1 + $0xec] sm:$0xf0] }
  0x43   : > { %847 = vperm.xlu0 %5986, %v681_v63   ;;  %v5712_v63 = vld [vmem:[%s8714_s1 + $0xb4] sm:$0xf0]  ;;  %v4711_v27 = vld [vmem:[%s8714_s1 + $0xe0] sm:$0xf]  ;;  %v5717_v29 = vld [vmem:[%s8714_s1 + $0xe4] sm:$0xf] }
  0x44   : > { %v703_v25 = vld [vmem:[%s8715_s2 + $0xf8] sm:$0xff]  ;;  %v717_v40 = vld [vmem:[%s8715_s2 + $0x168] sm:$0xff]  ;;  %v720_v44 = vld [vmem:[%s8715_s2 + $0x180] sm:$0xff] }
  0x45   : > { %2733 = vmatmul.bf16.gmra.mxu0 %v4616_v60  ;;  %v5709_v60 = vld [vmem:[%s8714_s1 + $0xa4] sm:$0xf]  ;;  %v713_v42 = vld [vmem:[%s8715_s2 + $0x148] sm:$0xff]  ;;  %v4727_v45 = vld [vmem:[%s8714_s1 + $0x100] sm:$0xf] }
  0x46   : > { %3062 = vmatmul.bf16.gmra.mxu1 %v4620_v61  ;;  %852 = vperm.xlu1 %5987, %v682_v20   ;;  %v4681_v61 = vld [vmem:[%s8714_s1 + $0xb0] sm:$0xf0]  ;;  %v709_v43 = vld [vmem:[%s8715_s2 + $0x128] sm:$0xff]  ;;  %v5723_v46 = vld [vmem:[%s8714_s1 + $0x10c] sm:$0xf0] }
  0x47   : > { %3391 = vmatmul.bf16.gmra.mxu2 %v4624_v62  ;;  %857 = vperm.xlu2 %5988, %v683_v3   ;;  %v4687_v62 = vld [vmem:[%s8714_s1 + $0xa8] sm:$0xf]  ;;  %v4684_v3 = vor.u32 %v5709_v60, %v4681_v61  ;;  %v723_v60 = vld [vmem:[%s8715_s2 + $0x198] sm:$0xff] }
  0x48   : > { %3720 = vmatmul.bf16.gmra.mxu3 %v4628_v0  ;;  %v5710_v0 = vld [vmem:[%s8714_s1 + $0xac] sm:$0xf]  ;;  %v4688_v4 = vor.u32 %v5712_v63, %v4687_v62 }
  0x49   : > { %v4692_v6 = vor.u32 %v5710_v0, %v4689_v1  ;;  %v719_v1 = vld [vmem:[%s8715_s2 + $0x178] sm:$0xff] }
  0x4b   : > { %862 = vperm.xlu0 %5986, %v684_v2   ;;  %v4680_v2 = vor.u32 %v5711_v59, %v4679_v58 }
  0x4e   : > { %867 = vperm.xlu1 %5987, %v685_v35   ;;  %v5718_v35 = vld [vmem:[%s8714_s1 + $0xec] sm:$0xf] }
  0x4f   : > { %872 = vperm.xlu2 %5988, %v686_v18   ;;  %v5714_v18 = vld [vmem:[%s8714_s1 + $0xcc] sm:$0xf] }
  0x53   : > { %877 = vperm.xlu0 %5986, %v687_v15   ;;  %v4697_v15 = vld [vmem:[%s8714_s1 + $0xd0] sm:$0xf0] }
  0x55   : > { %2738 = vmatmul.bf16.gmra.mxu0 %v4632_v12  ;;  %v4695_v12 = vld [vmem:[%s8714_s1 + $0xc0] sm:$0xf] }
  0x56   : > { %3067 = vmatmul.bf16.gmra.mxu1 %v4636_v13  ;;  %882 = vperm.xlu1 %5987, %v688_v38   ;;  %v5715_v13 = vld [vmem:[%s8714_s1 + $0xcc] sm:$0xf0] }
  0x57   : > { %3396 = vmatmul.bf16.gmra.mxu2 %v4640_v14  ;;  %887 = vperm.xlu2 %5988, %v689_v21   ;;  %v5713_v14 = vld [vmem:[%s8714_s1 + $0xc4] sm:$0xf]  ;;  %v4696_v20 = vor.u32 %v5715_v13, %v4695_v12  ;;  %v4743_v13 = vld [vmem:[%s8714_s1 + $0x120] sm:$0xf] }
  0x58   : > { %3725 = vmatmul.bf16.gmra.mxu3 %v4644_v16  ;;  %v4703_v16 = vld [vmem:[%s8714_s1 + $0xc8] sm:$0xf]  ;;  %v4700_v21 = vor.u32 %v5713_v14, %v4697_v15  ;;  %v5727_v14 = vld [vmem:[%s8714_s1 + $0x12c] sm:$0xf0] }
  0x59   : > { %v4704_v22 = vor.u32 %v5716_v17, %v4703_v16  ;;  %v5725_v16 = vld [vmem:[%s8714_s1 + $0x124] sm:$0xf]  ;;  %v722_v17 = vld [vmem:[%s8715_s2 + $0x190] sm:$0xff] }
  0x5b   : > { %892 = vperm.xlu0 %5986, %v690_v19   ;;  %v4705_v19 = vld [vmem:[%s8714_s1 + $0xd8] sm:$0xf0] }
  0x5c   : > { %v4708_v24 = vor.u32 %v5714_v18, %v4705_v19  ;;  %v718_v18 = vld [vmem:[%s8715_s2 + $0x170] sm:$0xff] }
  0x5d   : > { %v4745_v19 = vld [vmem:[%s8714_s1 + $0x130] sm:$0xf0] }
  0x5e   : > { %897 = vperm.xlu1 %5987, %v691_v53   ;;  %v5724_v53 = vld [vmem:[%s8714_s1 + $0x114] sm:$0xf0] }
  0x5f   : > { %902 = vperm.xlu2 %5988, %v692_v36   ;;  %v4721_v36 = vld [vmem:[%s8714_s1 + $0xf8] sm:$0xf0] }
  0x60   : > { %v4724_v41 = vor.u32 %v5718_v35, %v4721_v36 }
  0x63   : > { %907 = vperm.xlu0 %5986, %v693_v33   ;;  %v4719_v33 = vld [vmem:[%s8714_s1 + $0xe8] sm:$0xf] }
  0x65   : > { %2743 = vmatmul.bf16.gmra.mxu0 %v4648_v30  ;;  %v710_v30 = vld [vmem:[%s8715_s2 + $0x130] sm:$0xff] }
  0x66   : > { %3072 = vmatmul.bf16.gmra.mxu1 %v4652_v31  ;;  %912 = vperm.xlu1 %5987, %v694_v56   ;;  %v706_v31 = vld [vmem:[%s8715_s2 + $0x110] sm:$0xff]  ;;  %v4728_v56 = vor.u32 %v5723_v46, %v4727_v45 }
  0x67   : > { %3401 = vmatmul.bf16.gmra.mxu2 %v4656_v32  ;;  %917 = vperm.xlu2 %5988, %v695_v39   ;;  %v4713_v32 = vld [vmem:[%s8714_s1 + $0xf0] sm:$0xf0] }
  0x68   : > { %3730 = vmatmul.bf16.gmra.mxu3 %v4660_v34  ;;  %v5720_v34 = vld [vmem:[%s8714_s1 + $0xf4] sm:$0xf0]  ;;  %v4716_v38 = vor.u32 %v5717_v29, %v4713_v32  ;;  %v4748_v29 = vor.u32 %v5725_v16, %v4745_v19 }
  0x69   : > { %v4720_v39 = vor.u32 %v5720_v34, %v4719_v33 }
  0x6b   : > { %922 = vperm.xlu0 %5986, %v696_v37   ;;  %v4712_v37 = vor.u32 %v5719_v28, %v4711_v27 }
  0x6e   : > { %927 = vperm.xlu1 %5987, %v697_v7  }
  0x6f   : > { %932 = vperm.xlu2 %5988, %v698_v54   ;;  %v5722_v54 = vld [vmem:[%s8714_s1 + $0x10c] sm:$0xf] }
  0x73   : > { %937 = vperm.xlu0 %5986, %v699_v51   ;;  %v4729_v51 = vld [vmem:[%s8714_s1 + $0x110] sm:$0xf0] }
  0x75   : > { %2748 = vmatmul.bf16.gmra.mxu0 %v4664_v48  ;;  %v5721_v48 = vld [vmem:[%s8714_s1 + $0x104] sm:$0xf] }
  0x76   : > { %3077 = vmatmul.bf16.gmra.mxu1 %v4668_v49  ;;  %942 = vperm.xlu1 %5987, %v700_v10   ;;  %v716_v49 = vld [vmem:[%s8715_s2 + $0x160] sm:$0xff]  ;;  %v4732_v58 = vor.u32 %v5721_v48, %v4729_v51 }
  0x77   : > { %3406 = vmatmul.bf16.gmra.mxu2 %v4672_v50  ;;  %947 = vperm.xlu2 %5988, %v701_v57   ;;  %v712_v50 = vld [vmem:[%s8715_s2 + $0x140] sm:$0xff] }
  0x78   : > { %3735 = vmatmul.bf16.gmra.mxu3 %v4676_v52  ;;  %v4735_v52 = vld [vmem:[%s8714_s1 + $0x108] sm:$0xf] }
  0x79   : > { %v4736_v59 = vor.u32 %v5724_v53, %v4735_v52  ;;  %v4759_v52 = vld [vmem:[%s8714_s1 + $0x140] sm:$0xf]  ;;  %v5731_v53 = vld [vmem:[%s8714_s1 + $0x14c] sm:$0xf0] }
  0x7b   : > { %952 = vperm.xlu0 %5986, %v702_v55   ;;  %v4737_v55 = vld [vmem:[%s8714_s1 + $0x118] sm:$0xf0] }
  0x7c   : > { %v4740_v63 = vor.u32 %v5722_v54, %v4737_v55  ;;  %v5729_v55 = vld [vmem:[%s8714_s1 + $0x144] sm:$0xf] }
  0x7e   : > { %957 = vperm.xlu1 %5987, %v703_v25   ;;  %v4744_v25 = vor.u32 %v5727_v14, %v4743_v13  ;;  %v731_v14 = vld [vmem:[%s8715_s2 + $0x1d8] sm:$0xff] }
  0x7f   : > { %962 = vperm.xlu2 %5988, %v704_v8   ;;  %v726_v8 = vld [vmem:[%s8715_s2 + $0x1b0] sm:$0xff] }
  0x83   : > { %967 = vperm.xlu0 %5986, %v705_v5  }
  0x85   : > { %2753 = vmatmul.bf16.gmra.mxu0 %v4680_v2  ;;  %v715_v2 = vld [vmem:[%s8715_s2 + $0x158] sm:$0xff] }
  0x86   : > { %3082 = vmatmul.bf16.gmra.mxu1 %v4684_v3  ;;  %972 = vperm.xlu1 %5987, %v706_v31   ;;  %v729_v31 = vld [vmem:[%s8715_s2 + $0x1c8] sm:$0xff] }
  0x87   : > { %3411 = vmatmul.bf16.gmra.mxu2 %v4688_v4  ;;  %977 = vperm.xlu2 %5988, %v707_v11  }
  0x88   : > { %3740 = vmatmul.bf16.gmra.mxu3 %v4692_v6 }
  0x89   : > { %v823_v54 = vpop.permute.xlu2 %822 }
  0x8b   : > { %982 = vperm.xlu0 %5986, %v708_v9  }
  0x8e   : > { %987 = vperm.xlu1 %5987, %v709_v43  }
  0x8f   : > { %992 = vperm.xlu2 %5988, %v710_v30  }
  0x91   : > { %v828_v16 = vpop.permute.xlu2 %827 }
  0x93   : > { %997 = vperm.xlu0 %5986, %v711_v23   ;;  %v4753_v23 = vld [vmem:[%s8714_s1 + $0x138] sm:$0xf0] }
  0x95   : > { %2758 = vmatmul.bf16.gmra.mxu0 %v4696_v20  ;;  %v4751_v20 = vld [vmem:[%s8714_s1 + $0x128] sm:$0xf] }
  0x96   : > { %3087 = vmatmul.bf16.gmra.mxu1 %v4700_v21  ;;  %1002 = vperm.xlu1 %5987, %v712_v50   ;;  %v5728_v21 = vld [vmem:[%s8714_s1 + $0x134] sm:$0xf0] }
  0x97   : > { %3416 = vmatmul.bf16.gmra.mxu2 %v4704_v22  ;;  %1007 = vperm.xlu2 %5988, %v713_v42   ;;  %v5726_v22 = vld [vmem:[%s8714_s1 + $0x12c] sm:$0xf]  ;;  %v4752_v30 = vor.u32 %v5728_v21, %v4751_v20 }
  0x98   : > { %3745 = vmatmul.bf16.gmra.mxu3 %v4708_v24  ;;  %v4756_v34 = vor.u32 %v5726_v22, %v4753_v23  ;;  %v738_v22 = vld [vmem:[%s8715_s2 + $0x210] sm:$0xff] }
  0x9b   : > { %1012 = vperm.xlu0 %5986, %v714_v26  }
  0x9d   : > { %v803_v47 = vpop.permute.xlu0 %802 }
  0x9e   : > { %1017 = vperm.xlu1 %5987, %v715_v2  }
  0x9f   : > { %1022 = vperm.xlu2 %5988, %v716_v49  }
  0xa0   : > { %v813_v15 = vpop.permute.xlu1 %812 }
  0xa3   : > { %1027 = vperm.xlu0 %5986, %v717_v40   ;;  %v721_v40 = vld [vmem:[%s8715_s2 + $0x188] sm:$0xff] }
  0xa5   : > { %2763 = vmatmul.bf16.gmra.mxu0 %v4712_v37  ;;  %v808_v3 = vpop.permute.xlu0 %807 }
  0xa6   : > { %3092 = vmatmul.bf16.gmra.mxu1 %v4716_v38  ;;  %1032 = vperm.xlu1 %5987, %v718_v18  }
  0xa7   : > { %3421 = vmatmul.bf16.gmra.mxu2 %v4720_v39  ;;  %1037 = vperm.xlu2 %5988, %v719_v1   ;;  %v725_v39 = vld [vmem:[%s8715_s2 + $0x1a8] sm:$0xff] }
  0xa8   : > { %3750 = vmatmul.bf16.gmra.mxu3 %v4724_v41  ;;  %v818_v41 = vpop.permute.xlu1 %817 }
  0xab   : > { %1042 = vperm.xlu0 %5986, %v720_v44  }
  0xae   : > { %1047 = vperm.xlu1 %5987, %v721_v40  }
  0xaf   : > { %1052 = vperm.xlu2 %5988, %v722_v17  }
  0xb2   : > { %v2729_v57 = vpop.f32.mrf.mxu0 }
  0xb3   : > { %v2730_v61 = vadd.f32 %v2729_v57, %v803_v47  ;;  %v3058_v62 = vpop.f32.mrf.mxu1  ;;  %1057 = vperm.xlu0 %5986, %v723_v60   ;;  %v732_v47 = vld [vmem:[%s8715_s2 + $0x1e0] sm:$0xff]  ;;  %v5732_v60 = vld [vmem:[%s8714_s1 + $0x154] sm:$0xf0] }
  0xb4   : > { %v724_v57 = vld [vmem:[%s8715_s2 + $0x1a0] sm:$0xff] }
  0xb5   : > { %v3059_v0 = vadd.f32 %v3058_v62, %v2730_v61  ;;  %2768 = vmatmul.bf16.gmra.mxu0 %v4728_v56  ;;  %v728_v56 = vld [vmem:[%s8715_s2 + $0x1c0] sm:$0xff]  ;;  %v5730_v61 = vld [vmem:[%s8714_s1 + $0x14c] sm:$0xf]  ;;  %v4769_v62 = vld [vmem:[%s8714_s1 + $0x158] sm:$0xf0] }
  0xb6   : > { %3097 = vmatmul.bf16.gmra.mxu1 %v4732_v58  ;;  %v4761_v58 = vld [vmem:[%s8714_s1 + $0x150] sm:$0xf0]  ;;  %1062 = vperm.xlu1 %5987, %v724_v57  }
  0xb7   : > { %3426 = vmatmul.bf16.gmra.mxu2 %v4736_v59  ;;  %1067 = vperm.xlu2 %5988, %v725_v39   ;;  %v4767_v59 = vld [vmem:[%s8714_s1 + $0x148] sm:$0xf] }
  0xb8   : > { %3755 = vmatmul.bf16.gmra.mxu3 %v4740_v63 }
  0xba   : > { %v3387_v4 = vpop.f32.mrf.mxu2  ;;  %v2731_v7 = vpop.f32.mrf.mxu0 }
  0xbb   : > { %v3388_v5 = vadd.f32 %v3387_v4, %v3059_v0  ;;  %v3716_v6 = vpop.f32.mrf.mxu3  ;;  %v2732_v9 = vadd.f32 %v2731_v7, %v808_v3  ;;  %v3060_v10 = vpop.f32.mrf.mxu1  ;;  %1072 = vperm.xlu0 %5986, %v726_v8   ;;  %v4760_v0 = vor.u32 %v5731_v53, %v4759_v52  ;;  %v4764_v4 = vor.u32 %v5729_v55, %v4761_v58  ;;  %v733_v55 = vld [vmem:[%s8715_s2 + $0x1e8] sm:$0xff] }
  0xbd   : > { %v3717_v11 = vadd.f32 %v3716_v6, %v3388_v5  ;;  %v3061_v12 = vadd.f32 %v3060_v10, %v2732_v9  ;;  %v4768_v5 = vor.u32 %v5732_v60, %v4767_v59  ;;  %v735_v6 = vld [vmem:[%s8715_s2 + $0x1f8] sm:$0xff]  ;;  %v4772_v9 = vor.u32 %v5730_v61, %v4769_v62  ;;  %v744_v62 = vld [vmem:[%s8715_s2 + $0x240] sm:$0xff] }
  0xbf   : > { %v4036_v37 = vmax.f32 %v3717_v11, 0.0  ;;  %1082 = vperm.xlu2 %5988, %v728_v56   ;;  %v838_v56 = vpop.permute.xlu1 %837 }
  0xc2   : > { %v3389_v24 = vpop.f32.mrf.mxu2  ;;  %v2734_v28 = vpop.f32.mrf.mxu0 }
  0xc3   : > { %v3390_v26 = vadd.f32 %v3389_v24, %v3061_v12  ;;  %v3718_v27 = vpop.f32.mrf.mxu3  ;;  %v2735_v32 = vadd.f32 %v2734_v28, %v813_v15  ;;  %v3063_v33 = vpop.f32.mrf.mxu1  ;;  %1087 = vperm.xlu0 %5986, %v729_v31   ;;  %v727_v15 = vld [vmem:[%s8715_s2 + $0x1b8] sm:$0xff]  ;;  %v5735_v28 = vld [vmem:[%s8714_s1 + $0x16c] sm:$0xf0] }
  0xc4   : > { %1077 = vperm.xlu1 %5987, %v727_v15   ;;  %v730_v31 = vld [vmem:[%s8715_s2 + $0x1d0] sm:$0xff] }
  0xc5   : > { %v3719_v35 = vadd.f32 %v3718_v27, %v3390_v26  ;;  %v3064_v36 = vadd.f32 %v3063_v33, %v2735_v32  ;;  %2773 = vmatmul.bf16.gmra.mxu0 %v4744_v25  ;;  %v4775_v27 = vld [vmem:[%s8714_s1 + $0x160] sm:$0xf]  ;;  %v4777_v32 = vld [vmem:[%s8714_s1 + $0x170] sm:$0xf0]  ;;  %v4783_v33 = vld [vmem:[%s8714_s1 + $0x168] sm:$0xf] }
  0xc6   : > { %3102 = vmatmul.bf16.gmra.mxu1 %v4748_v29  ;;  %v5733_v29 = vld [vmem:[%s8714_s1 + $0x164] sm:$0xf]  ;;  %v4776_v39 = vor.u32 %v5735_v28, %v4775_v27 }
  0xc7   : > { %v4037_v38 = vmax.f32 %v3719_v35, 0.0  ;;  %3431 = vmatmul.bf16.gmra.mxu2 %v4752_v30  ;;  %1097 = vperm.xlu2 %5988, %v731_v14   ;;  %v734_v30 = vld [vmem:[%s8715_s2 + $0x1f0] sm:$0xff]  ;;  %v833_v35 = vpop.permute.xlu0 %832 }
  0xc8   : > { %3760 = vmatmul.bf16.gmra.mxu3 %v4756_v34  ;;  %v5736_v34 = vld [vmem:[%s8714_s1 + $0x174] sm:$0xf0] }
  0xc9   : > { %v6539_v42 = vpack.c.bf16 %v4037_v38, %v4036_v37  ;;  %v4785_v37 = vld [vmem:[%s8714_s1 + $0x178] sm:$0xf0] }
  0xca   : > { %v3392_v43 = vpop.f32.mrf.mxu2  ;;  %v2736_v46 = vpop.f32.mrf.mxu0 }
  0xcb   : > { %v3393_v44 = vadd.f32 %v3392_v43, %v3064_v36  ;;  %v3721_v45 = vpop.f32.mrf.mxu3  ;;  %v2737_v48 = vadd.f32 %v2736_v46, %v818_v41  ;;  %v3065_v49 = vpop.f32.mrf.mxu1  ;;  %1102 = vperm.xlu0 %5986, %v732_v47   ;;  %v5734_v36 = vld [vmem:[%s8714_s1 + $0x16c] sm:$0xf] }
  0xcc   : > { %1092 = vperm.xlu1 %5987, %v730_v31   ;;  %v741_v46 = vld [vmem:[%s8715_s2 + $0x228] sm:$0xff]  ;;  %v739_v31 = vld [vmem:[%s8715_s2 + $0x218] sm:$0xff] }
  0xcd   : > { %v3722_v50 = vadd.f32 %v3721_v45, %v3393_v44  ;;  %v3066_v51 = vadd.f32 %v3065_v49, %v2737_v48  ;;  %v4780_v44 = vor.u32 %v5733_v29, %v4777_v32  ;;  %v4784_v45 = vor.u32 %v5736_v34, %v4783_v33 }
  0xce   : > { %v4788_v49 = vor.u32 %v5734_v36, %v4785_v37  ;;  %v750_v37 = vld [vmem:[%s8715_s2 + $0x270] sm:$0xff] }
  0xcf   : > { %v4038_v12 = vmax.f32 %v3722_v50, 0.0  ;;  %1112 = vperm.xlu2 %5988, %v734_v30   ;;  %v743_v30 = vld [vmem:[%s8715_s2 + $0x238] sm:$0xff] }
  0xd2   : > { %v3394_v63 = vpop.f32.mrf.mxu2  ;;  %v2739_v3 = vpop.f32.mrf.mxu0 }
  0xd3   : > { %v3395_v1 = vadd.f32 %v3394_v63, %v3066_v51  ;;  %v3723_v2 = vpop.f32.mrf.mxu3  ;;  %v2740_v7 = vadd.f32 %v2739_v3, %v823_v54  ;;  %v3068_v8 = vpop.f32.mrf.mxu1  ;;  %1117 = vperm.xlu0 %5986, %v735_v6   ;;  %v737_v54 = vld [vmem:[%s8715_s2 + $0x208] sm:$0xff]  ;;  %v4791_v3 = vld [vmem:[%s8714_s1 + $0x180] sm:$0xf] }
  0xd4   : > { %1107 = vperm.xlu1 %5987, %v733_v55   ;;  %v740_v6 = vld [vmem:[%s8715_s2 + $0x220] sm:$0xff] }
  0xd5   : > { %v3724_v10 = vadd.f32 %v3723_v2, %v3395_v1  ;;  %v3069_v11 = vadd.f32 %v3068_v8, %v2740_v7  ;;  %2778 = vmatmul.bf16.gmra.mxu0 %v4760_v0  ;;  %v736_v7 = vld [vmem:[%s8715_s2 + $0x200] sm:$0xff]  ;;  %v4793_v8 = vld [vmem:[%s8714_s1 + $0x190] sm:$0xf0] }
  0xd6   : > { %3107 = vmatmul.bf16.gmra.mxu1 %v4764_v4  ;;  %v5739_v4 = vld [vmem:[%s8714_s1 + $0x18c] sm:$0xf0] }
  0xd7   : > { %v4039_v13 = vmax.f32 %v3724_v10, 0.0  ;;  %3436 = vmatmul.bf16.gmra.mxu2 %v4768_v5  ;;  %1127 = vperm.xlu2 %5988, %v737_v54   ;;  %v5737_v5 = vld [vmem:[%s8714_s1 + $0x184] sm:$0xf]  ;;  %v5740_v10 = vld [vmem:[%s8714_s1 + $0x194] sm:$0xf0]  ;;  %v4792_v15 = vor.u32 %v5739_v4, %v4791_v3 }
  0xd8   : > { %3765 = vmatmul.bf16.gmra.mxu3 %v4772_v9  ;;  %v4799_v9 = vld [vmem:[%s8714_s1 + $0x188] sm:$0xf]  ;;  %v4823_v4 = vld [vmem:[%s8714_s1 + $0x1c0] sm:$0xf] }
  0xd9   : > { %v6583_v17 = vpack.c.bf16 %v4039_v13, %v4038_v12  ;;  %v5738_v12 = vld [vmem:[%s8714_s1 + $0x18c] sm:$0xf]  ;;  %v4801_v13 = vld [vmem:[%s8714_s1 + $0x198] sm:$0xf0] }
  0xda   : > { %v3397_v18 = vpop.f32.mrf.mxu2  ;;  %v2741_v21 = vpop.f32.mrf.mxu0 }
  0xdb   : > { %v3398_v19 = vadd.f32 %v3397_v18, %v3069_v11  ;;  %v3726_v20 = vpop.f32.mrf.mxu3  ;;  %v2742_v23 = vadd.f32 %v2741_v21, %v828_v16  ;;  %v3070_v24 = vpop.f32.mrf.mxu1  ;;  %1132 = vperm.xlu0 %5986, %v738_v22   ;;  %v4800_v21 = vor.u32 %v5740_v10, %v4799_v9  ;;  %v747_v22 = vld [vmem:[%s8715_s2 + $0x258] sm:$0xff]  ;;  %v4825_v9 = vld [vmem:[%s8714_s1 + $0x1d0] sm:$0xf0]  ;;  %v4831_v10 = vld [vmem:[%s8714_s1 + $0x1c8] sm:$0xf] }
  0xdc   : > { %v843_v11 = vpop.permute.xlu2 %842  ;;  %1122 = vperm.xlu1 %5987, %v736_v7   ;;  %v752_v7 = vld [vmem:[%s8715_s2 + $0x280] sm:$0xff] }
  0xdd   : > { %v3727_v25 = vadd.f32 %v3726_v20, %v3398_v19  ;;  %v3071_v26 = vadd.f32 %v3070_v24, %v2742_v23  ;;  %v4796_v20 = vor.u32 %v5737_v5, %v4793_v8  ;;  %v5747_v5 = vld [vmem:[%s8714_s1 + $0x1cc] sm:$0xf0]  ;;  %v748_v8 = vld [vmem:[%s8715_s2 + $0x260] sm:$0xff] }
  0xdf   : > { %v4040_v52 = vmax.f32 %v3727_v25, 0.0  ;;  %1142 = vperm.xlu2 %5988, %v740_v6   ;;  %v4804_v25 = vor.u32 %v5738_v12, %v4801_v13  ;;  %v5745_v6 = vld [vmem:[%s8714_s1 + $0x1c4] sm:$0xf]  ;;  %v5746_v12 = vld [vmem:[%s8714_s1 + $0x1cc] sm:$0xf] }
  0xe0   : > { %v4833_v13 = vld [vmem:[%s8714_s1 + $0x1d8] sm:$0xf0] }
  0xe2   : > { %v3399_v38 = vpop.f32.mrf.mxu2  ;;  %v2744_v43 = vpop.f32.mrf.mxu0 }
  0xe3   : > { %v3400_v40 = vadd.f32 %v3399_v38, %v3071_v26  ;;  %v3728_v41 = vpop.f32.mrf.mxu3  ;;  %v2745_v47 = vadd.f32 %v2744_v43, %v833_v35  ;;  %v3073_v48 = vpop.f32.mrf.mxu1  ;;  %1147 = vperm.xlu0 %5986, %v741_v46   ;;  %v5741_v43 = vld [vmem:[%s8714_s1 + $0x1a4] sm:$0xf]  ;;  %v4809_v46 = vld [vmem:[%s8714_s1 + $0x1b0] sm:$0xf0] }
  0xe4   : > { %1137 = vperm.xlu1 %5987, %v739_v31   ;;  %v4812_v55 = vor.u32 %v5741_v43, %v4809_v46  ;;  %v858_v31 = vpop.permute.xlu2 %857  ;;  %v853_v43 = vpop.permute.xlu1 %852  ;;  %v5752_v46 = vld [vmem:[%s8714_s1 + $0x1f4] sm:$0xf0] }
  0xe5   : > { %v3729_v50 = vadd.f32 %v3728_v41, %v3400_v40  ;;  %v3074_v51 = vadd.f32 %v3073_v48, %v2745_v47  ;;  %2783 = vmatmul.bf16.gmra.mxu0 %v4776_v39  ;;  %v4807_v40 = vld [vmem:[%s8714_s1 + $0x1a0] sm:$0xf]  ;;  %v5743_v41 = vld [vmem:[%s8714_s1 + $0x1ac] sm:$0xf0]  ;;  %v4815_v47 = vld [vmem:[%s8714_s1 + $0x1a8] sm:$0xf] }
  0xe6   : > { %3112 = vmatmul.bf16.gmra.mxu1 %v4780_v44  ;;  %v746_v44 = vld [vmem:[%s8715_s2 + $0x250] sm:$0xff]  ;;  %v5744_v48 = vld [vmem:[%s8714_s1 + $0x1b4] sm:$0xf0] }
  0xe7   : > { %v4041_v53 = vmax.f32 %v3729_v50, 0.0  ;;  %3441 = vmatmul.bf16.gmra.mxu2 %v4784_v45  ;;  %1157 = vperm.xlu2 %5988, %v743_v30   ;;  %v742_v45 = vld [vmem:[%s8715_s2 + $0x230] sm:$0xff]  ;;  %v4817_v50 = vld [vmem:[%s8714_s1 + $0x1b8] sm:$0xf0] }
  0xe8   : > { %3770 = vmatmul.bf16.gmra.mxu3 %v4788_v49  ;;  %v5742_v49 = vld [vmem:[%s8714_s1 + $0x1ac] sm:$0xf]  ;;  %v762_v30 = vld [vmem:[%s8715_s2 + $0x2d0] sm:$0xff] }
  0xe9   : > { %v6627_v57 = vpack.c.bf16 %v4041_v53, %v4040_v52  ;;  %v4808_v52 = vor.u32 %v5743_v41, %v4807_v40  ;;  %v758_v40 = vld [vmem:[%s8715_s2 + $0x2b0] sm:$0xff] }
  0xea   : > { %v3402_v58 = vpop.f32.mrf.mxu2  ;;  %v2746_v61 = vpop.f32.mrf.mxu0  ;;  %v754_v41 = vld [vmem:[%s8715_s2 + $0x290] sm:$0xff] }
  0xeb   : > { %v3403_v59 = vadd.f32 %v3402_v58, %v3074_v51  ;;  %v3731_v60 = vpop.f32.mrf.mxu3  ;;  %v2747_v63 = vadd.f32 %v2746_v61, %v838_v56  ;;  %v3075_v0 = vpop.f32.mrf.mxu1  ;;  %1162 = vperm.xlu0 %5986, %v744_v62   ;;  %v4816_v56 = vor.u32 %v5744_v48, %v4815_v47  ;;  %v753_v58 = vld [vmem:[%s8715_s2 + $0x288] sm:$0xff]  ;;  %v4849_v48 = vld [vmem:[%s8714_s1 + $0x1f8] sm:$0xf0] }
  0xec   : > { %1152 = vperm.xlu1 %5987, %v742_v45   ;;  %v749_v61 = vld [vmem:[%s8715_s2 + $0x268] sm:$0xff] }
  0xed   : > { %v3732_v1 = vadd.f32 %v3731_v60, %v3403_v59  ;;  %v3076_v2 = vadd.f32 %v3075_v0, %v2747_v63  ;;  %v4820_v60 = vor.u32 %v5742_v49, %v4817_v50  ;;  %v745_v62 = vld [vmem:[%s8715_s2 + $0x248] sm:$0xff] }
  0xee   : > { %v4847_v45 = vld [vmem:[%s8714_s1 + $0x1e8] sm:$0xf]  ;;  %v5750_v47 = vld [vmem:[%s8714_s1 + $0x1ec] sm:$0xf] }
  0xef   : > { %v4042_v28 = vmax.f32 %v3732_v1, 0.0  ;;  %1172 = vperm.xlu2 %5988, %v746_v44   ;;  %v4841_v44 = vld [vmem:[%s8714_s1 + $0x1f0] sm:$0xf0] }
  0xf2   : > { %v3404_v14 = vpop.f32.mrf.mxu2  ;;  %v2749_v19 = vpop.f32.mrf.mxu0 }
  0xf3   : > { %v3405_v16 = vadd.f32 %v3404_v14, %v3076_v2  ;;  %v3733_v18 = vpop.f32.mrf.mxu3  ;;  %v2750_v23 = vadd.f32 %v2749_v19, %v843_v11  ;;  %v3078_v24 = vpop.f32.mrf.mxu1  ;;  %1177 = vperm.xlu0 %5986, %v747_v22   ;;  %v756_v2 = vld [vmem:[%s8715_s2 + $0x2a0] sm:$0xff]  ;;  %v5748_v11 = vld [vmem:[%s8714_s1 + $0x1d4] sm:$0xf0]  ;;  %v4828_v19 = vor.u32 %v5745_v6, %v4825_v9  ;;  %v761_v6 = vld [vmem:[%s8715_s2 + $0x2c8] sm:$0xff] }
  0xf4   : > { %1167 = vperm.xlu1 %5987, %v745_v62   ;;  %v873_v62 = vpop.permute.xlu2 %872 }
  0xf5   : > { %v3734_v26 = vadd.f32 %v3733_v18, %v3405_v16  ;;  %v3079_v27 = vadd.f32 %v3078_v24, %v2750_v23  ;;  %2788 = vmatmul.bf16.gmra.mxu0 %v4792_v15  ;;  %v4824_v15 = vor.u32 %v5747_v5, %v4823_v4  ;;  %v4836_v23 = vor.u32 %v5746_v12, %v4833_v13  ;;  %v755_v24 = vld [vmem:[%s8715_s2 + $0x298] sm:$0xff] }
  0xf6   : > { %3117 = vmatmul.bf16.gmra.mxu1 %v4796_v20  ;;  %v4832_v20 = vor.u32 %v5748_v11, %v4831_v10  ;;  %v4852_v4 = vor.u32 %v5750_v47, %v4849_v48 }
  0xf7   : > { %v4043_v29 = vmax.f32 %v3734_v26, 0.0  ;;  %3446 = vmatmul.bf16.gmra.mxu2 %v4800_v21  ;;  %1187 = vperm.xlu2 %5988, %v749_v61   ;;  %v759_v21 = vld [vmem:[%s8715_s2 + $0x2b8] sm:$0xff]  ;;  %v6785_v26 = vpop.permute.xlu0 %847 }
  0xf8   : > { %3775 = vmatmul.bf16.gmra.mxu3 %v4804_v25  ;;  %v751_v25 = vld [vmem:[%s8715_s2 + $0x278] sm:$0xff] }
  0xf9   : > { %v6671_v32 = vpack.c.bf16 %v4043_v29, %v4042_v28  ;;  %v783_v61 = vld [vmem:[%s8715_s2 + $0x378] sm:$0xff] }
  0xfa   : > { %v3407_v33 = vpop.f32.mrf.mxu2  ;;  %v6673_v36 = vpop.f32.mrf.mxu0 }
  0xfb   : > { %v3408_v34 = vadd.f32 %v3407_v33, %v3079_v27  ;;  %v3736_v35 = vpop.f32.mrf.mxu3  ;;  %v6678_v38 = vpop.f32.mrf.mxu1  ;;  %1192 = vperm.xlu0 %5986, %v750_v37   ;;  %v5749_v37 = vld [vmem:[%s8714_s1 + $0x1e4] sm:$0xf] }
  0xfc   : > { %1182 = vperm.xlu1 %5987, %v748_v8   ;;  %v757_v8 = vld [vmem:[%s8715_s2 + $0x2a8] sm:$0xff] }
  0xfd   : > { %v6680_v39 = vadd.f32 %v3736_v35, %v3408_v34  ;;  %v4839_v34 = vld [vmem:[%s8714_s1 + $0x1e0] sm:$0xf]  ;;  %v5751_v35 = vld [vmem:[%s8714_s1 + $0x1ec] sm:$0xf0] }
  0xff   : > { %1202 = vperm.xlu2 %5988, %v752_v7   ;;  %v863_v49 = vpop.permute.xlu0 %862  ;;  %v868_v7 = vpop.permute.xlu1 %867 }
 0x102   : > { %v6712_v51 = vpop.f32.mrf.mxu2  ;;  %v6716_v54 = vpop.f32.mrf.mxu0 }
 0x103   : > { %v6714_v53 = vpop.f32.mrf.mxu3  ;;  %v6721_v59 = vpop.f32.mrf.mxu1  ;;  %1207 = vperm.xlu0 %5986, %v753_v58   ;;  %v4844_v58 = vor.u32 %v5749_v37, %v4841_v44  ;;  %v5753_v37 = vld [vmem:[%s8714_s1 + $0x204] sm:$0xf]  ;;  %v5754_v44 = vld [vmem:[%s8714_s1 + $0x20c] sm:$0xf] }
 0x104   : > { %1197 = vperm.xlu1 %5987, %v751_v25  }
 0x105   : > { %2793 = vmatmul.bf16.gmra.mxu0 %v4808_v52  ;;  %v4840_v52 = vor.u32 %v5751_v35, %v4839_v34 }
 0x106   : > { %3122 = vmatmul.bf16.gmra.mxu1 %v4812_v55 }
 0x107   : > { %3451 = vmatmul.bf16.gmra.mxu2 %v4816_v56  ;;  %1217 = vperm.xlu2 %5988, %v755_v24   ;;  %v878_v9 = vpop.permute.xlu0 %877  ;;  %v2755_v24 = vadd.f32 %v6716_v54, %v853_v43  ;;  %v4857_v54 = vld [vmem:[%s8714_s1 + $0x210] sm:$0xf0] }
 0x108   : > { %3780 = vmatmul.bf16.gmra.mxu3 %v4820_v60  ;;  %v4848_v60 = vor.u32 %v5752_v46, %v4847_v45  ;;  %v4865_v45 = vld [vmem:[%s8714_s1 + $0x218] sm:$0xf0] }
 0x109   : > { %v3084_v46 = vadd.f32 %v6721_v59, %v2755_v24 }
 0x10a   : > { %v6729_v63 = vpop.f32.mrf.mxu2  ;;  %v6733_v1 = vpop.f32.mrf.mxu0 }
 0x10b   : > { %v6731_v0 = vpop.f32.mrf.mxu3  ;;  %v6738_v3 = vpop.f32.mrf.mxu1  ;;  %1222 = vperm.xlu0 %5986, %v756_v2   ;;  %v2757_v25 = vadd.f32 %v6733_v1, %v858_v31  ;;  %v782_v1 = vld [vmem:[%s8715_s2 + $0x370] sm:$0xff]  ;;  %v4863_v31 = vld [vmem:[%s8714_s1 + $0x208] sm:$0xf] }
 0x10c   : > { %1212 = vperm.xlu1 %5987, %v754_v41  }
 0x10d   : > { %v3086_v47 = vadd.f32 %v6738_v3, %v2757_v25  ;;  %v4868_v3 = vor.u32 %v5754_v44, %v4865_v45  ;;  %v764_v25 = vld [vmem:[%s8715_s2 + $0x2e0] sm:$0xff]  ;;  %v5758_v44 = vld [vmem:[%s8714_s1 + $0x22c] sm:$0xf]  ;;  %v4881_v45 = vld [vmem:[%s8714_s1 + $0x238] sm:$0xf0] }
 0x10f   : > { %1232 = vperm.xlu2 %5988, %v758_v40   ;;  %v883_v40 = vpop.permute.xlu1 %882 }
 0x112   : > { %v6770_v14 = vpop.f32.mrf.mxu2  ;;  %v2759_v18 = vpop.f32.mrf.mxu0 }
 0x113   : > { %v6772_v16 = vpop.f32.mrf.mxu3  ;;  %v6777_v22 = vpop.f32.mrf.mxu1  ;;  %1237 = vperm.xlu0 %5986, %v759_v21   ;;  %v2760_v11 = vadd.f32 %v2759_v18, %v863_v49  ;;  %v5755_v18 = vld [vmem:[%s8714_s1 + $0x20c] sm:$0xf0] }
 0x114   : > { %1227 = vperm.xlu1 %5987, %v757_v8  }
 0x115   : > { %2798 = vmatmul.bf16.gmra.mxu0 %v4824_v15 }
 0x116   : > { %3127 = vmatmul.bf16.gmra.mxu1 %v4828_v19 }
 0x117   : > { %3456 = vmatmul.bf16.gmra.mxu2 %v4832_v20  ;;  %1247 = vperm.xlu2 %5988, %v761_v6   ;;  %v766_v20 = vld [vmem:[%s8715_s2 + $0x2f0] sm:$0xff]  ;;  %v3415_v6 = vadd.f32 %v6770_v14, %v3086_v47 }
 0x118   : > { %3785 = vmatmul.bf16.gmra.mxu3 %v4836_v23 }
 0x11a   : > { %v6787_v27 = vpop.f32.mrf.mxu2  ;;  %v2761_v29 = vpop.f32.mrf.mxu0 }
 0x11b   : > { %v6789_v28 = vpop.f32.mrf.mxu3  ;;  %v3090_v33 = vpop.f32.mrf.mxu1  ;;  %1252 = vperm.xlu0 %5986, %v762_v30   ;;  %v2762_v12 = vadd.f32 %v2761_v29, %v868_v7  ;;  %v4855_v30 = vld [vmem:[%s8714_s1 + $0x200] sm:$0xf]  ;;  %v3089_v29 = vadd.f32 %v6777_v22, %v2760_v11  ;;  %v5756_v22 = vld [vmem:[%s8714_s1 + $0x214] sm:$0xf0] }
 0x11c   : > { %v4856_v49 = vor.u32 %v5755_v18, %v4855_v30 }
 0x11d   : > { %v3091_v34 = vadd.f32 %v3090_v33, %v2762_v12  ;;  %v760_v33 = vld [vmem:[%s8715_s2 + $0x2c0] sm:$0xff] }
 0x11e   : > { %1242 = vperm.xlu1 %5987, %v760_v33   ;;  %v4879_v33 = vld [vmem:[%s8714_s1 + $0x228] sm:$0xf] }
 0x11f   : > { %1352 = vperm.xlu2 %5988, %v782_v1   ;;  %v5757_v1 = vld [vmem:[%s8714_s1 + $0x224] sm:$0xf] }
 0x122   : > { %v3419_v50 = vpop.f32.mrf.mxu2  ;;  %v2764_v56 = vpop.f32.mrf.mxu0 }
 0x123   : > { %v6824_v55 = vpop.f32.mrf.mxu3  ;;  %v3093_v2 = vpop.f32.mrf.mxu1  ;;  %1357 = vperm.xlu0 %5986, %v783_v61   ;;  %v2765_v5 = vadd.f32 %v2764_v56, %v873_v62  ;;  %v3420_v41 = vadd.f32 %v3419_v50, %v3091_v34  ;;  %v3418_v56 = vadd.f32 %v6787_v27, %v3089_v29  ;;  %v4864_v62 = vor.u32 %v5756_v22, %v4863_v31  ;;  %v798_v31 = vld [vmem:[%s8715_s2 + $0x3f0] sm:$0xff] }
 0x124   : > { %v4873_v22 = vld [vmem:[%s8714_s1 + $0x230] sm:$0xf0] }
 0x125   : > { %2803 = vmatmul.bf16.gmra.mxu0 %v4840_v52  ;;  %v3094_v13 = vadd.f32 %v3093_v2, %v2765_v5  ;;  %v4860_v52 = vor.u32 %v5753_v37, %v4857_v54  ;;  %v781_v2 = vld [vmem:[%s8715_s2 + $0x368] sm:$0xff]  ;;  %v3749_v7 = vadd.f32 %v6824_v55, %v3420_v41  ;;  %v888_v55 = vpop.permute.xlu2 %887  ;;  %v5759_v37 = vld [vmem:[%s8714_s1 + $0x22c] sm:$0xf0]  ;;  %v893_v41 = vpop.permute.xlu0 %892 }
 0x126   : > { %3132 = vmatmul.bf16.gmra.mxu1 %v4844_v58 }
 0x127   : > { %3461 = vmatmul.bf16.gmra.mxu2 %v4848_v60 }
 0x128   : > { %3790 = vmatmul.bf16.gmra.mxu3 %v4852_v4  ;;  %v2752_v4 = vadd.f32 %v6673_v36, %v6785_v26  ;;  %v799_v36 = vld [vmem:[%s8715_s2 + $0x3f8] sm:$0xff] }
 0x129   : > { %1437 = vperm.xlu2 %5988, %v799_v36   ;;  %v763_v26 = vld [vmem:[%s8715_s2 + $0x2d8] sm:$0xff] }
 0x12a   : > { %v3422_v10 = vpop.f32.mrf.mxu2  ;;  %v2766_v19 = vpop.f32.mrf.mxu0  ;;  %v3081_v14 = vadd.f32 %v6678_v38, %v2752_v4  ;;  %1257 = vperm.xlu1 %5987, %v763_v26   ;;  %v4884_v4 = vor.u32 %v5758_v44, %v4881_v45 }
 0x12b   : > { %v3751_v15 = vpop.f32.mrf.mxu3  ;;  %v3095_v21 = vpop.f32.mrf.mxu1  ;;  %v2767_v23 = vadd.f32 %v2766_v19, %v878_v9  ;;  %1272 = vperm.xlu0 %5986, %v766_v20   ;;  %v3423_v35 = vadd.f32 %v3422_v10, %v3094_v13  ;;  %v3413_v9 = vadd.f32 %v6729_v63, %v3084_v46  ;;  %v3747_v10 = vadd.f32 %v6789_v28, %v3418_v56 }
 0x12c   : > { %v3744_v63 = vadd.f32 %v6772_v16, %v3415_v6  ;;  %v4049_v28 = vmax.f32 %v3749_v7, 0.0 }
 0x12d   : > { %v3096_v43 = vadd.f32 %v3095_v21, %v2767_v23  ;;  %v3752_v50 = vadd.f32 %v3751_v15, %v3423_v35  ;;  %v3410_v15 = vadd.f32 %v6712_v51, %v3081_v14  ;;  %v3742_v20 = vadd.f32 %v6731_v0, %v3413_v9  ;;  %v4871_v0 = vld [vmem:[%s8714_s1 + $0x220] sm:$0xf] }
 0x12e   : > { %v4048_v21 = vmax.f32 %v3747_v10, 0.0  ;;  %v4047_v16 = vmax.f32 %v3744_v63, 0.0  ;;  %v776_v14 = vld [vmem:[%s8715_s2 + $0x340] sm:$0xff] }
 0x12f   : > { %v4050_v11 = vmax.f32 %v3752_v50, 0.0  ;;  %v3739_v35 = vadd.f32 %v6714_v53, %v3410_v15  ;;  %v4046_v54 = vmax.f32 %v3742_v20, 0.0  ;;  %v780_v53 = vld [vmem:[%s8715_s2 + $0x360] sm:$0xff]  ;;  %v4876_v50 = vor.u32 %v5757_v1, %v4873_v22  ;;  %v5763_v15 = vld [vmem:[%s8714_s1 + $0x24c] sm:$0xf0] }
 0x130   : > { %v4186_v34 = vpack.c.bf16 %v4049_v28, %v4048_v21  ;;  %v796_v20 = vld [vmem:[%s8715_s2 + $0x3e0] sm:$0xff]  ;;  %v4889_v21 = vld [vmem:[%s8714_s1 + $0x250] sm:$0xf0] }
 0x131   : > { %1342 = vperm.xlu2 %5988, %v780_v53   ;;  %v4045_v46 = vmax.f32 %v3739_v35, 0.0 }
 0x132   : > { %v3424_v48 = vpop.f32.mrf.mxu2  ;;  %v2769_v61 = vpop.f32.mrf.mxu0  ;;  %1432 = vperm.xlu1 %5987, %v798_v31  }
 0x133   : > { %v3425_v58 = vadd.f32 %v3424_v48, %v3096_v43  ;;  %v3753_v60 = vpop.f32.mrf.mxu3  ;;  %v2770_v59 = vadd.f32 %v2769_v61, %v883_v40  ;;  %v3098_v5 = vpop.f32.mrf.mxu1  ;;  %1347 = vperm.xlu0 %5986, %v781_v2   ;;  %v5760_v40 = vld [vmem:[%s8714_s1 + $0x234] sm:$0xf0]  ;;  %v4185_v43 = vpack.c.bf16 %v4047_v16, %v4046_v54  ;;  %v4872_v48 = vor.u32 %v5759_v37, %v4871_v0  ;;  %v793_v0 = vld [vmem:[%s8715_s2 + $0x3c8] sm:$0xff] }
 0x134   : > { %v4044_v61 = vmax.f32 %v6680_v39, 0.0  ;;  %v767_v39 = vld [vmem:[%s8715_s2 + $0x2f8] sm:$0xff] }
 0x135   : > { %v3754_v27 = vadd.f32 %v3753_v60, %v3425_v58  ;;  %v3099_v8 = vadd.f32 %v3098_v5, %v2770_v59  ;;  %2808 = vmatmul.bf16.gmra.mxu0 %v4856_v49  ;;  %v4880_v58 = vor.u32 %v5760_v40, %v4879_v33  ;;  %v779_v60 = vld [vmem:[%s8715_s2 + $0x358] sm:$0xff] }
 0x136   : > { %3137 = vmatmul.bf16.gmra.mxu1 %v4860_v52  ;;  %v795_v40 = vld [vmem:[%s8715_s2 + $0x3d8] sm:$0xff] }
 0x137   : > { %v4051_v12 = vmax.f32 %v3754_v27, 0.0  ;;  %3466 = vmatmul.bf16.gmra.mxu2 %v4864_v62  ;;  %v797_v27 = vld [vmem:[%s8715_s2 + $0x3e8] sm:$0xff] }
 0x138   : > { %3795 = vmatmul.bf16.gmra.mxu3 %v4868_v3  ;;  %v4184_v3 = vpack.c.bf16 %v4045_v46, %v4044_v61  ;;  %v792_v61 = vld [vmem:[%s8715_s2 + $0x3c0] sm:$0xff] }
 0x139   : > { %v4187_v13 = vpack.c.bf16 %v4051_v12, %v4050_v11  ;;  %1427 = vperm.xlu2 %5988, %v797_v27  }
 0x13a   : > { %v3427_v19 = vpop.f32.mrf.mxu2  ;;  %v2771_v24 = vpop.f32.mrf.mxu0  ;;  %1277 = vperm.xlu1 %5987, %v767_v39  }
 0x13b   : > { %v3428_v23 = vadd.f32 %v3427_v19, %v3099_v8  ;;  %v3756_v38 = vpop.f32.mrf.mxu3  ;;  %4348 = vmatpush.bf16.msrb.mxu0 %v4187_v13  ;;  %v2772_v30 = vadd.f32 %v2771_v24, %v888_v55  ;;  %v3100_v18 = vpop.f32.mrf.mxu1  ;;  %1262 = vperm.xlu0 %5986, %v764_v25   ;;  %v4887_v13 = vld [vmem:[%s8714_s1 + $0x240] sm:$0xf]  ;;  %v5761_v19 = vld [vmem:[%s8714_s1 + $0x244] sm:$0xf]  ;;  %v5762_v25 = vld [vmem:[%s8714_s1 + $0x24c] sm:$0xf] }
 0x13c   : > { %v898_v8 = vpop.permute.xlu1 %897  ;;  %v903_v24 = vpop.permute.xlu2 %902  ;;  %v4892_v35 = vor.u32 %v5761_v19, %v4889_v21  ;;  %v775_v19 = vld [vmem:[%s8715_s2 + $0x338] sm:$0xff] }
 0x13d   : > { %v3757_v29 = vadd.f32 %v3756_v38, %v3428_v23  ;;  %v3101_v51 = vadd.f32 %v3100_v18, %v2772_v30  ;;  %v4895_v23 = vld [vmem:[%s8714_s1 + $0x248] sm:$0xf]  ;;  %v5764_v38 = vld [vmem:[%s8714_s1 + $0x254] sm:$0xf0]  ;;  %v4888_v18 = vor.u32 %v5763_v15, %v4887_v13 }
 0x13f   : > { %4349 = vmatpush.bf16.msrb.mxu0 %v4186_v34  ;;  %v4052_v6 = vmax.f32 %v3757_v29, 0.0 }
 0x142   : > { %v3429_v47 = vpop.f32.mrf.mxu2  ;;  %v2774_v56 = vpop.f32.mrf.mxu0  ;;  %1422 = vperm.xlu1 %5987, %v796_v20  }
 0x143   : > { %v3430_v49 = vadd.f32 %v3429_v47, %v3101_v51  ;;  %v3758_v52 = vpop.f32.mrf.mxu3  ;;  %4350 = vmatpush.bf16.msrb.mxu0 %v4185_v43  ;;  %v2775_v62 = vadd.f32 %v2774_v56, %v893_v41  ;;  %v3103_v2 = vpop.f32.mrf.mxu1  ;;  %1337 = vperm.xlu0 %5986, %v779_v60   ;;  %v4896_v51 = vor.u32 %v5764_v38, %v4895_v23  ;;  %v5765_v60 = vld [vmem:[%s8714_s1 + $0x264] sm:$0xf] }
 0x144   : > { %v908_v41 = vpop.permute.xlu0 %907  ;;  %v918_v20 = vpop.permute.xlu2 %917 }
 0x145   : > { %v3759_v59 = vadd.f32 %v3758_v52, %v3430_v49  ;;  %v3104_v5 = vadd.f32 %v3103_v2, %v2775_v62  ;;  %2813 = vmatmul.bf16.gmra.mxu0 %v4872_v48  ;;  %v790_v48 = vld [vmem:[%s8715_s2 + $0x3b0] sm:$0xff] }
 0x146   : > { %3142 = vmatmul.bf16.gmra.mxu1 %v4876_v50  ;;  %v4903_v50 = vld [vmem:[%s8714_s1 + $0x260] sm:$0xf]  ;;  %v794_v62 = vld [vmem:[%s8715_s2 + $0x3d0] sm:$0xff] }
 0x147   : > { %v4053_v7 = vmax.f32 %v3759_v59, 0.0  ;;  %3471 = vmatmul.bf16.gmra.mxu2 %v4880_v58  ;;  %4351 = vmatpush.bf16.msrb.mxu0 %v4184_v3  ;;  %v5767_v58 = vld [vmem:[%s8714_s1 + $0x26c] sm:$0xf0]  ;;  %v4905_v2 = vld [vmem:[%s8714_s1 + $0x270] sm:$0xf0] }
 0x148   : > { %3800 = vmatmul.bf16.gmra.mxu3 %v4884_v4  ;;  %v4911_v4 = vld [vmem:[%s8714_s1 + $0x268] sm:$0xf]  ;;  %v5768_v59 = vld [vmem:[%s8714_s1 + $0x274] sm:$0xf0]  ;;  %v5766_v3 = vld [vmem:[%s8714_s1 + $0x26c] sm:$0xf]  ;;  %v4904_v27 = vor.u32 %v5767_v58, %v4903_v50 }
 0x149   : > { %v6937_v9 = vpack.c.bf16 %v4053_v7, %v4052_v6  ;;  %v4913_v6 = vld [vmem:[%s8714_s1 + $0x278] sm:$0xf0] }
 0x14a   : > { %v3432_v10 = vpop.f32.mrf.mxu2  ;;  %v2776_v36 = vpop.f32.mrf.mxu0 }
 0x14b   : > { %v3433_v11 = vadd.f32 %v3432_v10, %v3104_v5  ;;  %v3761_v12 = vpop.f32.mrf.mxu3  ;;  %4352 = vmatpush.bf16.msrb.mxu0 %v6671_v32  ;;  %v2777_v26 = vadd.f32 %v2776_v36, %v898_v8  ;;  %v3105_v55 = vpop.f32.mrf.mxu1  ;;  %1322 = vperm.xlu0 %5986, %v776_v14   ;;  %v778_v32 = vld [vmem:[%s8715_s2 + $0x350] sm:$0xff]  ;;  %v773_v36 = vld [vmem:[%s8715_s2 + $0x328] sm:$0xff] }
 0x14c   : > { %1332 = vperm.xlu2 %5988, %v778_v32   ;;  %v913_v5 = vpop.permute.xlu1 %912  ;;  %v777_v32 = vld [vmem:[%s8715_s2 + $0x348] sm:$0xff] }
 0x14d   : > { %v3762_v63 = vadd.f32 %v3761_v12, %v3433_v11  ;;  %v3106_v28 = vadd.f32 %v3105_v55, %v2777_v26  ;;  %v4908_v11 = vor.u32 %v5765_v60, %v4905_v2  ;;  %v4912_v12 = vor.u32 %v5768_v59, %v4911_v4 }
 0x14e   : > { %v4916_v55 = vor.u32 %v5766_v3, %v4913_v6  ;;  %v784_v6 = vld [vmem:[%s8715_s2 + $0x380] sm:$0xff] }
 0x14f   : > { %4353 = vmatpush.bf16.msrb.mxu0 %v6627_v57  ;;  %v4897_v57 = vld [vmem:[%s8714_s1 + $0x258] sm:$0xf0]  ;;  %v4054_v22 = vmax.f32 %v3762_v63, 0.0 }
 0x150   : > { %v4900_v1 = vor.u32 %v5762_v25, %v4897_v57  ;;  %v770_v57 = vld [vmem:[%s8715_s2 + $0x310] sm:$0xff] }
 0x152   : > { %v3434_v30 = vpop.f32.mrf.mxu2  ;;  %v2779_v34 = vpop.f32.mrf.mxu0 }
 0x153   : > { %v3435_v16 = vadd.f32 %v3434_v30, %v3106_v28  ;;  %v3763_v29 = vpop.f32.mrf.mxu3  ;;  %4354 = vmatpush.bf16.msrb.mxu0 %v6583_v17  ;;  %v2780_v37 = vadd.f32 %v2779_v34, %v903_v24  ;;  %v3108_v54 = vpop.f32.mrf.mxu1  ;;  %1407 = vperm.xlu0 %5986, %v793_v0   ;;  %v765_v17 = vld [vmem:[%s8715_s2 + $0x2e8] sm:$0xff]  ;;  %v4919_v34 = vld [vmem:[%s8714_s1 + $0x280] sm:$0xf] }
 0x154   : > { %1417 = vperm.xlu2 %5988, %v795_v40   ;;  %1267 = vperm.xlu1 %5987, %v765_v17   ;;  %v772_v0 = vld [vmem:[%s8715_s2 + $0x320] sm:$0xff] }
 0x155   : > { %v3764_v53 = vadd.f32 %v3763_v29, %v3435_v16  ;;  %v3109_v31 = vadd.f32 %v3108_v54, %v2780_v37  ;;  %2818 = vmatmul.bf16.gmra.mxu0 %v4888_v18  ;;  %v774_v37 = vld [vmem:[%s8715_s2 + $0x330] sm:$0xff] }
 0x156   : > { %3147 = vmatmul.bf16.gmra.mxu1 %v4892_v35  ;;  %v5771_v35 = vld [vmem:[%s8714_s1 + $0x28c] sm:$0xf0]  ;;  %v4921_v54 = vld [vmem:[%s8714_s1 + $0x290] sm:$0xf0] }
 0x157   : > { %v4055_v33 = vmax.f32 %v3764_v53, 0.0  ;;  %3476 = vmatmul.bf16.gmra.mxu2 %v4896_v51  ;;  %4355 = vmatpush.bf16.msrb.mxu0 %v6539_v42  ;;  %v5769_v51 = vld [vmem:[%s8714_s1 + $0x284] sm:$0xf]  ;;  %v5772_v53 = vld [vmem:[%s8714_s1 + $0x294] sm:$0xf0]  ;;  %v4920_v17 = vor.u32 %v5771_v35, %v4919_v34 }
 0x158   : > { %3805 = vmatmul.bf16.gmra.mxu3 %v4900_v1  ;;  %v4927_v1 = vld [vmem:[%s8714_s1 + $0x288] sm:$0xf]  ;;  %v4951_v34 = vld [vmem:[%s8714_s1 + $0x2c0] sm:$0xf]  ;;  %v5779_v35 = vld [vmem:[%s8714_s1 + $0x2cc] sm:$0xf0] }
 0x159   : > { %v6985_v43 = vpack.c.bf16 %v4055_v33, %v4054_v22  ;;  %v5770_v22 = vld [vmem:[%s8714_s1 + $0x28c] sm:$0xf]  ;;  %v4929_v33 = vld [vmem:[%s8714_s1 + $0x298] sm:$0xf0] }
 0x15a   : > { %v3437_v44 = vpop.f32.mrf.mxu2  ;;  %v2781_v47 = vpop.f32.mrf.mxu0 }
 0x15b   : > { %v3438_v45 = vadd.f32 %v3437_v44, %v3109_v31  ;;  %v3766_v46 = vpop.f32.mrf.mxu3  ;;  %v2782_v49 = vadd.f32 %v2781_v47, %v908_v41  ;;  %v3110_v52 = vpop.f32.mrf.mxu1  ;;  %1392 = vperm.xlu0 %5986, %v790_v48   ;;  %v4928_v47 = vor.u32 %v5772_v53, %v4927_v1  ;;  %v787_v48 = vld [vmem:[%s8715_s2 + $0x398] sm:$0xff]  ;;  %v4959_v1 = vld [vmem:[%s8714_s1 + $0x2c8] sm:$0xf] }
 0x15c   : > { %1402 = vperm.xlu2 %5988, %v792_v61   ;;  %1412 = vperm.xlu1 %5987, %v794_v62   ;;  %v923_v31 = vpop.permute.xlu0 %922  ;;  %v789_v61 = vld [vmem:[%s8715_s2 + $0x3a8] sm:$0xff]  ;;  %v791_v62 = vld [vmem:[%s8715_s2 + $0x3b8] sm:$0xff] }
 0x15d   : > { %v3767_v42 = vadd.f32 %v3766_v46, %v3438_v45  ;;  %v3111_v56 = vadd.f32 %v3110_v52, %v2782_v49  ;;  %v4924_v46 = vor.u32 %v5769_v51, %v4921_v54  ;;  %v5777_v51 = vld [vmem:[%s8714_s1 + $0x2c4] sm:$0xf]  ;;  %v4953_v54 = vld [vmem:[%s8714_s1 + $0x2d0] sm:$0xf0]  ;;  %v5780_v53 = vld [vmem:[%s8714_s1 + $0x2d4] sm:$0xf0] }
 0x15f   : > { %v4056_v13 = vmax.f32 %v3767_v42, 0.0  ;;  %v4932_v42 = vor.u32 %v5770_v22, %v4929_v33  ;;  %v4961_v22 = vld [vmem:[%s8714_s1 + $0x2d8] sm:$0xf0] }
 0x162   : > { %v3439_v7 = vpop.f32.mrf.mxu2  ;;  %v2784_v10 = vpop.f32.mrf.mxu0 }
 0x163   : > { %v3440_v39 = vadd.f32 %v3439_v7, %v3111_v56  ;;  %v3768_v8 = vpop.f32.mrf.mxu3  ;;  %v2785_v14 = vadd.f32 %v2784_v10, %v913_v5  ;;  %v3113_v26 = vpop.f32.mrf.mxu1  ;;  %1307 = vperm.xlu0 %5986, %v773_v36   ;;  %v5773_v10 = vld [vmem:[%s8714_s1 + $0x2a4] sm:$0xf]  ;;  %v4937_v36 = vld [vmem:[%s8714_s1 + $0x2b0] sm:$0xf0] }
 0x164   : > { %1317 = vperm.xlu2 %5988, %v775_v19   ;;  %1327 = vperm.xlu1 %5987, %v777_v32   ;;  %v4940_v32 = vor.u32 %v5773_v10, %v4937_v36  ;;  %v5782_v10 = vld [vmem:[%s8714_s1 + $0x2ec] sm:$0xf] }
 0x165   : > { %v3769_v63 = vadd.f32 %v3768_v8, %v3440_v39  ;;  %v3114_v28 = vadd.f32 %v3113_v26, %v2785_v14  ;;  %2823 = vmatmul.bf16.gmra.mxu0 %v4904_v27  ;;  %v4935_v39 = vld [vmem:[%s8714_s1 + $0x2a0] sm:$0xf]  ;;  %v5775_v8 = vld [vmem:[%s8714_s1 + $0x2ac] sm:$0xf0]  ;;  %v4943_v14 = vld [vmem:[%s8714_s1 + $0x2a8] sm:$0xf] }
 0x166   : > { %3152 = vmatmul.bf16.gmra.mxu1 %v4908_v11  ;;  %v786_v11 = vld [vmem:[%s8715_s2 + $0x390] sm:$0xff]  ;;  %v5776_v26 = vld [vmem:[%s8714_s1 + $0x2b4] sm:$0xf0] }
 0x167   : > { %v4057_v15 = vmax.f32 %v3769_v63, 0.0  ;;  %3481 = vmatmul.bf16.gmra.mxu2 %v4912_v12  ;;  %v788_v12 = vld [vmem:[%s8715_s2 + $0x3a0] sm:$0xff]  ;;  %v4945_v63 = vld [vmem:[%s8714_s1 + $0x2b8] sm:$0xf0] }
 0x168   : > { %3810 = vmatmul.bf16.gmra.mxu3 %v4916_v55  ;;  %v5774_v55 = vld [vmem:[%s8714_s1 + $0x2ac] sm:$0xf] }
 0x169   : > { %v7029_v21 = vpack.c.bf16 %v4057_v15, %v4056_v13  ;;  %v4936_v13 = vor.u32 %v5775_v8, %v4935_v39  ;;  %v4975_v39 = vld [vmem:[%s8714_s1 + $0x2e8] sm:$0xf]  ;;  %v5784_v8 = vld [vmem:[%s8714_s1 + $0x2f4] sm:$0xf0] }
 0x16a   : > { %v3442_v23 = vpop.f32.mrf.mxu2  ;;  %v2786_v25 = vpop.f32.mrf.mxu0 }
 0x16b   : > { %v3443_v38 = vadd.f32 %v3442_v23, %v3114_v28  ;;  %v3771_v24 = vpop.f32.mrf.mxu3  ;;  %v2787_v30 = vadd.f32 %v2786_v25, %v918_v20  ;;  %v3115_v18 = vpop.f32.mrf.mxu1  ;;  %1292 = vperm.xlu0 %5986, %v770_v57   ;;  %v4944_v20 = vor.u32 %v5776_v26, %v4943_v14  ;;  %v4245_v23 = vld [vmem:[%s8717_s4 + $0x8] sm:$0xff]  ;;  %v771_v57 = vld [vmem:[%s8715_s2 + $0x318] sm:$0xff] }
 0x16c   : > { %1302 = vperm.xlu2 %5988, %v772_v0   ;;  %1312 = vperm.xlu1 %5987, %v774_v37   ;;  %v769_v25 = vld [vmem:[%s8715_s2 + $0x308] sm:$0xff]  ;;  %v4244_v0 = vld [vmem:[%s8717_s4] sm:$0xff] }
 0x16d   : > { %v3772_v16 = vadd.f32 %v3771_v24, %v3443_v38  ;;  %v3116_v29 = vadd.f32 %v3115_v18, %v2787_v30  ;;  %v4948_v24 = vor.u32 %v5774_v55, %v4945_v63  ;;  %v768_v37 = vld [vmem:[%s8715_s2 + $0x300] sm:$0xff] }
 0x16f   : > { %v4058_v58 = vmax.f32 %v3772_v16, 0.0 }
 0x172   : > { %v3444_v40 = vpop.f32.mrf.mxu2  ;;  %v2789_v45 = vpop.f32.mrf.mxu0 }
 0x173   : > { %v3445_v41 = vadd.f32 %v3444_v40, %v3116_v29  ;;  %v3773_v44 = vpop.f32.mrf.mxu3  ;;  %v2790_v49 = vadd.f32 %v2789_v45, %v923_v31  ;;  %v3118_v52 = vpop.f32.mrf.mxu1  ;;  %1377 = vperm.xlu0 %5986, %v787_v48   ;;  %v5778_v31 = vld [vmem:[%s8714_s1 + $0x2cc] sm:$0xf]  ;;  %v4952_v40 = vor.u32 %v5779_v35, %v4951_v34  ;;  %v4960_v45 = vor.u32 %v5780_v53, %v4959_v1  ;;  %v4247_v48 = vld [vmem:[%s8717_s4 + $0x18] sm:$0xff] }
 0x174   : > { %1387 = vperm.xlu2 %5988, %v789_v61   ;;  %1397 = vperm.xlu1 %5987, %v791_v62   ;;  %v4967_v61 = vld [vmem:[%s8714_s1 + $0x2e0] sm:$0xf]  ;;  %v5783_v62 = vld [vmem:[%s8714_s1 + $0x2ec] sm:$0xf0] }
 0x175   : > { %v3774_v56 = vadd.f32 %v3773_v44, %v3445_v41  ;;  %v3119_v50 = vadd.f32 %v3118_v52, %v2790_v49  ;;  %2828 = vmatmul.bf16.gmra.mxu0 %v4920_v17  ;;  %v4956_v44 = vor.u32 %v5777_v51, %v4953_v54  ;;  %v785_v49 = vld [vmem:[%s8715_s2 + $0x388] sm:$0xff]  ;;  %v7179_v52 = vpop.permute.xlu1 %927  ;;  %v4968_v14 = vor.u32 %v5783_v62, %v4967_v61  ;;  %v4993_v61 = vld [vmem:[%s8714_s1 + $0x318] sm:$0xf0] }
 0x176   : > { %3157 = vmatmul.bf16.gmra.mxu1 %v4924_v46 }
 0x177   : > { %v4059_v60 = vmax.f32 %v3774_v56, 0.0  ;;  %3486 = vmatmul.bf16.gmra.mxu2 %v4928_v47  ;;  %v4964_v47 = vor.u32 %v5778_v31, %v4961_v22 }
 0x178   : > { %3815 = vmatmul.bf16.gmra.mxu3 %v4932_v42 }
 0x179   : > { %v7073_v2 = vpack.c.bf16 %v4059_v60, %v4058_v58  ;;  %v938_v58 = vpop.permute.xlu0 %937 }
 0x17a   : > { %v3447_v4 = vpop.f32.mrf.mxu2  ;;  %v7075_v3 = vpop.f32.mrf.mxu0 }
 0x17b   : > { %v3448_v59 = vadd.f32 %v3447_v4, %v3119_v50  ;;  %v3776_v5 = vpop.f32.mrf.mxu3  ;;  %v7080_v7 = vpop.f32.mrf.mxu1  ;;  %1362 = vperm.xlu0 %5986, %v784_v6   ;;  %v5781_v4 = vld [vmem:[%s8714_s1 + $0x2e4] sm:$0xf]  ;;  %v4969_v6 = vld [vmem:[%s8714_s1 + $0x2f0] sm:$0xf0] }
 0x17c   : > { %1372 = vperm.xlu2 %5988, %v786_v11   ;;  %1382 = vperm.xlu1 %5987, %v788_v12   ;;  %v4977_v11 = vld [vmem:[%s8714_s1 + $0x2f8] sm:$0xf0]  ;;  %v4972_v63 = vor.u32 %v5781_v4, %v4969_v6 }
 0x17d   : > { %v7082_v27 = vadd.f32 %v3776_v5, %v3448_v59  ;;  %v4246_v59 = vld [vmem:[%s8717_s4 + $0x10] sm:$0xff]  ;;  %v933_v5 = vpop.permute.xlu2 %932  ;;  %v943_v12 = vpop.permute.xlu1 %942 }
 0x182   : > { %v7114_v28 = vpop.f32.mrf.mxu2  ;;  %v7118_v19 = vpop.f32.mrf.mxu0 }
 0x183   : > { %v7116_v15 = vpop.f32.mrf.mxu3  ;;  %v7123_v38 = vpop.f32.mrf.mxu1  ;;  %4255 = vperm.xlu0 %5986, %v4245_v23   ;;  %v4980_v23 = vor.u32 %v5782_v10, %v4977_v11  ;;  %v2795_v31 = vadd.f32 %v7118_v19, %v933_v5  ;;  %v4985_v19 = vld [vmem:[%s8714_s1 + $0x310] sm:$0xf0] }
 0x184   : > { %1287 = vperm.xlu2 %5988, %v769_v25   ;;  %1297 = vperm.xlu1 %5987, %v771_v57  }
 0x185   : > { %2833 = vmatmul.bf16.gmra.mxu0 %v4936_v13  ;;  %v4976_v13 = vor.u32 %v5784_v8, %v4975_v39  ;;  %v948_v25 = vpop.permute.xlu2 %947  ;;  %v958_v57 = vpop.permute.xlu1 %957  ;;  %v3124_v62 = vadd.f32 %v7123_v38, %v2795_v31 }
 0x186   : > { %3162 = vmatmul.bf16.gmra.mxu1 %v4940_v32  ;;  %v953_v32 = vpop.permute.xlu0 %952 }
 0x187   : > { %3491 = vmatmul.bf16.gmra.mxu2 %v4944_v20 }
 0x188   : > { %3820 = vmatmul.bf16.gmra.mxu3 %v4948_v24 }
 0x18a   : > { %v7131_v30 = vpop.f32.mrf.mxu2  ;;  %v7135_v16 = vpop.f32.mrf.mxu0 }
 0x18b   : > { %v7133_v18 = vpop.f32.mrf.mxu3  ;;  %v7137_v29 = vpop.f32.mrf.mxu1  ;;  %v2797_v22 = vadd.f32 %v7135_v16, %v938_v58  ;;  %v4991_v16 = vld [vmem:[%s8714_s1 + $0x308] sm:$0xf] }
 0x18c   : > { %4250 = vperm.xlu2 %5988, %v4244_v0   ;;  %1282 = vperm.xlu1 %5987, %v768_v37  }
 0x18d   : > { %v3126_v4 = vadd.f32 %v7137_v29, %v2797_v22  ;;  %v3453_v29 = vadd.f32 %v7131_v30, %v3124_v62 }
 0x18f   : > { %v3782_v30 = vadd.f32 %v7133_v18, %v3453_v29  ;;  %v5791_v18 = vld [vmem:[%s8714_s1 + $0x32c] sm:$0xf0] }
 0x192   : > { %v7169_v33 = vpop.f32.mrf.mxu2  ;;  %v2799_v41 = vpop.f32.mrf.mxu0 }
 0x193   : > { %v7171_v17 = vpop.f32.mrf.mxu3  ;;  %v3128_v46 = vpop.f32.mrf.mxu1  ;;  %v2800_v35 = vadd.f32 %v2799_v41, %v943_v12  ;;  %v5787_v41 = vld [vmem:[%s8714_s1 + $0x30c] sm:$0xf0] }
 0x194   : > { %4265 = vperm.xlu2 %5988, %v4247_v48   ;;  %1367 = vperm.xlu1 %5987, %v785_v49   ;;  %v5785_v48 = vld [vmem:[%s8714_s1 + $0x304] sm:$0xf]  ;;  %v963_v49 = vpop.permute.xlu2 %962 }
 0x195   : > { %2838 = vmatmul.bf16.gmra.mxu0 %v4952_v40  ;;  %v4983_v40 = vld [vmem:[%s8714_s1 + $0x300] sm:$0xf]  ;;  %v4988_v6 = vor.u32 %v5785_v48, %v4985_v19  ;;  %v5790_v19 = vld [vmem:[%s8714_s1 + $0x32c] sm:$0xf] }
 0x196   : > { %3167 = vmatmul.bf16.gmra.mxu1 %v4956_v44  ;;  %v3129_v44 = vadd.f32 %v3128_v46, %v2800_v35  ;;  %v5788_v46 = vld [vmem:[%s8714_s1 + $0x314] sm:$0xf0]  ;;  %v4984_v5 = vor.u32 %v5787_v41, %v4983_v40  ;;  %v973_v41 = vpop.permute.xlu1 %972 }
 0x197   : > { %3496 = vmatmul.bf16.gmra.mxu2 %v4960_v45 }
 0x198   : > { %3825 = vmatmul.bf16.gmra.mxu3 %v4964_v47 }
 0x19a   : > { %v3457_v42 = vpop.f32.mrf.mxu2  ;;  %v2801_v50 = vpop.f32.mrf.mxu0 }
 0x19b   : > { %v7181_v56 = vpop.f32.mrf.mxu3  ;;  %v3130_v60 = vpop.f32.mrf.mxu1  ;;  %v2802_v51 = vadd.f32 %v2801_v50, %v948_v25  ;;  %v3458_v39 = vadd.f32 %v3457_v42, %v3129_v44  ;;  %v5789_v44 = vld [vmem:[%s8714_s1 + $0x324] sm:$0xf] }
 0x19c   : > { %4260 = vperm.xlu1 %5987, %v4246_v59  }
 0x19d   : > { %v3131_v45 = vadd.f32 %v3130_v60, %v2802_v51  ;;  %v5786_v60 = vld [vmem:[%s8714_s1 + $0x30c] sm:$0xf]  ;;  %v3787_v42 = vadd.f32 %v7181_v56, %v3458_v39 }
 0x19f   : > { %v4064_v51 = vmax.f32 %v3787_v42, 0.0  ;;  %v5015_v42 = vld [vmem:[%s8714_s1 + $0x340] sm:$0xf] }
 0x1a2   : > { %v3459_v36 = vpop.f32.mrf.mxu2  ;;  %v2804_v55 = vpop.f32.mrf.mxu0 }
 0x1a3   : > { %v3788_v26 = vpop.f32.mrf.mxu3  ;;  %v3133_v20 = vpop.f32.mrf.mxu1  ;;  %v2805_v24 = vadd.f32 %v2804_v55, %v953_v32  ;;  %v3460_v50 = vadd.f32 %v3459_v36, %v3131_v45  ;;  %v4992_v36 = vor.u32 %v5788_v46, %v4991_v16  ;;  %v3455_v32 = vadd.f32 %v7169_v33, %v3126_v4  ;;  %v5001_v45 = vld [vmem:[%s8714_s1 + $0x330] sm:$0xf0]  ;;  %v5009_v16 = vld [vmem:[%s8714_s1 + $0x338] sm:$0xf0] }
 0x1a4   : > { %v5004_v62 = vor.u32 %v5789_v44, %v5001_v45  ;;  %v5012_v39 = vor.u32 %v5790_v19, %v5009_v16  ;;  %v5799_v19 = vld [vmem:[%s8714_s1 + $0x36c] sm:$0xf0]  ;;  %v5033_v16 = vld [vmem:[%s8714_s1 + $0x370] sm:$0xf0] }
 0x1a5   : > { %2843 = vmatmul.bf16.gmra.mxu0 %v4968_v14  ;;  %v3134_v0 = vadd.f32 %v3133_v20, %v2805_v24  ;;  %v2792_v14 = vadd.f32 %v7075_v3, %v7179_v52  ;;  %v3789_v38 = vadd.f32 %v3788_v26, %v3460_v50  ;;  %v968_v3 = vpop.permute.xlu0 %967  ;;  %v3784_v52 = vadd.f32 %v7171_v17, %v3455_v32 }
 0x1a6   : > { %3172 = vmatmul.bf16.gmra.mxu1 %v4972_v63  ;;  %v4062_v17 = vmax.f32 %v3782_v30, 0.0 }
 0x1a7   : > { %3501 = vmatmul.bf16.gmra.mxu2 %v4976_v13  ;;  %v4996_v13 = vor.u32 %v5786_v60, %v4993_v61 }
 0x1a8   : > { %3830 = vmatmul.bf16.gmra.mxu3 %v4980_v23 }
 0x1aa   : > { %v3462_v34 = vpop.f32.mrf.mxu2  ;;  %v2806_v54 = vpop.f32.mrf.mxu0 }
 0x1ab   : > { %v3791_v37 = vpop.f32.mrf.mxu3  ;;  %v3135_v1 = vpop.f32.mrf.mxu1  ;;  %v2807_v53 = vadd.f32 %v2806_v54, %v958_v57  ;;  %v3463_v47 = vadd.f32 %v3462_v34, %v3134_v0  ;;  %v3121_v57 = vadd.f32 %v7080_v7, %v2792_v14  ;;  %v4065_v34 = vmax.f32 %v3789_v38, 0.0 }
 0x1ac   : > { %v978_v14 = vpop.permute.xlu2 %977 }
 0x1ad   : > { %v3136_v58 = vadd.f32 %v3135_v1, %v2807_v53  ;;  %v3792_v8 = vadd.f32 %v3791_v37, %v3463_v47  ;;  %v3450_v26 = vadd.f32 %v7114_v28, %v3121_v57  ;;  %v4063_v53 = vmax.f32 %v3784_v52, 0.0  ;;  %v4999_v28 = vld [vmem:[%s8714_s1 + $0x320] sm:$0xf]  ;;  %v5792_v47 = vld [vmem:[%s8714_s1 + $0x334] sm:$0xf0]  ;;  %v983_v52 = vpop.permute.xlu0 %982 }
 0x1ae   : > { %v4194_v31 = vpack.c.bf16 %v4065_v34, %v4064_v51  ;;  %v5000_v50 = vor.u32 %v5791_v18, %v4999_v28  ;;  %v5023_v57 = vld [vmem:[%s8714_s1 + $0x348] sm:$0xf]  ;;  %v5794_v34 = vld [vmem:[%s8714_s1 + $0x34c] sm:$0xf] }
 0x1af   : > { %v4066_v24 = vmax.f32 %v3792_v8, 0.0  ;;  %v3779_v22 = vadd.f32 %v7116_v15, %v3450_v26  ;;  %v5007_v15 = vld [vmem:[%s8714_s1 + $0x328] sm:$0xf]  ;;  %v4193_v48 = vpack.c.bf16 %v4063_v53, %v4062_v17  ;;  %v988_v17 = vpop.permute.xlu1 %987 }
 0x1b0   : > { %v5008_v4 = vor.u32 %v5792_v47, %v5007_v15 }
 0x1b1   : > { %v4061_v46 = vmax.f32 %v3779_v22, 0.0 }
 0x1b2   : > { %v3464_v59 = vpop.f32.mrf.mxu2  ;;  %v2809_v12 = vpop.f32.mrf.mxu0 }
 0x1b3   : > { %v3465_v10 = vadd.f32 %v3464_v59, %v3136_v58  ;;  %v3793_v11 = vpop.f32.mrf.mxu3  ;;  %v2810_v55 = vadd.f32 %v2809_v12, %v963_v49  ;;  %v3138_v63 = vpop.f32.mrf.mxu1  ;;  %v4060_v59 = vmax.f32 %v7082_v27, 0.0 }
 0x1b5   : > { %v3794_v20 = vadd.f32 %v3793_v11, %v3465_v10  ;;  %v3139_v23 = vadd.f32 %v3138_v63, %v2810_v55  ;;  %2848 = vmatmul.bf16.gmra.mxu0 %v4984_v5  ;;  %v4192_v11 = vpack.c.bf16 %v4061_v46, %v4060_v59  ;;  %v5039_v46 = vld [vmem:[%s8714_s1 + $0x368] sm:$0xf] }
 0x1b6   : > { %3177 = vmatmul.bf16.gmra.mxu1 %v4988_v6 }
 0x1b7   : > { %v4067_v25 = vmax.f32 %v3794_v20, 0.0  ;;  %3506 = vmatmul.bf16.gmra.mxu2 %v4992_v36 }
 0x1b8   : > { %3835 = vmatmul.bf16.gmra.mxu3 %v4996_v13 }
 0x1b9   : > { %v4195_v33 = vpack.c.bf16 %v4067_v25, %v4066_v24  ;;  %v5795_v24 = vld [vmem:[%s8714_s1 + $0x34c] sm:$0xf0]  ;;  %v5793_v25 = vld [vmem:[%s8714_s1 + $0x344] sm:$0xf] }
 0x1ba   : > { %v3467_v35 = vpop.f32.mrf.mxu2  ;;  %v2811_v37 = vpop.f32.mrf.mxu0  ;;  %v5016_v26 = vor.u32 %v5795_v24, %v5015_v42 }
 0x1bb   : > { %v3468_v0 = vadd.f32 %v3467_v35, %v3139_v23  ;;  %v3796_v56 = vpop.f32.mrf.mxu3  ;;  %4367 = vmatpush.bf16.msrb.mxu1 %v4195_v33  ;;  %v2812_v54 = vadd.f32 %v2811_v37, %v968_v3  ;;  %v3140_v1 = vpop.f32.mrf.mxu1  ;;  %v5796_v3 = vld [vmem:[%s8714_s1 + $0x354] sm:$0xf0] }
 0x1bd   : > { %v3797_v7 = vadd.f32 %v3796_v56, %v3468_v0  ;;  %v3141_v40 = vadd.f32 %v3140_v1, %v2812_v54  ;;  %v5024_v56 = vor.u32 %v5796_v3, %v5023_v57  ;;  %v5803_v57 = vld [vmem:[%s8714_s1 + $0x38c] sm:$0xf0]  ;;  %v5801_v3 = vld [vmem:[%s8714_s1 + $0x384] sm:$0xf] }
 0x1bf   : > { %4368 = vmatpush.bf16.msrb.mxu1 %v4194_v31  ;;  %v4068_v12 = vmax.f32 %v3797_v7, 0.0 }
 0x1c2   : > { %v3469_v49 = vpop.f32.mrf.mxu2  ;;  %v2814_v61 = vpop.f32.mrf.mxu0 }
 0x1c3   : > { %v3470_v58 = vadd.f32 %v3469_v49, %v3141_v40  ;;  %v3798_v60 = vpop.f32.mrf.mxu3  ;;  %4369 = vmatpush.bf16.msrb.mxu1 %v4193_v48  ;;  %v2815_v5 = vadd.f32 %v2814_v61, %v973_v41  ;;  %v3143_v6 = vpop.f32.mrf.mxu1  ;;  %v5031_v48 = vld [vmem:[%s8714_s1 + $0x360] sm:$0xf]  ;;  %v5800_v49 = vld [vmem:[%s8714_s1 + $0x374] sm:$0xf0] }
 0x1c5   : > { %v3799_v8 = vadd.f32 %v3798_v60, %v3470_v58  ;;  %v3144_v10 = vadd.f32 %v3143_v6, %v2815_v5  ;;  %2853 = vmatmul.bf16.gmra.mxu0 %v5000_v50  ;;  %v993_v50 = vpop.permute.xlu2 %992  ;;  %v5798_v58 = vld [vmem:[%s8714_s1 + $0x36c] sm:$0xf]  ;;  %v5041_v60 = vld [vmem:[%s8714_s1 + $0x378] sm:$0xf0] }
 0x1c6   : > { %3182 = vmatmul.bf16.gmra.mxu1 %v5004_v62  ;;  %v5032_v62 = vor.u32 %v5799_v19, %v5031_v48  ;;  %v5063_v19 = vld [vmem:[%s8714_s1 + $0x3a0] sm:$0xf] }
 0x1c7   : > { %v4069_v36 = vmax.f32 %v3799_v8, 0.0  ;;  %3511 = vmatmul.bf16.gmra.mxu2 %v5008_v4  ;;  %4370 = vmatpush.bf16.msrb.mxu1 %v4192_v11  ;;  %v5044_v11 = vor.u32 %v5798_v58, %v5041_v60  ;;  %v5806_v58 = vld [vmem:[%s8714_s1 + $0x3ac] sm:$0xf]  ;;  %v5073_v60 = vld [vmem:[%s8714_s1 + $0x3b8] sm:$0xf0] }
 0x1c8   : > { %3840 = vmatmul.bf16.gmra.mxu3 %v5012_v39  ;;  %v5040_v39 = vor.u32 %v5800_v49, %v5039_v46  ;;  %v5065_v46 = vld [vmem:[%s8714_s1 + $0x3b0] sm:$0xf0]  ;;  %v5071_v49 = vld [vmem:[%s8714_s1 + $0x3a8] sm:$0xf] }
 0x1c9   : > { %v7273_v55 = vpack.c.bf16 %v4069_v36, %v4068_v12 }
 0x1ca   : > { %v3472_v63 = vpop.f32.mrf.mxu2  ;;  %v2816_v27 = vpop.f32.mrf.mxu0 }
 0x1cb   : > { %v3473_v13 = vadd.f32 %v3472_v63, %v3144_v10  ;;  %v3801_v32 = vpop.f32.mrf.mxu3  ;;  %4371 = vmatpush.bf16.msrb.mxu1 %v7073_v2  ;;  %v2817_v38 = vadd.f32 %v2816_v27, %v978_v14  ;;  %v3145_v20 = vpop.f32.mrf.mxu1  ;;  %v5017_v2 = vld [vmem:[%s8714_s1 + $0x350] sm:$0xf0] }
 0x1cc   : > { %v5020_v0 = vor.u32 %v5793_v25, %v5017_v2  ;;  %v5047_v2 = vld [vmem:[%s8714_s1 + $0x380] sm:$0xf] }
 0x1cd   : > { %v3802_v29 = vadd.f32 %v3801_v32, %v3473_v13  ;;  %v3146_v23 = vadd.f32 %v3145_v20, %v2817_v38  ;;  %v998_v13 = vpop.permute.xlu0 %997 }
 0x1cf   : > { %4372 = vmatpush.bf16.msrb.mxu1 %v7029_v21  ;;  %v5025_v21 = vld [vmem:[%s8714_s1 + $0x358] sm:$0xf0]  ;;  %v4070_v31 = vmax.f32 %v3802_v29, 0.0 }
 0x1d0   : > { %v5028_v1 = vor.u32 %v5794_v34, %v5025_v21  ;;  %v5055_v34 = vld [vmem:[%s8714_s1 + $0x388] sm:$0xf]  ;;  %v5804_v21 = vld [vmem:[%s8714_s1 + $0x394] sm:$0xf0] }
 0x1d2   : > { %v3474_v33 = vpop.f32.mrf.mxu2  ;;  %v2819_v51 = vpop.f32.mrf.mxu0 }
 0x1d3   : > { %v3475_v30 = vadd.f32 %v3474_v33, %v3146_v23  ;;  %v3803_v35 = vpop.f32.mrf.mxu3  ;;  %4373 = vmatpush.bf16.msrb.mxu1 %v6985_v43  ;;  %v2820_v37 = vadd.f32 %v2819_v51, %v983_v52  ;;  %v3148_v54 = vpop.f32.mrf.mxu1  ;;  %v5049_v52 = vld [vmem:[%s8714_s1 + $0x390] sm:$0xf0]  ;;  %v5048_v51 = vor.u32 %v5803_v57, %v5047_v2 }
 0x1d4   : > { %v1003_v33 = vpop.permute.xlu1 %1002 }
 0x1d5   : > { %v3804_v53 = vadd.f32 %v3803_v35, %v3475_v30  ;;  %v3149_v7 = vadd.f32 %v3148_v54, %v2820_v37  ;;  %2858 = vmatmul.bf16.gmra.mxu0 %v5016_v26  ;;  %v5802_v26 = vld [vmem:[%s8714_s1 + $0x38c] sm:$0xf]  ;;  %v5057_v30 = vld [vmem:[%s8714_s1 + $0x398] sm:$0xf0]  ;;  %v5052_v54 = vor.u32 %v5801_v3, %v5049_v52 }
 0x1d6   : > { %3187 = vmatmul.bf16.gmra.mxu1 %v5020_v0 }
 0x1d7   : > { %v4071_v22 = vmax.f32 %v3804_v53, 0.0  ;;  %3516 = vmatmul.bf16.gmra.mxu2 %v5024_v56  ;;  %4374 = vmatpush.bf16.msrb.mxu1 %v6937_v9  ;;  %v5797_v9 = vld [vmem:[%s8714_s1 + $0x364] sm:$0xf] }
 0x1d8   : > { %3845 = vmatmul.bf16.gmra.mxu3 %v5028_v1  ;;  %v5036_v6 = vor.u32 %v5797_v9, %v5033_v16  ;;  %v5056_v1 = vor.u32 %v5804_v21, %v5055_v34  ;;  %v5807_v9 = vld [vmem:[%s8714_s1 + $0x3ac] sm:$0xf0]  ;;  %v5805_v16 = vld [vmem:[%s8714_s1 + $0x3a4] sm:$0xf]  ;;  %v7431_v21 = vpop.permute.xlu2 %1007 }
 0x1d9   : > { %v7303_v40 = vpack.c.bf16 %v4071_v22, %v4070_v31  ;;  %v5060_v31 = vor.u32 %v5802_v26, %v5057_v30 }
 0x1da   : > { %v3477_v28 = vpop.f32.mrf.mxu2  ;;  %v2821_v43 = vpop.f32.mrf.mxu0 }
 0x1db   : > { %v3478_v18 = vadd.f32 %v3477_v28, %v3149_v7  ;;  %v3806_v44 = vpop.f32.mrf.mxu3  ;;  %v2822_v45 = vadd.f32 %v2821_v43, %v988_v17  ;;  %v3150_v15 = vpop.f32.mrf.mxu1 }
 0x1dd   : > { %v3807_v47 = vadd.f32 %v3806_v44, %v3478_v18  ;;  %v3151_v41 = vadd.f32 %v3150_v15, %v2822_v45 }
 0x1df   : > { %v4072_v14 = vmax.f32 %v3807_v47, 0.0 }
 0x1e2   : > { %v3479_v61 = vpop.f32.mrf.mxu2  ;;  %v2824_v5 = vpop.f32.mrf.mxu0 }
 0x1e3   : > { %v3480_v4 = vadd.f32 %v3479_v61, %v3151_v41  ;;  %v3808_v59 = vpop.f32.mrf.mxu3  ;;  %v2825_v8 = vadd.f32 %v2824_v5, %v993_v50  ;;  %v3153_v10 = vpop.f32.mrf.mxu1  ;;  %v5808_v50 = vld [vmem:[%s8714_s1 + $0x3b4] sm:$0xf0]  ;;  %v5068_v5 = vor.u32 %v5805_v16, %v5065_v46 }
 0x1e5   : > { %v3809_v12 = vadd.f32 %v3808_v59, %v3480_v4  ;;  %v3154_v36 = vadd.f32 %v3153_v10, %v2825_v8  ;;  %2863 = vmatmul.bf16.gmra.mxu0 %v5032_v62  ;;  %v5064_v62 = vor.u32 %v5807_v9, %v5063_v19  ;;  %v5076_v8 = vor.u32 %v5806_v58, %v5073_v60 }
 0x1e6   : > { %3192 = vmatmul.bf16.gmra.mxu1 %v5036_v6  ;;  %v5072_v6 = vor.u32 %v5808_v50, %v5071_v49 }
 0x1e7   : > { %v4073_v63 = vmax.f32 %v3809_v12, 0.0  ;;  %3521 = vmatmul.bf16.gmra.mxu2 %v5040_v39 }
 0x1e8   : > { %3850 = vmatmul.bf16.gmra.mxu3 %v5044_v11 }
 0x1e9   : > { %v7329_v32 = vpack.c.bf16 %v4073_v63, %v4072_v14  ;;  %v5079_v14 = vld [vmem:[%s8714_s1 + $0x3c0] sm:$0xf]  ;;  %v5811_v63 = vld [vmem:[%s8714_s1 + $0x3cc] sm:$0xf0] }
 0x1ea   : > { %v3482_v27 = vpop.f32.mrf.mxu2  ;;  %v2826_v29 = vpop.f32.mrf.mxu0 }
 0x1eb   : > { %v3483_v38 = vadd.f32 %v3482_v27, %v3154_v36  ;;  %v3811_v20 = vpop.f32.mrf.mxu3  ;;  %v2827_v23 = vadd.f32 %v2826_v29, %v998_v13  ;;  %v3155_v42 = vpop.f32.mrf.mxu1  ;;  %v5809_v13 = vld [vmem:[%s8714_s1 + $0x3c4] sm:$0xf]  ;;  %v5081_v27 = vld [vmem:[%s8714_s1 + $0x3d0] sm:$0xf0]  ;;  %v5810_v29 = vld [vmem:[%s8714_s1 + $0x3cc] sm:$0xf] }
 0x1ec   : > { %v5084_v57 = vor.u32 %v5809_v13, %v5081_v27 }
 0x1ed   : > { %v3812_v24 = vadd.f32 %v3811_v20, %v3483_v38  ;;  %v3156_v25 = vadd.f32 %v3155_v42, %v2827_v23  ;;  %v5087_v38 = vld [vmem:[%s8714_s1 + $0x3c8] sm:$0xf]  ;;  %v5812_v20 = vld [vmem:[%s8714_s1 + $0x3d4] sm:$0xf0]  ;;  %v5089_v23 = vld [vmem:[%s8714_s1 + $0x3d8] sm:$0xf0] }
 0x1ee   : > { %v5088_v3 = vor.u32 %v5812_v20, %v5087_v38  ;;  %v5092_v34 = vor.u32 %v5810_v29, %v5089_v23  ;;  %v5111_v20 = vld [vmem:[%s8714_s1 + $0x400] sm:$0xf] }
 0x1ef   : > { %v4074_v28 = vmax.f32 %v3812_v24, 0.0  ;;  %v5080_v24 = vor.u32 %v5811_v63, %v5079_v14 }
 0x1f2   : > { %v3484_v35 = vpop.f32.mrf.mxu2  ;;  %v2829_v37 = vpop.f32.mrf.mxu0 }
 0x1f3   : > { %v3485_v0 = vadd.f32 %v3484_v35, %v3156_v25  ;;  %v3813_v56 = vpop.f32.mrf.mxu3  ;;  %v2830_v53 = vadd.f32 %v2829_v37, %v1003_v33  ;;  %v3158_v7 = vpop.f32.mrf.mxu1  ;;  %v5813_v37 = vld [vmem:[%s8714_s1 + $0x3e4] sm:$0xf] }
 0x1f4   : > { %v1018_v35 = vpop.permute.xlu1 %1017 }
 0x1f5   : > { %v3814_v22 = vadd.f32 %v3813_v56, %v3485_v0  ;;  %v3159_v17 = vadd.f32 %v3158_v7, %v2830_v53  ;;  %2868 = vmatmul.bf16.gmra.mxu0 %v5048_v51  ;;  %v5095_v0 = vld [vmem:[%s8714_s1 + $0x3e0] sm:$0xf]  ;;  %v5815_v56 = vld [vmem:[%s8714_s1 + $0x3ec] sm:$0xf0]  ;;  %v5103_v53 = vld [vmem:[%s8714_s1 + $0x3e8] sm:$0xf] }
 0x1f6   : > { %3197 = vmatmul.bf16.gmra.mxu1 %v5052_v54  ;;  %v1013_v54 = vpop.permute.xlu0 %1012  ;;  %v5816_v7 = vld [vmem:[%s8714_s1 + $0x3f4] sm:$0xf0] }
 0x1f7   : > { %v4075_v18 = vmax.f32 %v3814_v22, 0.0  ;;  %3526 = vmatmul.bf16.gmra.mxu2 %v5056_v1  ;;  %v5097_v1 = vld [vmem:[%s8714_s1 + $0x3f0] sm:$0xf0]  ;;  %v5105_v22 = vld [vmem:[%s8714_s1 + $0x3f8] sm:$0xf0]  ;;  %v5104_v19 = vor.u32 %v5816_v7, %v5103_v53 }
 0x1f8   : > { %3855 = vmatmul.bf16.gmra.mxu3 %v5060_v31  ;;  %v5814_v31 = vld [vmem:[%s8714_s1 + $0x3ec] sm:$0xf] }
 0x1f9   : > { %v7355_v44 = vpack.c.bf16 %v4075_v18, %v4074_v28  ;;  %v5096_v18 = vor.u32 %v5815_v56, %v5095_v0  ;;  %v5108_v46 = vor.u32 %v5814_v31, %v5105_v22 }
 0x1fa   : > { %v3487_v43 = vpop.f32.mrf.mxu2  ;;  %v7357_v47 = vpop.f32.mrf.mxu0 }
 0x1fb   : > { %v3488_v45 = vadd.f32 %v3487_v43, %v3159_v17  ;;  %v3816_v15 = vpop.f32.mrf.mxu3  ;;  %v7359_v41 = vpop.f32.mrf.mxu1 }
 0x1fc   : > { %v1023_v17 = vpop.permute.xlu2 %1022  ;;  %v1033_v9 = vpop.permute.xlu1 %1032 }
 0x1fd   : > { %v7361_v48 = vadd.f32 %v3816_v15, %v3488_v45  ;;  %v5100_v15 = vor.u32 %v5813_v37, %v5097_v1 }
 0x1fe   : > { %v1028_v50 = vpop.permute.xlu0 %1027 }
 0x202   : > { %v7387_v61 = vpop.f32.mrf.mxu2  ;;  %v7391_v59 = vpop.f32.mrf.mxu0 }
 0x203   : > { %v7389_v4 = vpop.f32.mrf.mxu3  ;;  %v7393_v39 = vpop.f32.mrf.mxu1  ;;  %v2835_v27 = vadd.f32 %v7391_v59, %v1013_v54  ;;  %v5820_v59 = vld [vmem:[%s8714_s1 + $0x414] sm:$0xf0] }
 0x204   : > { %v1038_v58 = vpop.permute.xlu2 %1037 }
 0x205   : > { %2873 = vmatmul.bf16.gmra.mxu0 %v5064_v62  ;;  %v3164_v0 = vadd.f32 %v7393_v39, %v2835_v27 }
 0x206   : > { %3202 = vmatmul.bf16.gmra.mxu1 %v5068_v5 }
 0x207   : > { %3531 = vmatmul.bf16.gmra.mxu2 %v5072_v6 }
 0x208   : > { %3860 = vmatmul.bf16.gmra.mxu3 %v5076_v8 }
 0x20a   : > { %v7395_v10 = vpop.f32.mrf.mxu2  ;;  %v7399_v12 = vpop.f32.mrf.mxu0 }
 0x20b   : > { %v7397_v11 = vpop.f32.mrf.mxu3  ;;  %v7401_v36 = vpop.f32.mrf.mxu1  ;;  %v2837_v38 = vadd.f32 %v7399_v12, %v1018_v35  ;;  %v5817_v12 = vld [vmem:[%s8714_s1 + $0x404] sm:$0xf]  ;;  %v5818_v35 = vld [vmem:[%s8714_s1 + $0x40c] sm:$0xf] }
 0x20d   : > { %v3166_v56 = vadd.f32 %v7401_v36, %v2837_v38  ;;  %v3493_v36 = vadd.f32 %v7395_v10, %v3164_v0 }
 0x20f   : > { %v3822_v10 = vadd.f32 %v7397_v11, %v3493_v36  ;;  %v5823_v11 = vld [vmem:[%s8714_s1 + $0x42c] sm:$0xf0] }
 0x212   : > { %v7427_v42 = vpop.f32.mrf.mxu2  ;;  %v2839_v2 = vpop.f32.mrf.mxu0 }
 0x213   : > { %v7429_v25 = vpop.f32.mrf.mxu3  ;;  %v3168_v52 = vpop.f32.mrf.mxu1  ;;  %v2840_v62 = vadd.f32 %v2839_v2, %v1023_v17  ;;  %v5819_v2 = vld [vmem:[%s8714_s1 + $0x40c] sm:$0xf0] }
 0x214   : > { %v5112_v54 = vor.u32 %v5819_v2, %v5111_v20  ;;  %v1053_v2 = vpop.permute.xlu2 %1052 }
 0x215   : > { %2878 = vmatmul.bf16.gmra.mxu0 %v5080_v24  ;;  %v3169_v29 = vadd.f32 %v3168_v52, %v2840_v62  ;;  %v1043_v52 = vpop.permute.xlu0 %1042 }
 0x216   : > { %3207 = vmatmul.bf16.gmra.mxu1 %v5084_v57  ;;  %v5119_v57 = vld [vmem:[%s8714_s1 + $0x408] sm:$0xf] }
 0x217   : > { %3536 = vmatmul.bf16.gmra.mxu2 %v5088_v3  ;;  %v5113_v3 = vld [vmem:[%s8714_s1 + $0x410] sm:$0xf0]  ;;  %v5120_v1 = vor.u32 %v5820_v59, %v5119_v57  ;;  %v5822_v59 = vld [vmem:[%s8714_s1 + $0x42c] sm:$0xf] }
 0x218   : > { %3865 = vmatmul.bf16.gmra.mxu3 %v5092_v34 }
 0x21a   : > { %v3497_v33 = vpop.f32.mrf.mxu2  ;;  %v2841_v30 = vpop.f32.mrf.mxu0 }
 0x21b   : > { %v7433_v26 = vpop.f32.mrf.mxu3  ;;  %v3170_v51 = vpop.f32.mrf.mxu1  ;;  %v2842_v5 = vadd.f32 %v2841_v30, %v1028_v50  ;;  %v3498_v53 = vadd.f32 %v3497_v33, %v3169_v29  ;;  %v5135_v29 = vld [vmem:[%s8714_s1 + $0x428] sm:$0xf] }
 0x21d   : > { %v3171_v23 = vadd.f32 %v3170_v51, %v2842_v5  ;;  %v5121_v51 = vld [vmem:[%s8714_s1 + $0x418] sm:$0xf0]  ;;  %v3827_v33 = vadd.f32 %v7433_v26, %v3498_v53 }
 0x21f   : > { %v4080_v5 = vmax.f32 %v3827_v33, 0.0  ;;  %v5143_v33 = vld [vmem:[%s8714_s1 + $0x440] sm:$0xf] }
 0x222   : > { %v3499_v28 = vpop.f32.mrf.mxu2  ;;  %v2844_v45 = vpop.f32.mrf.mxu0 }
 0x223   : > { %v3828_v43 = vpop.f32.mrf.mxu3  ;;  %v3173_v16 = vpop.f32.mrf.mxu1  ;;  %v2845_v49 = vadd.f32 %v2844_v45, %v1033_v9  ;;  %v3500_v34 = vadd.f32 %v3499_v28, %v3171_v23  ;;  %v5116_v28 = vor.u32 %v5817_v12, %v5113_v3  ;;  %v3495_v9 = vadd.f32 %v7427_v42, %v3166_v56  ;;  %v5824_v23 = vld [vmem:[%s8714_s1 + $0x434] sm:$0xf0]  ;;  %v5137_v12 = vld [vmem:[%s8714_s1 + $0x438] sm:$0xf0] }
 0x224   : > { %v5136_v0 = vor.u32 %v5824_v23, %v5135_v29  ;;  %v5140_v53 = vor.u32 %v5822_v59, %v5137_v12  ;;  %v5167_v59 = vld [vmem:[%s8714_s1 + $0x468] sm:$0xf]  ;;  %v5832_v12 = vld [vmem:[%s8714_s1 + $0x474] sm:$0xf0] }
 0x225   : > { %2883 = vmatmul.bf16.gmra.mxu0 %v5096_v18  ;;  %v3174_v6 = vadd.f32 %v3173_v16, %v2845_v49  ;;  %v2832_v18 = vadd.f32 %v7357_v47, %v7431_v21  ;;  %v3829_v39 = vadd.f32 %v3828_v43, %v3500_v34  ;;  %v1048_v47 = vpop.permute.xlu1 %1047  ;;  %v3824_v21 = vadd.f32 %v7429_v25, %v3495_v9 }
 0x226   : > { %3212 = vmatmul.bf16.gmra.mxu1 %v5100_v15  ;;  %v4078_v25 = vmax.f32 %v3822_v10, 0.0 }
 0x227   : > { %3541 = vmatmul.bf16.gmra.mxu2 %v5104_v19  ;;  %v5124_v19 = vor.u32 %v5818_v35, %v5121_v51 }
 0x228   : > { %3870 = vmatmul.bf16.gmra.mxu3 %v5108_v46 }
 0x22a   : > { %v3502_v60 = vpop.f32.mrf.mxu2  ;;  %v2846_v14 = vpop.f32.mrf.mxu0 }
 0x22b   : > { %v3831_v8 = vpop.f32.mrf.mxu3  ;;  %v3175_v63 = vpop.f32.mrf.mxu1  ;;  %v2847_v13 = vadd.f32 %v2846_v14, %v1038_v58  ;;  %v3503_v24 = vadd.f32 %v3502_v60, %v3174_v6  ;;  %v3161_v58 = vadd.f32 %v7359_v41, %v2832_v18  ;;  %v4081_v60 = vmax.f32 %v3829_v39, 0.0 }
 0x22c   : > { %v1058_v18 = vpop.permute.xlu0 %1057 }
 0x22d   : > { %v3176_v30 = vadd.f32 %v3175_v63, %v2847_v13  ;;  %v3832_v7 = vadd.f32 %v3831_v8, %v3503_v24  ;;  %v3490_v43 = vadd.f32 %v7387_v61, %v3161_v58  ;;  %v4079_v13 = vmax.f32 %v3824_v21, 0.0  ;;  %v5127_v61 = vld [vmem:[%s8714_s1 + $0x420] sm:$0xf]  ;;  %v5129_v24 = vld [vmem:[%s8714_s1 + $0x430] sm:$0xf0]  ;;  %v1063_v21 = vpop.permute.xlu1 %1062 }
 0x22e   : > { %v4202_v27 = vpack.c.bf16 %v4081_v60, %v4080_v5  ;;  %v5128_v34 = vor.u32 %v5823_v11, %v5127_v61  ;;  %v5825_v58 = vld [vmem:[%s8714_s1 + $0x444] sm:$0xf]  ;;  %v5826_v60 = vld [vmem:[%s8714_s1 + $0x44c] sm:$0xf] }
 0x22f   : > { %v4082_v49 = vmax.f32 %v3832_v7, 0.0  ;;  %v3819_v38 = vadd.f32 %v7389_v4, %v3490_v43  ;;  %v5821_v4 = vld [vmem:[%s8714_s1 + $0x424] sm:$0xf]  ;;  %v4201_v57 = vpack.c.bf16 %v4079_v13, %v4078_v25  ;;  %v1068_v25 = vpop.permute.xlu2 %1067 }
 0x230   : > { %v5132_v56 = vor.u32 %v5821_v4, %v5129_v24 }
 0x231   : > { %v4077_v3 = vmax.f32 %v3819_v38, 0.0 }
 0x232   : > { %v3504_v37 = vpop.f32.mrf.mxu2  ;;  %v2849_v17 = vpop.f32.mrf.mxu0 }
 0x233   : > { %v3505_v31 = vadd.f32 %v3504_v37, %v3176_v30  ;;  %v3833_v22 = vpop.f32.mrf.mxu3  ;;  %v2850_v45 = vadd.f32 %v2849_v17, %v1043_v52  ;;  %v3178_v15 = vpop.f32.mrf.mxu1  ;;  %v4076_v37 = vmax.f32 %v7361_v48, 0.0 }
 0x235   : > { %v3834_v16 = vadd.f32 %v3833_v22, %v3505_v31  ;;  %v3179_v46 = vadd.f32 %v3178_v15, %v2850_v45  ;;  %2888 = vmatmul.bf16.gmra.mxu0 %v5112_v54  ;;  %v4200_v22 = vpack.c.bf16 %v4077_v3, %v4076_v37  ;;  %v5829_v3 = vld [vmem:[%s8714_s1 + $0x464] sm:$0xf] }
 0x236   : > { %3217 = vmatmul.bf16.gmra.mxu1 %v5116_v28 }
 0x237   : > { %v4083_v50 = vmax.f32 %v3834_v16, 0.0  ;;  %3546 = vmatmul.bf16.gmra.mxu2 %v5120_v1 }
 0x238   : > { %3875 = vmatmul.bf16.gmra.mxu3 %v5124_v19 }
 0x239   : > { %v4203_v42 = vpack.c.bf16 %v4083_v50, %v4082_v49  ;;  %v5827_v49 = vld [vmem:[%s8714_s1 + $0x44c] sm:$0xf0]  ;;  %v5151_v50 = vld [vmem:[%s8714_s1 + $0x448] sm:$0xf] }
 0x23a   : > { %v3507_v62 = vpop.f32.mrf.mxu2  ;;  %v2851_v8 = vpop.f32.mrf.mxu0  ;;  %v5144_v43 = vor.u32 %v5827_v49, %v5143_v33 }
 0x23b   : > { %v3508_v6 = vadd.f32 %v3507_v62, %v3179_v46  ;;  %v3836_v26 = vpop.f32.mrf.mxu3  ;;  %4386 = vmatpush.bf16.msrb.mxu2 %v4203_v42  ;;  %v2852_v14 = vadd.f32 %v2851_v8, %v1048_v47  ;;  %v3180_v63 = vpop.f32.mrf.mxu1  ;;  %v5145_v47 = vld [vmem:[%s8714_s1 + $0x450] sm:$0xf0] }
 0x23d   : > { %v3837_v41 = vadd.f32 %v3836_v26, %v3508_v6  ;;  %v3181_v20 = vadd.f32 %v3180_v63, %v2852_v14  ;;  %v5148_v26 = vor.u32 %v5825_v58, %v5145_v47  ;;  %v5835_v58 = vld [vmem:[%s8714_s1 + $0x48c] sm:$0xf0]  ;;  %v5183_v47 = vld [vmem:[%s8714_s1 + $0x488] sm:$0xf] }
 0x23f   : > { %4387 = vmatpush.bf16.msrb.mxu2 %v4202_v27  ;;  %v4084_v17 = vmax.f32 %v3837_v41, 0.0 }
 0x242   : > { %v3509_v52 = vpop.f32.mrf.mxu2  ;;  %v2854_v51 = vpop.f32.mrf.mxu0 }
 0x243   : > { %v3510_v30 = vadd.f32 %v3509_v52, %v3181_v20  ;;  %v3838_v35 = vpop.f32.mrf.mxu3  ;;  %4388 = vmatpush.bf16.msrb.mxu2 %v4201_v57  ;;  %v2855_v54 = vadd.f32 %v2854_v51, %v1053_v2  ;;  %v3183_v1 = vpop.f32.mrf.mxu1  ;;  %v5159_v57 = vld [vmem:[%s8714_s1 + $0x460] sm:$0xf]  ;;  %v5161_v52 = vld [vmem:[%s8714_s1 + $0x470] sm:$0xf0] }
 0x245   : > { %v3839_v7 = vadd.f32 %v3838_v35, %v3510_v30  ;;  %v3184_v31 = vadd.f32 %v3183_v1, %v2855_v54  ;;  %2893 = vmatmul.bf16.gmra.mxu0 %v5128_v34  ;;  %v1073_v34 = vpop.permute.xlu0 %1072  ;;  %v5830_v30 = vld [vmem:[%s8714_s1 + $0x46c] sm:$0xf]  ;;  %v5169_v35 = vld [vmem:[%s8714_s1 + $0x478] sm:$0xf0]  ;;  %v5168_v1 = vor.u32 %v5832_v12, %v5167_v59  ;;  %v5839_v59 = vld [vmem:[%s8714_s1 + $0x4ac] sm:$0xf0] }
 0x246   : > { %3222 = vmatmul.bf16.gmra.mxu1 %v5132_v56  ;;  %v5199_v12 = vld [vmem:[%s8714_s1 + $0x4a8] sm:$0xf] }
 0x247   : > { %v4085_v28 = vmax.f32 %v3839_v7, 0.0  ;;  %3551 = vmatmul.bf16.gmra.mxu2 %v5136_v0 }
 0x248   : > { %4389 = vmatpush.bf16.msrb.mxu2 %v4200_v22  ;;  %3880 = vmatmul.bf16.gmra.mxu3 %v5140_v53  ;;  %v5164_v53 = vor.u32 %v5829_v3, %v5161_v52  ;;  %v5172_v22 = vor.u32 %v5830_v30, %v5169_v35  ;;  %v5840_v3 = vld [vmem:[%s8714_s1 + $0x4b4] sm:$0xf0]  ;;  %v5837_v52 = vld [vmem:[%s8714_s1 + $0x4a4] sm:$0xf]  ;;  %v5838_v30 = vld [vmem:[%s8714_s1 + $0x4ac] sm:$0xf] }
 0x249   : > { %v7522_v45 = vpack.c.bf16 %v4085_v28, %v4084_v17  ;;  %v5201_v35 = vld [vmem:[%s8714_s1 + $0x4b8] sm:$0xf0] }
 0x24a   : > { %v3512_v15 = vpop.f32.mrf.mxu2  ;;  %v2856_v48 = vpop.f32.mrf.mxu0 }
 0x24b   : > { %v3513_v19 = vadd.f32 %v3512_v15, %v3184_v31  ;;  %v3841_v9 = vpop.f32.mrf.mxu3  ;;  %v2857_v39 = vadd.f32 %v2856_v48, %v1058_v18  ;;  %v3185_v16 = vpop.f32.mrf.mxu1 }
 0x24c   : > { %4390 = vmatpush.bf16.msrb.mxu2 %v7355_v44  ;;  %v5828_v44 = vld [vmem:[%s8714_s1 + $0x454] sm:$0xf0] }
 0x24d   : > { %v3842_v36 = vadd.f32 %v3841_v9, %v3513_v19  ;;  %v3186_v46 = vadd.f32 %v3185_v16, %v2857_v39  ;;  %v5152_v6 = vor.u32 %v5828_v44, %v5151_v50  ;;  %v1078_v19 = vpop.permute.xlu1 %1077  ;;  %v5175_v44 = vld [vmem:[%s8714_s1 + $0x480] sm:$0xf] }
 0x24f   : > { %v4086_v27 = vmax.f32 %v3842_v36, 0.0 }
 0x250   : > { %4391 = vmatpush.bf16.msrb.mxu2 %v7329_v32  ;;  %v5153_v32 = vld [vmem:[%s8714_s1 + $0x458] sm:$0xf0] }
 0x251   : > { %v5156_v63 = vor.u32 %v5826_v60, %v5153_v32  ;;  %v5833_v60 = vld [vmem:[%s8714_s1 + $0x484] sm:$0xf]  ;;  %v5177_v32 = vld [vmem:[%s8714_s1 + $0x490] sm:$0xf0] }
 0x252   : > { %v3514_v42 = vpop.f32.mrf.mxu2  ;;  %v2859_v5 = vpop.f32.mrf.mxu0 }
 0x253   : > { %v3515_v10 = vadd.f32 %v3514_v42, %v3186_v46  ;;  %v3843_v62 = vpop.f32.mrf.mxu3  ;;  %v2860_v8 = vadd.f32 %v2859_v5, %v1063_v21  ;;  %v3188_v14 = vpop.f32.mrf.mxu1  ;;  %v5836_v21 = vld [vmem:[%s8714_s1 + $0x494] sm:$0xf0]  ;;  %v5176_v5 = vor.u32 %v5835_v58, %v5175_v44 }
 0x254   : > { %4392 = vmatpush.bf16.msrb.mxu2 %v7303_v40  ;;  %v1083_v42 = vpop.permute.xlu2 %1082 }
 0x255   : > { %v3844_v13 = vadd.f32 %v3843_v62, %v3515_v10  ;;  %v3189_v41 = vadd.f32 %v3188_v14, %v2860_v8  ;;  %2898 = vmatmul.bf16.gmra.mxu0 %v5144_v43  ;;  %v5834_v43 = vld [vmem:[%s8714_s1 + $0x48c] sm:$0xf]  ;;  %v5185_v10 = vld [vmem:[%s8714_s1 + $0x498] sm:$0xf0]  ;;  %v5184_v14 = vor.u32 %v5836_v21, %v5183_v47 }
 0x256   : > { %3227 = vmatmul.bf16.gmra.mxu1 %v5148_v26 }
 0x257   : > { %v4087_v38 = vmax.f32 %v3844_v13, 0.0  ;;  %3556 = vmatmul.bf16.gmra.mxu2 %v5152_v6 }
 0x258   : > { %4393 = vmatpush.bf16.msrb.mxu2 %v7273_v55  ;;  %3885 = vmatmul.bf16.gmra.mxu3 %v5156_v63  ;;  %v5831_v55 = vld [vmem:[%s8714_s1 + $0x46c] sm:$0xf0]  ;;  %v5180_v63 = vor.u32 %v5833_v60, %v5177_v32  ;;  %v1088_v32 = vpop.permute.xlu0 %1087 }
 0x259   : > { %v7552_v20 = vpack.c.bf16 %v4087_v38, %v4086_v27  ;;  %v5160_v0 = vor.u32 %v5831_v55, %v5159_v57  ;;  %v5188_v27 = vor.u32 %v5834_v43, %v5185_v10  ;;  %v5191_v55 = vld [vmem:[%s8714_s1 + $0x4a0] sm:$0xf] }
 0x25a   : > { %v3517_v61 = vpop.f32.mrf.mxu2  ;;  %v2861_v40 = vpop.f32.mrf.mxu0 }
 0x25b   : > { %v3518_v11 = vadd.f32 %v3517_v61, %v3189_v41  ;;  %v3846_v29 = vpop.f32.mrf.mxu3  ;;  %v2862_v23 = vadd.f32 %v2861_v40, %v1068_v25  ;;  %v3190_v4 = vpop.f32.mrf.mxu1 }
 0x25d   : > { %v3847_v24 = vadd.f32 %v3846_v29, %v3518_v11  ;;  %v3191_v2 = vadd.f32 %v3190_v4, %v2862_v23 }
 0x25f   : > { %v4088_v18 = vmax.f32 %v3847_v24, 0.0 }
 0x262   : > { %v3519_v51 = vpop.f32.mrf.mxu2  ;;  %v2864_v54 = vpop.f32.mrf.mxu0 }
 0x263   : > { %v3520_v56 = vadd.f32 %v3519_v51, %v3191_v2  ;;  %v3848_v37 = vpop.f32.mrf.mxu3  ;;  %v2865_v7 = vadd.f32 %v2864_v54, %v1073_v34  ;;  %v3193_v31 = vpop.f32.mrf.mxu1  ;;  %v5193_v34 = vld [vmem:[%s8714_s1 + $0x4b0] sm:$0xf0]  ;;  %v5200_v54 = vor.u32 %v5840_v3, %v5199_v12 }
 0x265   : > { %v3849_v17 = vadd.f32 %v3848_v37, %v3520_v56  ;;  %v3194_v28 = vadd.f32 %v3193_v31, %v2865_v7  ;;  %2903 = vmatmul.bf16.gmra.mxu0 %v5160_v0  ;;  %v5192_v0 = vor.u32 %v5839_v59, %v5191_v55  ;;  %v5204_v7 = vor.u32 %v5838_v30, %v5201_v35 }
 0x266   : > { %3232 = vmatmul.bf16.gmra.mxu1 %v5164_v53 }
 0x267   : > { %v4089_v15 = vmax.f32 %v3849_v17, 0.0  ;;  %3561 = vmatmul.bf16.gmra.mxu2 %v5168_v1  ;;  %v5196_v1 = vor.u32 %v5837_v52, %v5193_v34 }
 0x268   : > { %3890 = vmatmul.bf16.gmra.mxu3 %v5172_v22 }
 0x269   : > { %v7578_v9 = vpack.c.bf16 %v4089_v15, %v4088_v18  ;;  %v5207_v18 = vld [vmem:[%s8714_s1 + $0x4c0] sm:$0xf]  ;;  %v5843_v15 = vld [vmem:[%s8714_s1 + $0x4cc] sm:$0xf0] }
 0x26a   : > { %v3522_v48 = vpop.f32.mrf.mxu2  ;;  %v2866_v36 = vpop.f32.mrf.mxu0 }
 0x26b   : > { %v3523_v39 = vadd.f32 %v3522_v48, %v3194_v28  ;;  %v3851_v16 = vpop.f32.mrf.mxu3  ;;  %v2867_v46 = vadd.f32 %v2866_v36, %v1078_v19  ;;  %v3195_v33 = vpop.f32.mrf.mxu1  ;;  %v5215_v19 = vld [vmem:[%s8714_s1 + $0x4c8] sm:$0xf]  ;;  %v5844_v48 = vld [vmem:[%s8714_s1 + $0x4d4] sm:$0xf0]  ;;  %v5842_v36 = vld [vmem:[%s8714_s1 + $0x4cc] sm:$0xf] }
 0x26c   : > { %v5216_v58 = vor.u32 %v5844_v48, %v5215_v19 }
 0x26d   : > { %v3852_v49 = vadd.f32 %v3851_v16, %v3523_v39  ;;  %v3196_v50 = vadd.f32 %v3195_v33, %v2867_v46  ;;  %v5841_v39 = vld [vmem:[%s8714_s1 + $0x4c4] sm:$0xf]  ;;  %v5209_v16 = vld [vmem:[%s8714_s1 + $0x4d0] sm:$0xf0]  ;;  %v5217_v46 = vld [vmem:[%s8714_s1 + $0x4d8] sm:$0xf0] }
 0x26e   : > { %v5212_v47 = vor.u32 %v5841_v39, %v5209_v16  ;;  %v5220_v60 = vor.u32 %v5842_v36, %v5217_v46  ;;  %v5239_v16 = vld [vmem:[%s8714_s1 + $0x500] sm:$0xf] }
 0x26f   : > { %v4090_v61 = vmax.f32 %v3852_v49, 0.0  ;;  %v5208_v49 = vor.u32 %v5843_v15, %v5207_v18 }
 0x272   : > { %v3524_v62 = vpop.f32.mrf.mxu2  ;;  %v2869_v8 = vpop.f32.mrf.mxu0 }
 0x273   : > { %v3525_v6 = vadd.f32 %v3524_v62, %v3196_v50  ;;  %v3853_v26 = vpop.f32.mrf.mxu3  ;;  %v2870_v13 = vadd.f32 %v2869_v8, %v1083_v42  ;;  %v3198_v41 = vpop.f32.mrf.mxu1  ;;  %v5231_v8 = vld [vmem:[%s8714_s1 + $0x4e8] sm:$0xf] }
 0x274   : > { %v1098_v62 = vpop.permute.xlu2 %1097 }
 0x275   : > { %v3854_v38 = vadd.f32 %v3853_v26, %v3525_v6  ;;  %v3199_v25 = vadd.f32 %v3198_v41, %v2870_v13  ;;  %2908 = vmatmul.bf16.gmra.mxu0 %v5176_v5  ;;  %v5223_v6 = vld [vmem:[%s8714_s1 + $0x4e0] sm:$0xf]  ;;  %v5847_v26 = vld [vmem:[%s8714_s1 + $0x4ec] sm:$0xf0]  ;;  %v5845_v13 = vld [vmem:[%s8714_s1 + $0x4e4] sm:$0xf] }
 0x276   : > { %3237 = vmatmul.bf16.gmra.mxu1 %v5180_v63  ;;  %v5848_v63 = vld [vmem:[%s8714_s1 + $0x4f4] sm:$0xf0]  ;;  %v5225_v41 = vld [vmem:[%s8714_s1 + $0x4f0] sm:$0xf0] }
 0x277   : > { %v4091_v11 = vmax.f32 %v3854_v38, 0.0  ;;  %3566 = vmatmul.bf16.gmra.mxu2 %v5184_v14  ;;  %v1093_v14 = vpop.permute.xlu1 %1092  ;;  %v5233_v38 = vld [vmem:[%s8714_s1 + $0x4f8] sm:$0xf0]  ;;  %v5228_v55 = vor.u32 %v5845_v13, %v5225_v41 }
 0x278   : > { %3895 = vmatmul.bf16.gmra.mxu3 %v5188_v27  ;;  %v5846_v27 = vld [vmem:[%s8714_s1 + $0x4ec] sm:$0xf] }
 0x279   : > { %v7604_v29 = vpack.c.bf16 %v4091_v11, %v4090_v61  ;;  %v5224_v11 = vor.u32 %v5847_v26, %v5223_v6  ;;  %v5236_v3 = vor.u32 %v5846_v27, %v5233_v38  ;;  %v5249_v6 = vld [vmem:[%s8714_s1 + $0x518] sm:$0xf0] }
 0x27a   : > { %v3527_v40 = vpop.f32.mrf.mxu2  ;;  %v7606_v24 = vpop.f32.mrf.mxu0 }
 0x27b   : > { %v3528_v23 = vadd.f32 %v3527_v40, %v3199_v25  ;;  %v3856_v4 = vpop.f32.mrf.mxu3  ;;  %v7608_v2 = vpop.f32.mrf.mxu1 }
 0x27c   : > { %v1103_v25 = vpop.permute.xlu0 %1102  ;;  %v1113_v59 = vpop.permute.xlu2 %1112 }
 0x27d   : > { %v7610_v57 = vadd.f32 %v3856_v4, %v3528_v23  ;;  %v5232_v4 = vor.u32 %v5848_v63, %v5231_v8 }
 0x27f   : > { %v1108_v34 = vpop.permute.xlu1 %1107 }
 0x282   : > { %v7636_v51 = vpop.f32.mrf.mxu2  ;;  %v7640_v37 = vpop.f32.mrf.mxu0 }
 0x283   : > { %v7638_v56 = vpop.f32.mrf.mxu3  ;;  %v7642_v53 = vpop.f32.mrf.mxu1  ;;  %v2875_v48 = vadd.f32 %v7640_v37, %v1093_v14  ;;  %v5852_v37 = vld [vmem:[%s8714_s1 + $0x514] sm:$0xf0] }
 0x284   : > { %v1118_v30 = vpop.permute.xlu0 %1117 }
 0x285   : > { %2913 = vmatmul.bf16.gmra.mxu0 %v5192_v0 }
 0x286   : > { %3242 = vmatmul.bf16.gmra.mxu1 %v5196_v1 }
 0x287   : > { %3571 = vmatmul.bf16.gmra.mxu2 %v5200_v54 }
 0x288   : > { %3900 = vmatmul.bf16.gmra.mxu3 %v5204_v7 }
 0x28a   : > { %v7644_v31 = vpop.f32.mrf.mxu2  ;;  %v7648_v17 = vpop.f32.mrf.mxu0 }
 0x28b   : > { %v7646_v22 = vpop.f32.mrf.mxu3  ;;  %v7650_v28 = vpop.f32.mrf.mxu1  ;;  %v2877_v39 = vadd.f32 %v7648_v17, %v1098_v62  ;;  %v2872_v17 = vadd.f32 %v7606_v24, %v1088_v32  ;;  %v3204_v24 = vadd.f32 %v7642_v53, %v2875_v48 }
 0x28d   : > { %v3206_v32 = vadd.f32 %v7650_v28, %v2877_v39 }
 0x292   : > { %v7676_v33 = vpop.f32.mrf.mxu2  ;;  %v2879_v44 = vpop.f32.mrf.mxu0 }
 0x293   : > { %v7678_v50 = vpop.f32.mrf.mxu3  ;;  %v3208_v21 = vpop.f32.mrf.mxu1  ;;  %v2880_v0 = vadd.f32 %v2879_v44, %v1103_v25  ;;  %v5851_v44 = vld [vmem:[%s8714_s1 + $0x50c] sm:$0xf0] }
 0x294   : > { %v5240_v8 = vor.u32 %v5851_v44, %v5239_v16  ;;  %v1133_v44 = vpop.permute.xlu0 %1132 }
 0x295   : > { %2918 = vmatmul.bf16.gmra.mxu0 %v5208_v49  ;;  %v3209_v36 = vadd.f32 %v3208_v21, %v2880_v0  ;;  %v5241_v21 = vld [vmem:[%s8714_s1 + $0x510] sm:$0xf0] }
 0x296   : > { %3247 = vmatmul.bf16.gmra.mxu1 %v5212_v47  ;;  %v5849_v47 = vld [vmem:[%s8714_s1 + $0x504] sm:$0xf] }
 0x297   : > { %3576 = vmatmul.bf16.gmra.mxu2 %v5216_v58  ;;  %v5247_v58 = vld [vmem:[%s8714_s1 + $0x508] sm:$0xf]  ;;  %v5244_v25 = vor.u32 %v5849_v47, %v5241_v21  ;;  %v5265_v47 = vld [vmem:[%s8714_s1 + $0x538] sm:$0xf0] }
 0x298   : > { %3905 = vmatmul.bf16.gmra.mxu3 %v5220_v60  ;;  %v1123_v60 = vpop.permute.xlu1 %1122  ;;  %v5248_v14 = vor.u32 %v5852_v37, %v5247_v58  ;;  %v5257_v37 = vld [vmem:[%s8714_s1 + $0x530] sm:$0xf0] }
 0x29a   : > { %v3537_v42 = vpop.f32.mrf.mxu2  ;;  %v2881_v10 = vpop.f32.mrf.mxu0 }
 0x29b   : > { %v7680_v43 = vpop.f32.mrf.mxu3  ;;  %v3210_v5 = vpop.f32.mrf.mxu1  ;;  %v2882_v54 = vadd.f32 %v2881_v10, %v1108_v34  ;;  %v3538_v63 = vadd.f32 %v3537_v42, %v3209_v36  ;;  %v3533_v42 = vadd.f32 %v7644_v31, %v3204_v24  ;;  %v5263_v36 = vld [vmem:[%s8714_s1 + $0x528] sm:$0xf] }
 0x29d   : > { %v3211_v46 = vadd.f32 %v3210_v5, %v2882_v54  ;;  %v5850_v5 = vld [vmem:[%s8714_s1 + $0x50c] sm:$0xf] }
 0x2a2   : > { %v3539_v61 = vpop.f32.mrf.mxu2  ;;  %v2884_v23 = vpop.f32.mrf.mxu0 }
 0x2a3   : > { %v3868_v40 = vpop.f32.mrf.mxu3  ;;  %v3213_v12 = vpop.f32.mrf.mxu1  ;;  %v2885_v52 = vadd.f32 %v2884_v23, %v1113_v59  ;;  %v3540_v10 = vadd.f32 %v3539_v61, %v3211_v46  ;;  %v3201_v61 = vadd.f32 %v7608_v2, %v2872_v17  ;;  %v5856_v46 = vld [vmem:[%s8714_s1 + $0x534] sm:$0xf0]  ;;  %v5854_v17 = vld [vmem:[%s8714_s1 + $0x52c] sm:$0xf] }
 0x2a4   : > { %v1128_v2 = vpop.permute.xlu2 %1127  ;;  %v5264_v24 = vor.u32 %v5856_v46, %v5263_v36 }
 0x2a5   : > { %2923 = vmatmul.bf16.gmra.mxu0 %v5224_v11  ;;  %v3214_v1 = vadd.f32 %v3213_v12, %v2885_v52  ;;  %v3869_v59 = vadd.f32 %v3868_v40, %v3540_v10  ;;  %v3530_v28 = vadd.f32 %v7636_v51, %v3201_v61  ;;  %v3862_v51 = vadd.f32 %v7646_v22, %v3533_v42  ;;  %v5855_v22 = vld [vmem:[%s8714_s1 + $0x52c] sm:$0xf0] }
 0x2a6   : > { %3252 = vmatmul.bf16.gmra.mxu1 %v5228_v55  ;;  %v3535_v55 = vadd.f32 %v7676_v33, %v3206_v32  ;;  %v4092_v10 = vmax.f32 %v7610_v57, 0.0  ;;  %v1138_v57 = vpop.permute.xlu1 %1137  ;;  %v5859_v42 = vld [vmem:[%s8714_s1 + $0x54c] sm:$0xf0] }
 0x2a7   : > { %3581 = vmatmul.bf16.gmra.mxu2 %v5232_v4  ;;  %v5252_v4 = vor.u32 %v5850_v5, %v5249_v6  ;;  %v3859_v0 = vadd.f32 %v7638_v56, %v3530_v28  ;;  %v5255_v56 = vld [vmem:[%s8714_s1 + $0x520] sm:$0xf] }
 0x2a8   : > { %3910 = vmatmul.bf16.gmra.mxu3 %v5236_v3  ;;  %v3867_v3 = vadd.f32 %v7680_v43, %v3538_v63 }
 0x2a9   : > { %v4093_v16 = vmax.f32 %v3859_v0, 0.0 }
 0x2aa   : > { %v3542_v35 = vpop.f32.mrf.mxu2  ;;  %v2886_v18 = vpop.f32.mrf.mxu0  ;;  %v4096_v54 = vmax.f32 %v3867_v3, 0.0  ;;  %v5860_v3 = vld [vmem:[%s8714_s1 + $0x554] sm:$0xf0] }
 0x2ab   : > { %v3871_v7 = vpop.f32.mrf.mxu3  ;;  %v3215_v15 = vpop.f32.mrf.mxu1  ;;  %v2887_v19 = vadd.f32 %v2886_v18, %v1118_v30  ;;  %v3543_v49 = vadd.f32 %v3542_v35, %v3214_v1  ;;  %v3864_v30 = vadd.f32 %v7678_v50, %v3535_v55  ;;  %v4097_v35 = vmax.f32 %v3869_v59, 0.0 }
 0x2ac   : > { %v4094_v50 = vmax.f32 %v3862_v51, 0.0 }
 0x2ad   : > { %v3216_v62 = vadd.f32 %v3215_v15, %v2887_v19  ;;  %v3872_v13 = vadd.f32 %v3871_v7, %v3543_v49  ;;  %v4095_v15 = vmax.f32 %v3864_v30, 0.0  ;;  %v4210_v48 = vpack.c.bf16 %v4097_v35, %v4096_v54  ;;  %v5853_v49 = vld [vmem:[%s8714_s1 + $0x524] sm:$0xf]  ;;  %v5281_v30 = vld [vmem:[%s8714_s1 + $0x558] sm:$0xf0] }
 0x2af   : > { %v4098_v52 = vmax.f32 %v3872_v13, 0.0  ;;  %v4209_v58 = vpack.c.bf16 %v4095_v15, %v4094_v50  ;;  %v4208_v13 = vpack.c.bf16 %v4093_v16, %v4092_v10  ;;  %v5297_v10 = vld [vmem:[%s8714_s1 + $0x578] sm:$0xf0] }
 0x2b2   : > { %v3544_v26 = vpop.f32.mrf.mxu2  ;;  %v2889_v38 = vpop.f32.mrf.mxu0 }
 0x2b3   : > { %v3545_v41 = vadd.f32 %v3544_v26, %v3216_v62  ;;  %v3873_v27 = vpop.f32.mrf.mxu3  ;;  %v2890_v11 = vadd.f32 %v2889_v38, %v1123_v60  ;;  %v3218_v23 = vpop.f32.mrf.mxu1  ;;  %v5256_v60 = vor.u32 %v5855_v22, %v5255_v56 }
 0x2b5   : > { %v3874_v53 = vadd.f32 %v3873_v27, %v3545_v41  ;;  %v3219_v12 = vadd.f32 %v3218_v23, %v2890_v11  ;;  %2928 = vmatmul.bf16.gmra.mxu0 %v5240_v8  ;;  %v5260_v8 = vor.u32 %v5853_v49, %v5257_v37  ;;  %v5295_v37 = vld [vmem:[%s8714_s1 + $0x568] sm:$0xf] }
 0x2b6   : > { %3257 = vmatmul.bf16.gmra.mxu1 %v5244_v25 }
 0x2b7   : > { %v4099_v34 = vmax.f32 %v3874_v53, 0.0  ;;  %3586 = vmatmul.bf16.gmra.mxu2 %v5248_v14  ;;  %v5268_v14 = vor.u32 %v5854_v17, %v5265_v47  ;;  %v5864_v17 = vld [vmem:[%s8714_s1 + $0x574] sm:$0xf0]  ;;  %v5861_v47 = vld [vmem:[%s8714_s1 + $0x564] sm:$0xf] }
 0x2b8   : > { %3915 = vmatmul.bf16.gmra.mxu3 %v5252_v4 }
 0x2b9   : > { %v4211_v33 = vpack.c.bf16 %v4099_v34, %v4098_v52  ;;  %v1143_v52 = vpop.permute.xlu2 %1142  ;;  %v5273_v34 = vld [vmem:[%s8714_s1 + $0x550] sm:$0xf0] }
 0x2ba   : > { %v3547_v40 = vpop.f32.mrf.mxu2  ;;  %v2891_v31 = vpop.f32.mrf.mxu0 }
 0x2bb   : > { %v3548_v1 = vadd.f32 %v3547_v40, %v3219_v12  ;;  %4405 = vmatpush.bf16.msrb.mxu3 %v4211_v33  ;;  %v3876_v43 = vpop.f32.mrf.mxu3  ;;  %v2892_v7 = vadd.f32 %v2891_v31, %v1128_v2  ;;  %v3220_v18 = vpop.f32.mrf.mxu1  ;;  %v5271_v12 = vld [vmem:[%s8714_s1 + $0x540] sm:$0xf]  ;;  %v5858_v2 = vld [vmem:[%s8714_s1 + $0x54c] sm:$0xf] }
 0x2bc   : > { %v5272_v33 = vor.u32 %v5859_v42, %v5271_v12 }
 0x2bd   : > { %v3877_v19 = vadd.f32 %v3876_v43, %v3548_v1  ;;  %v3221_v39 = vadd.f32 %v3220_v18, %v2892_v7  ;;  %v5284_v7 = vor.u32 %v5858_v2, %v5281_v30  ;;  %v5865_v2 = vld [vmem:[%s8714_s1 + $0x584] sm:$0xf]  ;;  %v5305_v30 = vld [vmem:[%s8714_s1 + $0x590] sm:$0xf0] }
 0x2bf   : > { %4406 = vmatpush.bf16.msrb.mxu3 %v4210_v48  ;;  %v4100_v27 = vmax.f32 %v3877_v19, 0.0 }
 0x2c2   : > { %v3549_v21 = vpop.f32.mrf.mxu2  ;;  %v2894_v5 = vpop.f32.mrf.mxu0 }
 0x2c3   : > { %v3550_v62 = vadd.f32 %v3549_v21, %v3221_v39  ;;  %4407 = vmatpush.bf16.msrb.mxu3 %v4209_v58  ;;  %v3878_v6 = vpop.f32.mrf.mxu3  ;;  %v2895_v32 = vadd.f32 %v2894_v5, %v1133_v44  ;;  %v3223_v26 = vpop.f32.mrf.mxu1  ;;  %v5287_v58 = vld [vmem:[%s8714_s1 + $0x560] sm:$0xf]  ;;  %v5289_v21 = vld [vmem:[%s8714_s1 + $0x570] sm:$0xf0] }
 0x2c5   : > { %v3879_v63 = vadd.f32 %v3878_v6, %v3550_v62  ;;  %v3224_v41 = vadd.f32 %v3223_v26, %v2895_v32  ;;  %2933 = vmatmul.bf16.gmra.mxu0 %v5256_v60  ;;  %v5862_v60 = vld [vmem:[%s8714_s1 + $0x56c] sm:$0xf]  ;;  %v1153_v62 = vpop.permute.xlu1 %1152 }
 0x2c6   : > { %3262 = vmatmul.bf16.gmra.mxu1 %v5260_v8  ;;  %v5296_v8 = vor.u32 %v5864_v17, %v5295_v37  ;;  %v5871_v37 = vld [vmem:[%s8714_s1 + $0x5ac] sm:$0xf0]  ;;  %v5327_v17 = vld [vmem:[%s8714_s1 + $0x5a8] sm:$0xf] }
 0x2c7   : > { %v4101_v38 = vmax.f32 %v3879_v63, 0.0  ;;  %3591 = vmatmul.bf16.gmra.mxu2 %v5264_v24  ;;  %4408 = vmatpush.bf16.msrb.mxu3 %v4208_v13  ;;  %v5292_v13 = vor.u32 %v5861_v47, %v5289_v21  ;;  %v5872_v47 = vld [vmem:[%s8714_s1 + $0x5b4] sm:$0xf0]  ;;  %v5869_v21 = vld [vmem:[%s8714_s1 + $0x5a4] sm:$0xf] }
 0x2c8   : > { %3920 = vmatmul.bf16.gmra.mxu3 %v5268_v14 }
 0x2c9   : > { %v7768_v25 = vpack.c.bf16 %v4101_v38, %v4100_v27 }
 0x2ca   : > { %v3552_v61 = vpop.f32.mrf.mxu2  ;;  %v2896_v23 = vpop.f32.mrf.mxu0 }
 0x2cb   : > { %v3553_v11 = vadd.f32 %v3552_v61, %v3224_v41  ;;  %4409 = vmatpush.bf16.msrb.mxu3 %v7604_v29  ;;  %v3881_v4 = vpop.f32.mrf.mxu3  ;;  %v2897_v55 = vadd.f32 %v2896_v23, %v1138_v57  ;;  %v3225_v59 = vpop.f32.mrf.mxu1  ;;  %v5279_v29 = vld [vmem:[%s8714_s1 + $0x548] sm:$0xf]  ;;  %v5300_v41 = vor.u32 %v5862_v60, %v5297_v10  ;;  %v5321_v60 = vld [vmem:[%s8714_s1 + $0x5b0] sm:$0xf0]  ;;  %v5870_v10 = vld [vmem:[%s8714_s1 + $0x5ac] sm:$0xf] }
 0x2cc   : > { %v5280_v54 = vor.u32 %v5860_v3, %v5279_v29  ;;  %v1158_v23 = vpop.permute.xlu2 %1157  ;;  %v5303_v3 = vld [vmem:[%s8714_s1 + $0x580] sm:$0xf] }
 0x2cd   : > { %v3882_v53 = vadd.f32 %v3881_v4, %v3553_v11  ;;  %v3226_v28 = vadd.f32 %v3225_v59, %v2897_v55 }
 0x2cf   : > { %4410 = vmatpush.bf16.msrb.mxu3 %v7578_v9  ;;  %v5857_v9 = vld [vmem:[%s8714_s1 + $0x544] sm:$0xf]  ;;  %v4102_v19 = vmax.f32 %v3882_v53, 0.0 }
 0x2d0   : > { %v5276_v43 = vor.u32 %v5857_v9, %v5273_v34  ;;  %v5867_v9 = vld [vmem:[%s8714_s1 + $0x58c] sm:$0xf0]  ;;  %v5868_v34 = vld [vmem:[%s8714_s1 + $0x594] sm:$0xf0] }
 0x2d2   : > { %v3554_v35 = vpop.f32.mrf.mxu2  ;;  %v2899_v0 = vpop.f32.mrf.mxu0 }
 0x2d3   : > { %v3555_v40 = vadd.f32 %v3554_v35, %v3226_v28  ;;  %4411 = vmatpush.bf16.msrb.mxu3 %v7552_v20  ;;  %v3883_v51 = vpop.f32.mrf.mxu3  ;;  %v2900_v1 = vadd.f32 %v2899_v0, %v1143_v52  ;;  %v3228_v31 = vpop.f32.mrf.mxu1  ;;  %v5311_v52 = vld [vmem:[%s8714_s1 + $0x588] sm:$0xf]  ;;  %v5866_v35 = vld [vmem:[%s8714_s1 + $0x58c] sm:$0xf] }
 0x2d4   : > { %v1148_v20 = vpop.permute.xlu0 %1147 }
 0x2d5   : > { %v3884_v18 = vadd.f32 %v3883_v51, %v3555_v40  ;;  %v3229_v15 = vadd.f32 %v3228_v31, %v2900_v1  ;;  %2938 = vmatmul.bf16.gmra.mxu0 %v5272_v33  ;;  %v5313_v33 = vld [vmem:[%s8714_s1 + $0x598] sm:$0xf0]  ;;  %v5304_v51 = vor.u32 %v5867_v9, %v5303_v3 }
 0x2d6   : > { %3267 = vmatmul.bf16.gmra.mxu1 %v5276_v43  ;;  %v5312_v43 = vor.u32 %v5868_v34, %v5311_v52 }
 0x2d7   : > { %v4103_v48 = vmax.f32 %v3884_v18, 0.0  ;;  %3596 = vmatmul.bf16.gmra.mxu2 %v5280_v54  ;;  %4412 = vmatpush.bf16.msrb.mxu3 %v7522_v45  ;;  %v5863_v45 = vld [vmem:[%s8714_s1 + $0x56c] sm:$0xf0] }
 0x2d8   : > { %3925 = vmatmul.bf16.gmra.mxu3 %v5284_v7  ;;  %v5288_v6 = vor.u32 %v5863_v45, %v5287_v58  ;;  %v5319_v45 = vld [vmem:[%s8714_s1 + $0x5a0] sm:$0xf] }
 0x2d9   : > { %v7798_v39 = vpack.c.bf16 %v4103_v48, %v4102_v19  ;;  %v5316_v19 = vor.u32 %v5866_v35, %v5313_v33 }
 0x2da   : > { %v3557_v16 = vpop.f32.mrf.mxu2  ;;  %v2901_v56 = vpop.f32.mrf.mxu0 }
 0x2db   : > { %v3558_v50 = vadd.f32 %v3557_v16, %v3229_v15  ;;  %v3886_v22 = vpop.f32.mrf.mxu3  ;;  %v2902_v36 = vadd.f32 %v2901_v56, %v1148_v20  ;;  %v3230_v46 = vpop.f32.mrf.mxu1  ;;  %v5308_v15 = vor.u32 %v5865_v2, %v5305_v30 }
 0x2dc   : > { %v1163_v40 = vpop.permute.xlu0 %1162 }
 0x2dd   : > { %v3887_v49 = vadd.f32 %v3886_v22, %v3558_v50  ;;  %v3231_v44 = vadd.f32 %v3230_v46, %v2902_v36 }
 0x2df   : > { %v4104_v57 = vmax.f32 %v3887_v49, 0.0 }
 0x2e2   : > { %v3559_v5 = vpop.f32.mrf.mxu2  ;;  %v2904_v32 = vpop.f32.mrf.mxu0 }
 0x2e3   : > { %v3560_v24 = vadd.f32 %v3559_v5, %v3231_v44  ;;  %v3888_v26 = vpop.f32.mrf.mxu3  ;;  %v2905_v14 = vadd.f32 %v2904_v32, %v1153_v62  ;;  %v3233_v63 = vpop.f32.mrf.mxu1  ;;  %v5329_v62 = vld [vmem:[%s8714_s1 + $0x5b8] sm:$0xf0] }
 0x2e5   : > { %v3889_v27 = vadd.f32 %v3888_v26, %v3560_v24  ;;  %v3234_v38 = vadd.f32 %v3233_v63, %v2905_v14  ;;  %2943 = vmatmul.bf16.gmra.mxu0 %v5288_v6  ;;  %v5320_v6 = vor.u32 %v5871_v37, %v5319_v45  ;;  %v5328_v26 = vor.u32 %v5872_v47, %v5327_v17 }
 0x2e6   : > { %3272 = vmatmul.bf16.gmra.mxu1 %v5292_v13  ;;  %v5324_v14 = vor.u32 %v5869_v21, %v5321_v60  ;;  %v5332_v63 = vor.u32 %v5870_v10, %v5329_v62  ;;  %v7890_v13 = vpop.permute.xlu1 %1167 }
 0x2e7   : > { %v4105_v61 = vmax.f32 %v3889_v27, 0.0  ;;  %3601 = vmatmul.bf16.gmra.mxu2 %v5296_v8 }
 0x2e8   : > { %3930 = vmatmul.bf16.gmra.mxu3 %v5300_v41 }
 0x2e9   : > { %v7824_v11 = vpack.c.bf16 %v4105_v61, %v4104_v57  ;;  %v1173_v61 = vpop.permute.xlu2 %1172 }
 0x2ea   : > { %v3562_v4 = vpop.f32.mrf.mxu2  ;;  %v2906_v59 = vpop.f32.mrf.mxu0 }
 0x2eb   : > { %v3563_v55 = vadd.f32 %v3562_v4, %v3234_v38  ;;  %v3891_v53 = vpop.f32.mrf.mxu3  ;;  %v2907_v28 = vadd.f32 %v2906_v59, %v1158_v23  ;;  %v3235_v12 = vpop.f32.mrf.mxu1  ;;  %v5335_v23 = vld [vmem:[%s8714_s1 + $0x5c0] sm:$0xf]  ;;  %v5875_v4 = vld [vmem:[%s8714_s1 + $0x5cc] sm:$0xf0]  ;;  %v5876_v59 = vld [vmem:[%s8714_s1 + $0x5d4] sm:$0xf0] }
 0x2ec   : > { %v5336_v9 = vor.u32 %v5875_v4, %v5335_v23 }
 0x2ed   : > { %v3892_v42 = vadd.f32 %v3891_v53, %v3563_v55  ;;  %v3236_v29 = vadd.f32 %v3235_v12, %v2907_v28  ;;  %v5343_v55 = vld [vmem:[%s8714_s1 + $0x5c8] sm:$0xf]  ;;  %v5873_v53 = vld [vmem:[%s8714_s1 + $0x5c4] sm:$0xf]  ;;  %v5337_v28 = vld [vmem:[%s8714_s1 + $0x5d0] sm:$0xf0] }
 0x2ee   : > { %v5874_v12 = vld [vmem:[%s8714_s1 + $0x5cc] sm:$0xf]  ;;  %v5344_v2 = vor.u32 %v5876_v59, %v5343_v55  ;;  %v5340_v35 = vor.u32 %v5873_v53, %v5337_v28 }
 0x2ef   : > { %v4106_v16 = vmax.f32 %v3892_v42, 0.0  ;;  %v5345_v42 = vld [vmem:[%s8714_s1 + $0x5d8] sm:$0xf0] }
 0x2f0   : > { %v5348_v33 = vor.u32 %v5874_v12, %v5345_v42 }
 0x2f2   : > { %v3564_v0 = vpop.f32.mrf.mxu2  ;;  %v2909_v1 = vpop.f32.mrf.mxu0 }
 0x2f3   : > { %v3565_v54 = vadd.f32 %v3564_v0, %v3236_v29  ;;  %v3893_v31 = vpop.f32.mrf.mxu3  ;;  %v2910_v7 = vadd.f32 %v2909_v1, %v1163_v40  ;;  %v3238_v18 = vpop.f32.mrf.mxu1 }
 0x2f4   : > { %v1183_v29 = vpop.permute.xlu1 %1182  ;;  %v1188_v40 = vpop.permute.xlu2 %1187 }
 0x2f5   : > { %v3894_v48 = vadd.f32 %v3893_v31, %v3565_v54  ;;  %v3239_v20 = vadd.f32 %v3238_v18, %v2910_v7  ;;  %2948 = vmatmul.bf16.gmra.mxu0 %v5304_v51  ;;  %v1178_v0 = vpop.permute.xlu0 %1177  ;;  %v5351_v7 = vld [vmem:[%s8714_s1 + $0x5e0] sm:$0xf]  ;;  %v5879_v18 = vld [vmem:[%s8714_s1 + $0x5ec] sm:$0xf0] }
 0x2f6   : > { %3277 = vmatmul.bf16.gmra.mxu1 %v5308_v15  ;;  %v5359_v15 = vld [vmem:[%s8714_s1 + $0x5e8] sm:$0xf] }
 0x2f7   : > { %v4107_v50 = vmax.f32 %v3894_v48, 0.0  ;;  %3606 = vmatmul.bf16.gmra.mxu2 %v5312_v43  ;;  %v5877_v48 = vld [vmem:[%s8714_s1 + $0x5e4] sm:$0xf] }
 0x2f8   : > { %3935 = vmatmul.bf16.gmra.mxu3 %v5316_v19  ;;  %v5880_v19 = vld [vmem:[%s8714_s1 + $0x5f4] sm:$0xf0] }
 0x2f9   : > { %v7850_v56 = vpack.c.bf16 %v4107_v50, %v4106_v16  ;;  %v5878_v16 = vld [vmem:[%s8714_s1 + $0x5ec] sm:$0xf]  ;;  %v5361_v50 = vld [vmem:[%s8714_s1 + $0x5f8] sm:$0xf0]  ;;  %v5360_v37 = vor.u32 %v5880_v19, %v5359_v15 }
 0x2fa   : > { %v3567_v22 = vpop.f32.mrf.mxu2  ;;  %v7852_v46 = vpop.f32.mrf.mxu0  ;;  %v5364_v60 = vor.u32 %v5878_v16, %v5361_v50 }
 0x2fb   : > { %v3568_v36 = vadd.f32 %v3567_v22, %v3239_v20  ;;  %v3896_v49 = vpop.f32.mrf.mxu3  ;;  %v7854_v44 = vpop.f32.mrf.mxu1  ;;  %v5353_v20 = vld [vmem:[%s8714_s1 + $0x5f0] sm:$0xf0] }
 0x2fc   : > { %v1198_v31 = vpop.permute.xlu1 %1197  ;;  %v1203_v17 = vpop.permute.xlu2 %1202  ;;  %v5356_v21 = vor.u32 %v5877_v48, %v5353_v20 }
 0x2fd   : > { %v7856_v58 = vadd.f32 %v3896_v49, %v3568_v36  ;;  %v5352_v36 = vor.u32 %v5879_v18, %v5351_v7  ;;  %v1193_v10 = vpop.permute.xlu0 %1192 }
 0x302   : > { %v7882_v5 = vpop.f32.mrf.mxu2  ;;  %v7884_v24 = vpop.f32.mrf.mxu0 }
 0x303   : > { %v7886_v32 = vpop.f32.mrf.mxu3  ;;  %v7888_v8 = vpop.f32.mrf.mxu1  ;;  %v2915_v12 = vadd.f32 %v7884_v24, %v1173_v61  ;;  %v5375_v24 = vld [vmem:[%s8714_s1 + $0x608] sm:$0xf]  ;;  %v5881_v61 = vld [vmem:[%s8714_s1 + $0x604] sm:$0xf] }
 0x304   : > { %v7954_v62 = vpop.permute.xlu1 %1212  ;;  %v7956_v28 = vpop.permute.xlu2 %1217 }
 0x305   : > { %2953 = vmatmul.bf16.gmra.mxu0 %v5320_v6 }
 0x306   : > { %3282 = vmatmul.bf16.gmra.mxu1 %v5324_v14 }
 0x307   : > { %3611 = vmatmul.bf16.gmra.mxu2 %v5328_v26 }
 0x308   : > { %3940 = vmatmul.bf16.gmra.mxu3 %v5332_v63 }
 0x30a   : > { %v7892_v41 = vpop.f32.mrf.mxu2  ;;  %v7894_v27 = vpop.f32.mrf.mxu0 }
 0x30b   : > { %v7896_v38 = vpop.f32.mrf.mxu3  ;;  %v7898_v57 = vpop.f32.mrf.mxu1  ;;  %v2917_v42 = vadd.f32 %v7894_v27, %v1178_v0  ;;  %v5884_v27 = vld [vmem:[%s8714_s1 + $0x614] sm:$0xf0] }
 0x30c   : > { %v5376_v50 = vor.u32 %v5884_v27, %v5375_v24  ;;  %v5888_v24 = vld [vmem:[%s8714_s1 + $0x634] sm:$0xf0]  ;;  %v5885_v27 = vld [vmem:[%s8714_s1 + $0x624] sm:$0xf] }
 0x312   : > { %v7924_v3 = vpop.f32.mrf.mxu2  ;;  %v2919_v52 = vpop.f32.mrf.mxu0 }
 0x313   : > { %v7926_v34 = vpop.f32.mrf.mxu3  ;;  %v3248_v30 = vpop.f32.mrf.mxu1  ;;  %v2920_v14 = vadd.f32 %v2919_v52, %v1183_v29  ;;  %v5883_v29 = vld [vmem:[%s8714_s1 + $0x60c] sm:$0xf0] }
 0x314   : > { %v7966_v52 = vpop.permute.xlu1 %1227 }
 0x315   : > { %2958 = vmatmul.bf16.gmra.mxu0 %v5336_v9  ;;  %v3249_v9 = vadd.f32 %v3248_v30, %v2920_v14 }
 0x316   : > { %3287 = vmatmul.bf16.gmra.mxu1 %v5340_v35 }
 0x317   : > { %3616 = vmatmul.bf16.gmra.mxu2 %v5344_v2 }
 0x318   : > { %3945 = vmatmul.bf16.gmra.mxu3 %v5348_v33  ;;  %v5367_v33 = vld [vmem:[%s8714_s1 + $0x600] sm:$0xf] }
 0x319   : > { %v5368_v18 = vor.u32 %v5883_v29, %v5367_v33 }
 0x31a   : > { %v3577_v51 = vpop.f32.mrf.mxu2  ;;  %v2921_v54 = vpop.f32.mrf.mxu0 }
 0x31b   : > { %v7928_v1 = vpop.f32.mrf.mxu3  ;;  %v3250_v43 = vpop.f32.mrf.mxu1  ;;  %v2922_v63 = vadd.f32 %v2921_v54, %v1188_v40  ;;  %v2912_v40 = vadd.f32 %v7852_v46, %v7890_v13  ;;  %v5369_v54 = vld [vmem:[%s8714_s1 + $0x610] sm:$0xf0]  ;;  %v5882_v46 = vld [vmem:[%s8714_s1 + $0x60c] sm:$0xf]  ;;  %v5377_v13 = vld [vmem:[%s8714_s1 + $0x618] sm:$0xf0]  ;;  %v3578_v15 = vadd.f32 %v3577_v51, %v3249_v9 }
 0x31d   : > { %v3251_v2 = vadd.f32 %v3250_v43, %v2922_v63  ;;  %v3246_v43 = vadd.f32 %v7898_v57, %v2917_v42 }
 0x322   : > { %v3579_v22 = vpop.f32.mrf.mxu2  ;;  %v2924_v49 = vpop.f32.mrf.mxu0 }
 0x323   : > { %v3908_v45 = vpop.f32.mrf.mxu3  ;;  %v3253_v47 = vpop.f32.mrf.mxu1  ;;  %v2925_v6 = vadd.f32 %v2924_v49, %v1193_v10  ;;  %v3580_v30 = vadd.f32 %v3579_v22, %v3251_v2  ;;  %v3241_v22 = vadd.f32 %v7854_v44, %v2912_v40  ;;  %v5391_v40 = vld [vmem:[%s8714_s1 + $0x628] sm:$0xf] }
 0x324   : > { %v7995_v44 = vpop.permute.xlu2 %1232 }
 0x325   : > { %2963 = vmatmul.bf16.gmra.mxu0 %v5352_v36  ;;  %v3254_v23 = vadd.f32 %v3253_v47, %v2925_v6  ;;  %v5380_v47 = vor.u32 %v5882_v46, %v5377_v13  ;;  %v3570_v57 = vadd.f32 %v7882_v5, %v3241_v22  ;;  %v3907_v6 = vadd.f32 %v7928_v1, %v3578_v15 }
 0x326   : > { %3292 = vmatmul.bf16.gmra.mxu1 %v5356_v21  ;;  %v3575_v21 = vadd.f32 %v7924_v3, %v3246_v43  ;;  %v4108_v43 = vmax.f32 %v7856_v58, 0.0 }
 0x327   : > { %3621 = vmatmul.bf16.gmra.mxu2 %v5360_v37  ;;  %v5372_v37 = vor.u32 %v5881_v61, %v5369_v54  ;;  %v4112_v1 = vmax.f32 %v3907_v6, 0.0  ;;  %v5393_v54 = vld [vmem:[%s8714_s1 + $0x638] sm:$0xf0] }
 0x328   : > { %3950 = vmatmul.bf16.gmra.mxu3 %v5364_v60  ;;  %v3909_v60 = vadd.f32 %v3908_v45, %v3580_v30  ;;  %v3904_v3 = vadd.f32 %v7926_v34, %v3575_v21  ;;  %v5385_v30 = vld [vmem:[%s8714_s1 + $0x630] sm:$0xf0] }
 0x32a   : > { %v3582_v26 = vpop.f32.mrf.mxu2  ;;  %v2926_v4 = vpop.f32.mrf.mxu0  ;;  %v4113_v45 = vmax.f32 %v3909_v60, 0.0  ;;  %v4111_v9 = vmax.f32 %v3904_v3, 0.0 }
 0x32b   : > { %v3911_v55 = vpop.f32.mrf.mxu3  ;;  %v3255_v59 = vpop.f32.mrf.mxu1  ;;  %v2927_v53 = vadd.f32 %v2926_v4, %v1198_v31  ;;  %v3583_v35 = vadd.f32 %v3582_v26, %v3254_v23  ;;  %v3244_v31 = vadd.f32 %v7888_v8, %v2915_v12  ;;  %v3899_v4 = vadd.f32 %v7886_v32, %v3570_v57  ;;  %v5383_v32 = vld [vmem:[%s8714_s1 + $0x620] sm:$0xf] }
 0x32c   : > { %v7998_v23 = vpop.permute.xlu1 %1242  ;;  %v8026_v46 = vpop.permute.xlu2 %1247 }
 0x32d   : > { %v3256_v0 = vadd.f32 %v3255_v59, %v2927_v53  ;;  %v3912_v19 = vadd.f32 %v3911_v55, %v3583_v35  ;;  %v3573_v51 = vadd.f32 %v7892_v41, %v3244_v31  ;;  %v4218_v35 = vpack.c.bf16 %v4113_v45, %v4112_v1  ;;  %v5399_v45 = vld [vmem:[%s8714_s1 + $0x640] sm:$0xf] }
 0x32e   : > { %v4109_v33 = vmax.f32 %v3899_v4, 0.0  ;;  %v5890_v4 = vld [vmem:[%s8714_s1 + $0x64c] sm:$0xf] }
 0x32f   : > { %v4114_v26 = vmax.f32 %v3912_v19, 0.0  ;;  %v3902_v41 = vadd.f32 %v7896_v38, %v3573_v51  ;;  %v5887_v38 = vld [vmem:[%s8714_s1 + $0x62c] sm:$0xf0]  ;;  %v5392_v19 = vor.u32 %v5888_v24, %v5391_v40 }
 0x330   : > { %v5384_v31 = vor.u32 %v5887_v38, %v5383_v32 }
 0x331   : > { %v4110_v29 = vmax.f32 %v3902_v41, 0.0  ;;  %v5409_v41 = vld [vmem:[%s8714_s1 + $0x658] sm:$0xf0] }
 0x332   : > { %v3584_v7 = vpop.f32.mrf.mxu2  ;;  %v2929_v20 = vpop.f32.mrf.mxu0 }
 0x333   : > { %v3585_v48 = vadd.f32 %v3584_v7, %v3256_v0  ;;  %v3913_v16 = vpop.f32.mrf.mxu3  ;;  %v2930_v36 = vadd.f32 %v2929_v20, %v1203_v17  ;;  %v3258_v49 = vpop.f32.mrf.mxu1  ;;  %v4217_v61 = vpack.c.bf16 %v4111_v9, %v4110_v29  ;;  %v5886_v0 = vld [vmem:[%s8714_s1 + $0x62c] sm:$0xf] }
 0x334   : > { %v1208_v17 = vpop.permute.xlu0 %1207  ;;  %v8035_v51 = vpop.permute.xlu2 %1352 }
 0x335   : > { %v3914_v8 = vadd.f32 %v3913_v16, %v3585_v48  ;;  %v3259_v10 = vadd.f32 %v3258_v49, %v2930_v36  ;;  %2968 = vmatmul.bf16.gmra.mxu0 %v5368_v18  ;;  %v8029_v48 = vpop.permute.xlu1 %1257  ;;  %v5388_v16 = vor.u32 %v5885_v27, %v5385_v30  ;;  %v4216_v49 = vpack.c.bf16 %v4109_v33, %v4108_v43 }
 0x336   : > { %3297 = vmatmul.bf16.gmra.mxu1 %v5372_v37 }
 0x337   : > { %v4115_v14 = vmax.f32 %v3914_v8, 0.0  ;;  %3626 = vmatmul.bf16.gmra.mxu2 %v5376_v50  ;;  %v5396_v50 = vor.u32 %v5886_v0, %v5393_v54 }
 0x338   : > { %3955 = vmatmul.bf16.gmra.mxu3 %v5380_v47 }
 0x339   : > { %v4219_v63 = vpack.c.bf16 %v4115_v14, %v4114_v26 }
 0x33a   : > { %v3587_v5 = vpop.f32.mrf.mxu2  ;;  %v2931_v59 = vpop.f32.mrf.mxu0 }
 0x33b   : > { %v3588_v55 = vadd.f32 %v3587_v5, %v3259_v10  ;;  %4424 = vmatpush.bf16.msra.mxu0 %v4219_v63  ;;  %v3916_v53 = vpop.f32.mrf.mxu3  ;;  %v2932_v12 = vadd.f32 %v2931_v59, %v1208_v17  ;;  %v3260_v42 = vpop.f32.mrf.mxu1  ;;  %v5407_v63 = vld [vmem:[%s8714_s1 + $0x648] sm:$0xf]  ;;  %v5401_v5 = vld [vmem:[%s8714_s1 + $0x650] sm:$0xf0] }
 0x33c   : > { %v1223_v60 = vpop.permute.xlu0 %1222  ;;  %v8066_v32 = vpop.permute.xlu2 %1437 }
 0x33d   : > { %v3917_v2 = vadd.f32 %v3916_v53, %v3588_v55  ;;  %v3261_v34 = vadd.f32 %v3260_v42, %v2932_v12  ;;  %v8038_v17 = vpop.permute.xlu1 %1432  ;;  %8720 = vst [vmem:[#allocation3_spill] sm:$0xff] %v8066_v32 }
 0x33e   : > { %8719 = vst [vmem:[#allocation2_spill] sm:$0xff] %v8038_v17 }
 0x33f   : > { %4425 = vmatpush.bf16.msra.mxu0 %v4218_v35  ;;  %v4116_v47 = vmax.f32 %v3917_v2, 0.0 }
 0x342   : > { %v3589_v13 = vpop.f32.mrf.mxu2  ;;  %v2934_v18 = vpop.f32.mrf.mxu0 }
 0x343   : > { %v3590_v7 = vadd.f32 %v3589_v13, %v3261_v34  ;;  %4426 = vmatpush.bf16.msra.mxu0 %v4217_v61  ;;  %v3918_v15 = vpop.f32.mrf.mxu3  ;;  %v2935_v20 = vadd.f32 %v2934_v18, %v7954_v62  ;;  %v3263_v36 = vpop.f32.mrf.mxu1  ;;  %v5412_v34 = vor.u32 %v5890_v4, %v5409_v41 }
 0x344   : > { %v1238_v9 = vpop.permute.xlu0 %1237 }
 0x345   : > { %v3919_v22 = vadd.f32 %v3918_v15, %v3590_v7  ;;  %v3264_v37 = vadd.f32 %v3263_v36, %v2935_v20  ;;  %2973 = vmatmul.bf16.gmra.mxu0 %v5384_v31  ;;  %v8069_v27 = vpop.permute.xlu1 %1277  ;;  %v5895_v15 = vld [vmem:[%s8714_s1 + $0x66c] sm:$0xf0]  ;;  %v5423_v20 = vld [vmem:[%s8714_s1 + $0x668] sm:$0xf]  ;;  %v5425_v36 = vld [vmem:[%s8714_s1 + $0x678] sm:$0xf0] }
 0x346   : > { %3302 = vmatmul.bf16.gmra.mxu1 %v5388_v16  ;;  %v5893_v16 = vld [vmem:[%s8714_s1 + $0x664] sm:$0xf] }
 0x347   : > { %v4117_v21 = vmax.f32 %v3919_v22, 0.0  ;;  %3631 = vmatmul.bf16.gmra.mxu2 %v5392_v19  ;;  %4427 = vmatpush.bf16.msra.mxu0 %v4216_v49  ;;  %v8082_v19 = vpop.permute.xlu2 %1342  ;;  %v5894_v22 = vld [vmem:[%s8714_s1 + $0x66c] sm:$0xf] }
 0x348   : > { %3960 = vmatmul.bf16.gmra.mxu3 %v5396_v50  ;;  %v5417_v50 = vld [vmem:[%s8714_s1 + $0x670] sm:$0xf0] }
 0x349   : > { %v8032_v58 = vpack.c.bf16 %v4117_v21, %v4116_v47 }
 0x34a   : > { %v3592_v8 = vpop.f32.mrf.mxu2  ;;  %v2936_v62 = vpop.f32.mrf.mxu0 }
 0x34b   : > { %v3593_v57 = vadd.f32 %v3592_v8, %v3264_v37  ;;  %4428 = vmatpush.bf16.msra.mxu0 %v7850_v56  ;;  %v3921_v10 = vpop.f32.mrf.mxu3  ;;  %v2937_v6 = vadd.f32 %v2936_v62, %v7956_v28  ;;  %v3265_v14 = vpop.f32.mrf.mxu1  ;;  %v5891_v56 = vld [vmem:[%s8714_s1 + $0x64c] sm:$0xf0]  ;;  %v5892_v28 = vld [vmem:[%s8714_s1 + $0x654] sm:$0xf0] }
 0x34c   : > { %v5400_v55 = vor.u32 %v5891_v56, %v5399_v45  ;;  %v5408_v42 = vor.u32 %v5892_v28, %v5407_v63  ;;  %v8074_v7 = vpop.permute.xlu0 %1252 }
 0x34d   : > { %v3922_v26 = vadd.f32 %v3921_v10, %v3593_v57  ;;  %v3266_v3 = vadd.f32 %v3265_v14, %v2937_v6  ;;  %v8102_v49 = vpop.permute.xlu1 %1422  ;;  %v5420_v10 = vor.u32 %v5893_v16, %v5417_v50  ;;  %v5428_v6 = vor.u32 %v5894_v22, %v5425_v36 }
 0x34e   : > { %8721 = vst [vmem:[#allocation4_spill] sm:$0xff] %v8102_v49 }
 0x34f   : > { %4429 = vmatpush.bf16.msra.mxu0 %v7824_v11  ;;  %v5889_v11 = vld [vmem:[%s8714_s1 + $0x644] sm:$0xf]  ;;  %v4118_v40 = vmax.f32 %v3922_v26, 0.0 }
 0x350   : > { %v5404_v35 = vor.u32 %v5889_v11, %v5401_v5  ;;  %v8109_v11 = vpop.permute.xlu2 %1427 }
 0x351   : > { %8722 = vst [vmem:[#allocation5_spill] sm:$0xff] %v8109_v11 }
 0x352   : > { %v3594_v1 = vpop.f32.mrf.mxu2  ;;  %v2939_v53 = vpop.f32.mrf.mxu0 }
 0x353   : > { %v3595_v59 = vadd.f32 %v3594_v1, %v3266_v3  ;;  %4430 = vmatpush.bf16.msra.mxu0 %v7798_v39  ;;  %v3923_v12 = vpop.f32.mrf.mxu3  ;;  %v2940_v2 = vadd.f32 %v2939_v53, %v1223_v60  ;;  %v3268_v29 = vpop.f32.mrf.mxu1 }
 0x354   : > { %v8105_v63 = vpop.permute.xlu0 %1357 }
 0x355   : > { %v3924_v33 = vadd.f32 %v3923_v12, %v3595_v59  ;;  %v3269_v38 = vadd.f32 %v3268_v29, %v2940_v2  ;;  %2978 = vmatmul.bf16.gmra.mxu0 %v5400_v55  ;;  %v8111_v1 = vpop.permute.xlu1 %1267  ;;  %v5899_v2 = vld [vmem:[%s8714_s1 + $0x68c] sm:$0xf0]  ;;  %v5898_v29 = vld [vmem:[%s8714_s1 + $0x68c] sm:$0xf] }
 0x356   : > { %3307 = vmatmul.bf16.gmra.mxu1 %v5404_v35  ;;  %v5439_v35 = vld [vmem:[%s8714_s1 + $0x688] sm:$0xf] }
 0x357   : > { %v4119_v24 = vmax.f32 %v3924_v33, 0.0  ;;  %3636 = vmatmul.bf16.gmra.mxu2 %v5408_v42  ;;  %4431 = vmatpush.bf16.msra.mxu0 %v7768_v25  ;;  %v5415_v25 = vld [vmem:[%s8714_s1 + $0x660] sm:$0xf]  ;;  %v5433_v33 = vld [vmem:[%s8714_s1 + $0x690] sm:$0xf0] }
 0x358   : > { %3965 = vmatmul.bf16.gmra.mxu3 %v5412_v34  ;;  %v5416_v47 = vor.u32 %v5895_v15, %v5415_v25  ;;  %v5431_v42 = vld [vmem:[%s8714_s1 + $0x680] sm:$0xf]  ;;  %v5900_v34 = vld [vmem:[%s8714_s1 + $0x694] sm:$0xf0] }
 0x359   : > { %v8071_v39 = vpack.c.bf16 %v4119_v24, %v4118_v40 }
 0x35a   : > { %v3597_v61 = vpop.f32.mrf.mxu2  ;;  %v2941_v0 = vpop.f32.mrf.mxu0 }
 0x35b   : > { %v3598_v30 = vadd.f32 %v3597_v61, %v3269_v38  ;;  %v3926_v54 = vpop.f32.mrf.mxu3  ;;  %v2942_v13 = vadd.f32 %v2941_v0, %v7966_v52  ;;  %v3270_v43 = vpop.f32.mrf.mxu1  ;;  %v5896_v52 = vld [vmem:[%s8714_s1 + $0x674] sm:$0xf0]  ;;  %v5441_v38 = vld [vmem:[%s8714_s1 + $0x698] sm:$0xf0]  ;;  %v5432_v61 = vor.u32 %v5899_v2, %v5431_v42 }
 0x35c   : > { %v5424_v57 = vor.u32 %v5896_v52, %v5423_v20  ;;  %v8137_v40 = vpop.permute.xlu0 %1272  ;;  %v5444_v25 = vor.u32 %v5898_v29, %v5441_v38 }
 0x35d   : > { %v3927_v31 = vadd.f32 %v3926_v54, %v3598_v30  ;;  %v3271_v18 = vadd.f32 %v3270_v43, %v2942_v13  ;;  %v5440_v13 = vor.u32 %v5900_v34, %v5439_v35  ;;  %v8142_v52 = vpop.permute.xlu1 %1412 }
 0x35e   : > { %8723 = vst [vmem:[#allocation6_spill] sm:$0xff] %v8142_v52 }
 0x35f   : > { %v4120_v45 = vmax.f32 %v3927_v31, 0.0  ;;  %v8139_v31 = vpop.permute.xlu2 %1332 }
 0x362   : > { %v3599_v37 = vpop.f32.mrf.mxu2  ;;  %v2944_v60 = vpop.f32.mrf.mxu0 }
 0x363   : > { %v3600_v21 = vadd.f32 %v3599_v37, %v3271_v18  ;;  %v3928_v8 = vpop.f32.mrf.mxu3  ;;  %v2945_v62 = vadd.f32 %v2944_v60, %v7995_v44  ;;  %v3273_v14 = vpop.f32.mrf.mxu1 }
 0x364   : > { %v8148_v60 = vpop.permute.xlu0 %1347 }
 0x365   : > { %v3929_v26 = vadd.f32 %v3928_v8, %v3600_v21  ;;  %v3274_v3 = vadd.f32 %v3273_v14, %v2945_v62  ;;  %2983 = vmatmul.bf16.gmra.mxu0 %v5416_v47  ;;  %v5455_v14 = vld [vmem:[%s8714_s1 + $0x6a8] sm:$0xf] }
 0x366   : > { %3312 = vmatmul.bf16.gmra.mxu1 %v5420_v10  ;;  %v5447_v10 = vld [vmem:[%s8714_s1 + $0x6a0] sm:$0xf] }
 0x367   : > { %v4121_v56 = vmax.f32 %v3929_v26, 0.0  ;;  %3641 = vmatmul.bf16.gmra.mxu2 %v5424_v57  ;;  %v8154_v62 = vpop.permute.xlu2 %1417  ;;  %v8162_v26 = vpop.permute.xlu1 %1327 }
 0x368   : > { %3970 = vmatmul.bf16.gmra.mxu3 %v5428_v6  ;;  %8724 = vst [vmem:[#allocation7_spill] sm:$0xff] %v8154_v62  ;;  %v5903_v6 = vld [vmem:[%s8714_s1 + $0x6ac] sm:$0xf0] }
 0x369   : > { %v8107_v28 = vpack.c.bf16 %v4121_v56, %v4120_v45  ;;  %v5901_v45 = vld [vmem:[%s8714_s1 + $0x6a4] sm:$0xf]  ;;  %v5449_v56 = vld [vmem:[%s8714_s1 + $0x6b0] sm:$0xf0] }
 0x36a   : > { %v3602_v5 = vpop.f32.mrf.mxu2  ;;  %v2946_v44 = vpop.f32.mrf.mxu0 }
 0x36b   : > { %v3603_v4 = vadd.f32 %v3602_v5, %v3274_v3  ;;  %v3931_v41 = vpop.f32.mrf.mxu3  ;;  %v2947_v55 = vadd.f32 %v2946_v44, %v1238_v9  ;;  %v3275_v53 = vpop.f32.mrf.mxu1  ;;  %v5897_v9 = vld [vmem:[%s8714_s1 + $0x684] sm:$0xf]  ;;  %v5904_v3 = vld [vmem:[%s8714_s1 + $0x6b4] sm:$0xf0]  ;;  %v5902_v5 = vld [vmem:[%s8714_s1 + $0x6ac] sm:$0xf] }
 0x36c   : > { %v5436_v18 = vor.u32 %v5897_v9, %v5433_v33  ;;  %v8190_v35 = vpop.permute.xlu0 %1262 }
 0x36d   : > { %v3932_v59 = vadd.f32 %v3931_v41, %v3603_v4  ;;  %v3276_v12 = vadd.f32 %v3275_v53, %v2947_v55  ;;  %v5457_v4 = vld [vmem:[%s8714_s1 + $0x6b8] sm:$0xf0]  ;;  %v5448_v41 = vor.u32 %v5903_v6, %v5447_v10  ;;  %v5456_v53 = vor.u32 %v5904_v3, %v5455_v14 }
 0x36e   : > { %v5460_v42 = vor.u32 %v5902_v5, %v5457_v4 }
 0x36f   : > { %v4122_v50 = vmax.f32 %v3932_v59, 0.0  ;;  %v8192_v34 = vpop.permute.xlu2 %1402  ;;  %v8194_v9 = vpop.permute.xlu1 %1312 }
 0x370   : > { %8725 = vst [vmem:[#allocation8_spill] sm:$0xff] %v8192_v34 }
 0x372   : > { %v3604_v24 = vpop.f32.mrf.mxu2  ;;  %v2949_v0 = vpop.f32.mrf.mxu0 }
 0x373   : > { %v3605_v30 = vadd.f32 %v3604_v24, %v3276_v12  ;;  %v3933_v54 = vpop.f32.mrf.mxu3  ;;  %v2950_v43 = vadd.f32 %v2949_v0, %v7998_v23  ;;  %v3278_v20 = vpop.f32.mrf.mxu1  ;;  %v5452_v12 = vor.u32 %v5901_v45, %v5449_v56 }
 0x374   : > { %v8210_v0 = vpop.permute.xlu0 %1337 }
 0x375   : > { %v3934_v15 = vadd.f32 %v3933_v54, %v3605_v30  ;;  %v3279_v16 = vadd.f32 %v3278_v20, %v2950_v43  ;;  %2988 = vmatmul.bf16.gmra.mxu0 %v5432_v61  ;;  %v5463_v61 = vld [vmem:[%s8714_s1 + $0x6c0] sm:$0xf]  ;;  %v5907_v30 = vld [vmem:[%s8714_s1 + $0x6cc] sm:$0xf0]  ;;  %v5471_v54 = vld [vmem:[%s8714_s1 + $0x6c8] sm:$0xf] }
 0x376   : > { %3317 = vmatmul.bf16.gmra.mxu1 %v5436_v18  ;;  %v5905_v43 = vld [vmem:[%s8714_s1 + $0x6c4] sm:$0xf]  ;;  %v5465_v18 = vld [vmem:[%s8714_s1 + $0x6d0] sm:$0xf0] }
 0x377   : > { %v4123_v22 = vmax.f32 %v3934_v15, 0.0  ;;  %3646 = vmatmul.bf16.gmra.mxu2 %v5440_v13  ;;  %v5908_v13 = vld [vmem:[%s8714_s1 + $0x6d4] sm:$0xf0]  ;;  %v5473_v15 = vld [vmem:[%s8714_s1 + $0x6d8] sm:$0xf0]  ;;  %v8230_v20 = vpop.permute.xlu2 %1317  ;;  %v5468_v10 = vor.u32 %v5905_v43, %v5465_v18 }
 0x378   : > { %3975 = vmatmul.bf16.gmra.mxu3 %v5444_v25  ;;  %v5906_v25 = vld [vmem:[%s8714_s1 + $0x6cc] sm:$0xf]  ;;  %v5489_v18 = vld [vmem:[%s8714_s1 + $0x6f8] sm:$0xf0] }
 0x379   : > { %v8144_v36 = vpack.c.bf16 %v4123_v22, %v4122_v50  ;;  %v5464_v50 = vor.u32 %v5907_v30, %v5463_v61  ;;  %v5476_v6 = vor.u32 %v5906_v25, %v5473_v15  ;;  %v5487_v61 = vld [vmem:[%s8714_s1 + $0x6e8] sm:$0xf]  ;;  %v5912_v30 = vld [vmem:[%s8714_s1 + $0x6f4] sm:$0xf0]  ;;  %v5910_v43 = vld [vmem:[%s8714_s1 + $0x6ec] sm:$0xf] }
 0x37a   : > { %v3607_v37 = vpop.f32.mrf.mxu2  ;;  %v8146_v21 = vpop.f32.mrf.mxu0  ;;  %v5492_v62 = vor.u32 %v5910_v43, %v5489_v18 }
 0x37b   : > { %v3608_v47 = vadd.f32 %v3607_v37, %v3279_v16  ;;  %v3936_v23 = vpop.f32.mrf.mxu3  ;;  %v8152_v57 = vpop.f32.mrf.mxu1 }
 0x37c   : > { %v8238_v3 = vpop.permute.xlu0 %1322 }
 0x37d   : > { %v8150_v8 = vadd.f32 %v3936_v23, %v3608_v47  ;;  %v5472_v47 = vor.u32 %v5908_v13, %v5471_v54  ;;  %v8236_v23 = vpop.permute.xlu1 %1397  ;;  %v5909_v54 = vld [vmem:[%s8714_s1 + $0x6e4] sm:$0xf]  ;;  %v5481_v13 = vld [vmem:[%s8714_s1 + $0x6f0] sm:$0xf0] }
 0x37e   : > { %8726 = vst [vmem:[#allocation9_spill] sm:$0xff] %v8236_v23  ;;  %v5484_v52 = vor.u32 %v5909_v54, %v5481_v13 }
 0x37f   : > { %v8242_v4 = vpop.permute.xlu2 %1302 }
 0x382   : > { %v8182_v44 = vpop.f32.mrf.mxu2  ;;  %v8184_v55 = vpop.f32.mrf.mxu0 }
 0x383   : > { %v8186_v59 = vpop.f32.mrf.mxu3  ;;  %v8188_v2 = vpop.f32.mrf.mxu1 }
 0x385   : > { %2993 = vmatmul.bf16.gmra.mxu0 %v5448_v41 }
 0x386   : > { %3322 = vmatmul.bf16.gmra.mxu1 %v5452_v12  ;;  %v5479_v12 = vld [vmem:[%s8714_s1 + $0x6e0] sm:$0xf] }
 0x387   : > { %3651 = vmatmul.bf16.gmra.mxu2 %v5456_v53  ;;  %v8244_v53 = vpop.permute.xlu1 %1382  ;;  %v8272_v49 = vpop.permute.xlu2 %1387 }
 0x388   : > { %3980 = vmatmul.bf16.gmra.mxu3 %v5460_v42  ;;  %8727 = vst [vmem:[#allocation10_spill] sm:$0xff] %v8244_v53  ;;  %v5911_v42 = vld [vmem:[%s8714_s1 + $0x6ec] sm:$0xf0] }
 0x389   : > { %v5480_v15 = vor.u32 %v5911_v42, %v5479_v12  ;;  %8729 = vst [vmem:[#allocation12_spill] sm:$0xff] %v8272_v49 }
 0x38a   : > { %v8196_v33 = vpop.f32.mrf.mxu2  ;;  %v8198_v29 = vpop.f32.mrf.mxu0 }
 0x38b   : > { %v8200_v38 = vpop.f32.mrf.mxu3  ;;  %v8202_v24 = vpop.f32.mrf.mxu1 }
 0x38f   : > { %v8274_v11 = vpop.permute.xlu1 %1297 }
 0x392   : > { %v8232_v16 = vpop.f32.mrf.mxu2  ;;  %v2959_v22 = vpop.f32.mrf.mxu0 }
 0x393   : > { %v8234_v37 = vpop.f32.mrf.mxu3  ;;  %v3288_v14 = vpop.f32.mrf.mxu1 }
 0x395   : > { %2998 = vmatmul.bf16.gmra.mxu0 %v5464_v50 }
 0x396   : > { %3327 = vmatmul.bf16.gmra.mxu1 %v5468_v10  ;;  %v5488_v10 = vor.u32 %v5912_v30, %v5487_v61  ;;  %v2960_v30 = vadd.f32 %v2959_v22, %v8190_v35  ;;  %v8290_v35 = vpop.permute.xlu2 %1372 }
 0x397   : > { %3656 = vmatmul.bf16.gmra.mxu2 %v5472_v47 }
 0x398   : > { %3985 = vmatmul.bf16.gmra.mxu3 %v5476_v6  ;;  %v8270_v6 = vpop.permute.xlu0 %1407 }
 0x399   : > { %8728 = vst [vmem:[#allocation11_spill] sm:$0xff] %v8270_v6 }
 0x39a   : > { %v3617_v45 = vpop.f32.mrf.mxu2  ;;  %v2961_v56 = vpop.f32.mrf.mxu0 }
 0x39b   : > { %v8240_v5 = vpop.f32.mrf.mxu3  ;;  %v3290_v41 = vpop.f32.mrf.mxu1  ;;  %v2962_v12 = vadd.f32 %v2961_v56, %v8111_v1  ;;  %v5915_v1 = vld [vmem:[%s8714_s1 + $0x70c] sm:$0xf0] }
 0x3a0   : > { %v8280_v18 = vpop.permute.xlu0 %1392 }
 0x3a1   : > { %8730 = vst [vmem:[#allocation13_spill] sm:$0xff] %v8280_v18 }
 0x3a2   : > { %v3619_v25 = vpop.f32.mrf.mxu2  ;;  %v2964_v50 = vpop.f32.mrf.mxu0 }
 0x3a3   : > { %v3948_v47 = vpop.f32.mrf.mxu3  ;;  %v3293_v32 = vpop.f32.mrf.mxu1  ;;  %v2965_v17 = vadd.f32 %v2964_v50, %v8137_v40  ;;  %v5495_v40 = vld [vmem:[%s8714_s1 + $0x700] sm:$0xf] }
 0x3a4   : > { %v1283_v50 = vpop.permute.xlu1 %1282 }
 0x3a5   : > { %3003 = vmatmul.bf16.gmra.mxu0 %v5480_v15  ;;  %v3294_v54 = vadd.f32 %v3293_v32, %v2965_v17  ;;  %v2957_v15 = vadd.f32 %v8198_v29, %v8029_v48  ;;  %v2952_v17 = vadd.f32 %v8146_v21, %v8026_v46  ;;  %v5503_v32 = vld [vmem:[%s8714_s1 + $0x708] sm:$0xf]  ;;  %v5916_v48 = vld [vmem:[%s8714_s1 + $0x714] sm:$0xf0]  ;;  %v3289_v29 = vadd.f32 %v3288_v14, %v2960_v30  ;;  %v5497_v46 = vld [vmem:[%s8714_s1 + $0x710] sm:$0xf0] }
 0x3a6   : > { %3332 = vmatmul.bf16.gmra.mxu1 %v5484_v52  ;;  %v3291_v52 = vadd.f32 %v3290_v41, %v2962_v12  ;;  %v5914_v21 = vld [vmem:[%s8714_s1 + $0x70c] sm:$0xf]  ;;  %v5505_v41 = vld [vmem:[%s8714_s1 + $0x718] sm:$0xf0] }
 0x3a7   : > { %3661 = vmatmul.bf16.gmra.mxu2 %v5488_v10  ;;  %v3286_v10 = vadd.f32 %v8202_v24, %v2957_v15  ;;  %v5508_v6 = vor.u32 %v5914_v21, %v5505_v41  ;;  %v5917_v21 = vld [vmem:[%s8714_s1 + $0x724] sm:$0xf] }
 0x3a8   : > { %3990 = vmatmul.bf16.gmra.mxu3 %v5492_v62  ;;  %v3620_v22 = vadd.f32 %v3619_v25, %v3291_v52 }
 0x3a9   : > { %v3615_v18 = vadd.f32 %v8232_v16, %v3286_v10  ;;  %v5918_v10 = vld [vmem:[%s8714_s1 + $0x72c] sm:$0xf] }
 0x3aa   : > { %v3622_v34 = vpop.f32.mrf.mxu2  ;;  %v2966_v42 = vpop.f32.mrf.mxu0  ;;  %v3949_v49 = vadd.f32 %v3948_v47, %v3620_v22 }
 0x3ab   : > { %v3951_v61 = vpop.f32.mrf.mxu3  ;;  %v2967_v13 = vadd.f32 %v2966_v42, %v8069_v27  ;;  %v3295_v43 = vpop.f32.mrf.mxu1  ;;  %v3623_v62 = vadd.f32 %v3622_v34, %v3294_v54  ;;  %v5913_v27 = vld [vmem:[%s8714_s1 + $0x704] sm:$0xf]  ;;  %v2955_v34 = vadd.f32 %v8184_v55, %v8074_v7  ;;  %v5496_v7 = vor.u32 %v5915_v1, %v5495_v40 }
 0x3ac   : > { %v3618_v55 = vadd.f32 %v3617_v45, %v3289_v29  ;;  %v5504_v54 = vor.u32 %v5916_v48, %v5503_v32  ;;  %v5500_v52 = vor.u32 %v5913_v27, %v5497_v46  ;;  %v8321_v1 = vpop.permute.xlu0 %1307  ;;  %v4129_v16 = vmax.f32 %v3949_v49, 0.0  ;;  %v5920_v46 = vld [vmem:[%s8714_s1 + $0x734] sm:$0xf0] }
 0x3ad   : > { %v3296_v56 = vadd.f32 %v3295_v43, %v2967_v13  ;;  %v3952_v14 = vadd.f32 %v3951_v61, %v3623_v62  ;;  %v3281_v13 = vadd.f32 %v8152_v57, %v2952_v17  ;;  %v3284_v23 = vadd.f32 %v8188_v2, %v2955_v34  ;;  %v1288_v17 = vpop.permute.xlu2 %1287 }
 0x3ae   : > { %v3947_v62 = vadd.f32 %v8240_v5, %v3618_v55  ;;  %v3944_v2 = vadd.f32 %v8234_v37, %v3615_v18  ;;  %v5519_v18 = vld [vmem:[%s8714_s1 + $0x728] sm:$0xf] }
 0x3af   : > { %v3610_v15 = vadd.f32 %v8182_v44, %v3281_v13  ;;  %v3613_v61 = vadd.f32 %v8196_v33, %v3284_v23  ;;  %v4130_v40 = vmax.f32 %v3952_v14, 0.0  ;;  %v5520_v13 = vor.u32 %v5920_v46, %v5519_v18 }
 0x3b0   : > { %v4128_v33 = vmax.f32 %v3947_v62, 0.0  ;;  %v4127_v34 = vmax.f32 %v3944_v2, 0.0 }
 0x3b1   : > { %v3939_v44 = vadd.f32 %v8186_v59, %v3610_v15  ;;  %v3942_v48 = vadd.f32 %v8200_v38, %v3613_v61  ;;  %v5511_v59 = vld [vmem:[%s8714_s1 + $0x720] sm:$0xf]  ;;  %v5919_v38 = vld [vmem:[%s8714_s1 + $0x72c] sm:$0xf0] }
 0x3b2   : > { %v3624_v12 = vpop.f32.mrf.mxu2  ;;  %v2969_v42 = vpop.f32.mrf.mxu0  ;;  %v5512_v14 = vor.u32 %v5919_v38, %v5511_v59 }
 0x3b3   : > { %v3625_v25 = vadd.f32 %v3624_v12, %v3296_v56  ;;  %v3953_v30 = vpop.f32.mrf.mxu3  ;;  %v2970_v43 = vadd.f32 %v2969_v42, %v1283_v50  ;;  %v3298_v24 = vpop.f32.mrf.mxu1  ;;  %v4125_v37 = vmax.f32 %v3939_v44, 0.0  ;;  %v4126_v49 = vmax.f32 %v3942_v48, 0.0  ;;  %v5513_v50 = vld [vmem:[%s8714_s1 + $0x730] sm:$0xf0]  ;;  %v5521_v12 = vld [vmem:[%s8714_s1 + $0x738] sm:$0xf0] }
 0x3b5   : > { %v3954_v53 = vadd.f32 %v3953_v30, %v3625_v25  ;;  %v3299_v45 = vadd.f32 %v3298_v24, %v2970_v43  ;;  %3008 = vmatmul.bf16.gmra.mxu0 %v5496_v7  ;;  %v4225_v41 = vpack.c.bf16 %v4127_v34, %v4126_v49  ;;  %v1293_v7 = vpop.permute.xlu0 %1292  ;;  %v4124_v25 = vmax.f32 %v8150_v8, 0.0  ;;  %v5537_v34 = vld [vmem:[%s8714_s1 + $0x758] sm:$0xf0] }
 0x3b6   : > { %3337 = vmatmul.bf16.gmra.mxu1 %v5500_v52  ;;  %v5516_v52 = vor.u32 %v5917_v21, %v5513_v50  ;;  %v5524_v24 = vor.u32 %v5918_v10, %v5521_v12 }
 0x3b7   : > { %v4131_v57 = vmax.f32 %v3954_v53, 0.0  ;;  %3666 = vmatmul.bf16.gmra.mxu2 %v5504_v54  ;;  %v4224_v61 = vpack.c.bf16 %v4125_v37, %v4124_v25 }
 0x3b8   : > { %3995 = vmatmul.bf16.gmra.mxu3 %v5508_v6  ;;  %v4226_v6 = vpack.c.bf16 %v4129_v16, %v4128_v33 }
 0x3b9   : > { %v4227_v47 = vpack.c.bf16 %v4131_v57, %v4130_v40 }
 0x3ba   : > { %v3627_v32 = vpop.f32.mrf.mxu2  ;;  %v2971_v5 = vpop.f32.mrf.mxu0 }
 0x3bb   : > { %v3628_v23 = vadd.f32 %v3627_v32, %v3299_v45  ;;  %4443 = vmatpush.bf16.msra.mxu1 %v4227_v47  ;;  %v3956_v53 = vpop.f32.mrf.mxu3  ;;  %v2972_v27 = vadd.f32 %v2971_v5, %v1288_v17  ;;  %v3300_v22 = vpop.f32.mrf.mxu1  ;;  %v5923_v5 = vld [vmem:[%s8714_s1 + $0x74c] sm:$0xf0] }
 0x3bd   : > { %v3957_v29 = vadd.f32 %v3956_v53, %v3628_v23  ;;  %v3301_v56 = vadd.f32 %v3300_v22, %v2972_v27  ;;  %v5527_v23 = vld [vmem:[%s8714_s1 + $0x740] sm:$0xf]  ;;  %v5529_v53 = vld [vmem:[%s8714_s1 + $0x750] sm:$0xf0]  ;;  %v5922_v27 = vld [vmem:[%s8714_s1 + $0x74c] sm:$0xf] }
 0x3be   : > { %v5528_v22 = vor.u32 %v5923_v5, %v5527_v23  ;;  %v5540_v18 = vor.u32 %v5922_v27, %v5537_v34 }
 0x3bf   : > { %4444 = vmatpush.bf16.msra.mxu1 %v4226_v6  ;;  %v4132_v40 = vmax.f32 %v3957_v29, 0.0 }
 0x3c2   : > { %v3629_v55 = vpop.f32.mrf.mxu2  ;;  %v2974_v30 = vpop.f32.mrf.mxu0 }
 0x3c3   : > { %v3630_v42 = vadd.f32 %v3629_v55, %v3301_v56  ;;  %4445 = vmatpush.bf16.msra.mxu1 %v4225_v41  ;;  %v3958_v54 = vpop.f32.mrf.mxu3  ;;  %v2975_v43 = vadd.f32 %v2974_v30, %v1293_v7  ;;  %v3303_v45 = vpop.f32.mrf.mxu1 }
 0x3c5   : > { %v3959_v15 = vadd.f32 %v3958_v54, %v3630_v42  ;;  %v3304_v62 = vadd.f32 %v3303_v45, %v2975_v43  ;;  %3013 = vmatmul.bf16.gmra.mxu0 %v5512_v14  ;;  %v5543_v54 = vld [vmem:[%s8714_s1 + $0x760] sm:$0xf]  ;;  %v5928_v43 = vld [vmem:[%s8714_s1 + $0x774] sm:$0xf0] }
 0x3c6   : > { %3342 = vmatmul.bf16.gmra.mxu1 %v5516_v52  ;;  %v5545_v52 = vld [vmem:[%s8714_s1 + $0x770] sm:$0xf0] }
 0x3c7   : > { %v4133_v57 = vmax.f32 %v3959_v15, 0.0  ;;  %3671 = vmatmul.bf16.gmra.mxu2 %v5520_v13  ;;  %4446 = vmatpush.bf16.msra.mxu1 %v4224_v61  ;;  %v5551_v13 = vld [vmem:[%s8714_s1 + $0x768] sm:$0xf]  ;;  %v5553_v15 = vld [vmem:[%s8714_s1 + $0x778] sm:$0xf0] }
 0x3c8   : > { %4000 = vmatmul.bf16.gmra.mxu3 %v5524_v24  ;;  %v5926_v24 = vld [vmem:[%s8714_s1 + $0x76c] sm:$0xf] }
 0x3c9   : > { %v8351_v8 = vpack.c.bf16 %v4133_v57, %v4132_v40 }
 0x3ca   : > { %v3632_v2 = vpop.f32.mrf.mxu2  ;;  %v2976_v47 = vpop.f32.mrf.mxu0 }
 0x3cb   : > { %v3633_v16 = vadd.f32 %v3632_v2, %v3304_v62  ;;  %4447 = vmatpush.bf16.msra.mxu1 %v8144_v36  ;;  %v3961_v17 = vpop.f32.mrf.mxu3  ;;  %v2977_v32 = vadd.f32 %v2976_v47, %v8274_v11  ;;  %v3305_v48 = vpop.f32.mrf.mxu1  ;;  %v5535_v36 = vld [vmem:[%s8714_s1 + $0x748] sm:$0xf]  ;;  %v5924_v11 = vld [vmem:[%s8714_s1 + $0x754] sm:$0xf0]  ;;  %v5552_v2 = vor.u32 %v5928_v43, %v5551_v13 }
 0x3cc   : > { %v5536_v49 = vor.u32 %v5924_v11, %v5535_v36 }
 0x3cd   : > { %v3962_v44 = vadd.f32 %v3961_v17, %v3633_v16  ;;  %v3306_v33 = vadd.f32 %v3305_v48, %v2977_v32  ;;  %v5556_v17 = vor.u32 %v5926_v24, %v5553_v15  ;;  %v5575_v24 = vld [vmem:[%s8714_s1 + $0x7a0] sm:$0xf]  ;;  %v5935_v15 = vld [vmem:[%s8714_s1 + $0x7ac] sm:$0xf0] }
 0x3cf   : > { %4448 = vmatpush.bf16.msra.mxu1 %v8107_v28  ;;  %v5921_v28 = vld [vmem:[%s8714_s1 + $0x744] sm:$0xf]  ;;  %v4134_v50 = vmax.f32 %v3962_v44, 0.0 }
 0x3d0   : > { %v5532_v38 = vor.u32 %v5921_v28, %v5529_v53 }
 0x3d2   : > { %v3634_v29 = vpop.f32.mrf.mxu2  ;;  %v2979_v56 = vpop.f32.mrf.mxu0 }
 0x3d3   : > { %v3635_v6 = vadd.f32 %v3634_v29, %v3306_v33  ;;  %4449 = vmatpush.bf16.msra.mxu1 %v8071_v39  ;;  %v3963_v37 = vpop.f32.mrf.mxu3  ;;  %v2980_v59 = vadd.f32 %v2979_v56, %v8242_v4  ;;  %v3308_v21 = vpop.f32.mrf.mxu1  ;;  %v5567_v56 = vld [vmem:[%s8714_s1 + $0x788] sm:$0xf] }
 0x3d5   : > { %v3964_v46 = vadd.f32 %v3963_v37, %v3635_v6  ;;  %v3309_v41 = vadd.f32 %v3308_v21, %v2980_v59  ;;  %3018 = vmatmul.bf16.gmra.mxu0 %v5528_v22  ;;  %v5559_v22 = vld [vmem:[%s8714_s1 + $0x780] sm:$0xf]  ;;  %v5931_v6 = vld [vmem:[%s8714_s1 + $0x78c] sm:$0xf0]  ;;  %v5932_v37 = vld [vmem:[%s8714_s1 + $0x794] sm:$0xf0] }
 0x3d6   : > { %3347 = vmatmul.bf16.gmra.mxu1 %v5532_v38  ;;  %v5930_v59 = vld [vmem:[%s8714_s1 + $0x78c] sm:$0xf]  ;;  %v5569_v38 = vld [vmem:[%s8714_s1 + $0x798] sm:$0xf0] }
 0x3d7   : > { %v4135_v10 = vmax.f32 %v3964_v46, 0.0  ;;  %3676 = vmatmul.bf16.gmra.mxu2 %v5536_v49  ;;  %4450 = vmatpush.bf16.msra.mxu1 %v8032_v58  ;;  %v5927_v58 = vld [vmem:[%s8714_s1 + $0x76c] sm:$0xf0]  ;;  %v5561_v49 = vld [vmem:[%s8714_s1 + $0x790] sm:$0xf0]  ;;  %v5560_v46 = vor.u32 %v5931_v6, %v5559_v22 }
 0x3d8   : > { %4005 = vmatmul.bf16.gmra.mxu3 %v5540_v18  ;;  %v5544_v61 = vor.u32 %v5927_v58, %v5543_v54  ;;  %v5937_v22 = vld [vmem:[%s8714_s1 + $0x7c4] sm:$0xf]  ;;  %v5593_v6 = vld [vmem:[%s8714_s1 + $0x7d0] sm:$0xf0] }
 0x3d9   : > { %v8383_v12 = vpack.c.bf16 %v4135_v10, %v4134_v50  ;;  %v5568_v10 = vor.u32 %v5932_v37, %v5567_v56  ;;  %v5938_v56 = vld [vmem:[%s8714_s1 + $0x7cc] sm:$0xf]  ;;  %v5601_v37 = vld [vmem:[%s8714_s1 + $0x7d8] sm:$0xf0] }
 0x3da   : > { %v3637_v39 = vpop.f32.mrf.mxu2  ;;  %v2981_v55 = vpop.f32.mrf.mxu0 }
 0x3db   : > { %v3638_v7 = vadd.f32 %v3637_v39, %v3309_v41  ;;  %v3966_v14 = vpop.f32.mrf.mxu3  ;;  %v2982_v4 = vadd.f32 %v2981_v55, %v8321_v1  ;;  %v3310_v42 = vpop.f32.mrf.mxu1  ;;  %v5925_v1 = vld [vmem:[%s8714_s1 + $0x764] sm:$0xf]  ;;  %v5572_v55 = vor.u32 %v5930_v59, %v5569_v38 }
 0x3dc   : > { %v5548_v47 = vor.u32 %v5925_v1, %v5545_v52 }
 0x3dd   : > { %v3967_v25 = vadd.f32 %v3966_v14, %v3638_v7  ;;  %v3311_v30 = vadd.f32 %v3310_v42, %v2982_v4 }
 0x3df   : > { %v4136_v33 = vmax.f32 %v3967_v25, 0.0 }
 0x3e2   : > { %v3639_v45 = vpop.f32.mrf.mxu2  ;;  %v2984_v40 = vpop.f32.mrf.mxu0 }
 0x3e3   : > { %v3640_v62 = vadd.f32 %v3639_v45, %v3311_v30  ;;  %v3968_v57 = vpop.f32.mrf.mxu3  ;;  %v2985_v16 = vadd.f32 %v2984_v40, %v8194_v9  ;;  %v3313_v44 = vpop.f32.mrf.mxu1  ;;  %v5583_v45 = vld [vmem:[%s8714_s1 + $0x7a8] sm:$0xf]  ;;  %v5577_v40 = vld [vmem:[%s8714_s1 + $0x7b0] sm:$0xf0] }
 0x3e5   : > { %v3969_v32 = vadd.f32 %v3968_v57, %v3640_v62  ;;  %v3314_v48 = vadd.f32 %v3313_v44, %v2985_v16  ;;  %3023 = vmatmul.bf16.gmra.mxu0 %v5544_v61  ;;  %v5936_v61 = vld [vmem:[%s8714_s1 + $0x7b4] sm:$0xf0]  ;;  %v5933_v62 = vld [vmem:[%s8714_s1 + $0x7a4] sm:$0xf]  ;;  %v5934_v57 = vld [vmem:[%s8714_s1 + $0x7ac] sm:$0xf] }
 0x3e6   : > { %3352 = vmatmul.bf16.gmra.mxu1 %v5548_v47  ;;  %v5576_v47 = vor.u32 %v5935_v15, %v5575_v24  ;;  %v5584_v44 = vor.u32 %v5936_v61, %v5583_v45 }
 0x3e7   : > { %v4137_v23 = vmax.f32 %v3969_v32, 0.0  ;;  %3681 = vmatmul.bf16.gmra.mxu2 %v5552_v2  ;;  %v5585_v2 = vld [vmem:[%s8714_s1 + $0x7b8] sm:$0xf0] }
 0x3e8   : > { %4010 = vmatmul.bf16.gmra.mxu3 %v5556_v17 }
 0x3e9   : > { %v8411_v5 = vpack.c.bf16 %v4137_v23, %v4136_v33  ;;  %v5588_v33 = vor.u32 %v5934_v57, %v5585_v2  ;;  %v8539_v2 = vpop.permute.xlu0 %1377 }
 0x3ea   : > { %v3642_v36 = vpop.f32.mrf.mxu2  ;;  %v2986_v28 = vpop.f32.mrf.mxu0 }
 0x3eb   : > { %v3643_v11 = vadd.f32 %v3642_v36, %v3314_v48  ;;  %v3971_v53 = vpop.f32.mrf.mxu3  ;;  %v2987_v27 = vadd.f32 %v2986_v28, %v8230_v20  ;;  %v3315_v34 = vpop.f32.mrf.mxu1  ;;  %v5929_v20 = vld [vmem:[%s8714_s1 + $0x784] sm:$0xf]  ;;  %v5580_v48 = vor.u32 %v5933_v62, %v5577_v40 }
 0x3ec   : > { %v5564_v7 = vor.u32 %v5929_v20, %v5561_v49 }
 0x3ed   : > { %v3972_v9 = vadd.f32 %v3971_v53, %v3643_v11  ;;  %v3316_v29 = vadd.f32 %v3315_v34, %v2987_v27  ;;  %v5591_v27 = vld [vmem:[%s8714_s1 + $0x7c0] sm:$0xf]  ;;  %v5599_v34 = vld [vmem:[%s8714_s1 + $0x7c8] sm:$0xf] }
 0x3ef   : > { %v4138_v42 = vmax.f32 %v3972_v9, 0.0  ;;  %v5939_v9 = vld [vmem:[%s8714_s1 + $0x7cc] sm:$0xf0] }
 0x3f0   : > { %v5592_v49 = vor.u32 %v5939_v9, %v5591_v27 }
 0x3f2   : > { %v3644_v18 = vpop.f32.mrf.mxu2  ;;  %v2989_v41 = vpop.f32.mrf.mxu0 }
 0x3f3   : > { %v3645_v21 = vadd.f32 %v3644_v18, %v3316_v29  ;;  %v3973_v50 = vpop.f32.mrf.mxu3  ;;  %v2990_v39 = vadd.f32 %v2989_v41, %v8238_v3  ;;  %v3318_v4 = vpop.f32.mrf.mxu1  ;;  %v5940_v29 = vld [vmem:[%s8714_s1 + $0x7d4] sm:$0xf0] }
 0x3f4   : > { %v5600_v18 = vor.u32 %v5940_v29, %v5599_v34 }
 0x3f5   : > { %v3974_v14 = vadd.f32 %v3973_v50, %v3645_v21  ;;  %v3319_v25 = vadd.f32 %v3318_v4, %v2990_v39  ;;  %3028 = vmatmul.bf16.gmra.mxu0 %v5560_v46  ;;  %v5596_v46 = vor.u32 %v5937_v22, %v5593_v6  ;;  %v5604_v21 = vor.u32 %v5938_v56, %v5601_v37  ;;  %v5615_v4 = vld [vmem:[%s8714_s1 + $0x7e8] sm:$0xf] }
 0x3f6   : > { %3357 = vmatmul.bf16.gmra.mxu1 %v5564_v7 }
 0x3f7   : > { %v4139_v30 = vmax.f32 %v3974_v14, 0.0  ;;  %3686 = vmatmul.bf16.gmra.mxu2 %v5568_v10  ;;  %v5943_v14 = vld [vmem:[%s8714_s1 + $0x7ec] sm:$0xf0] }
 0x3f8   : > { %4015 = vmatmul.bf16.gmra.mxu3 %v5572_v55  ;;  %v5607_v55 = vld [vmem:[%s8714_s1 + $0x7e0] sm:$0xf] }
 0x3f9   : > { %v8439_v54 = vpack.c.bf16 %v4139_v30, %v4138_v42  ;;  %v5941_v42 = vld [vmem:[%s8714_s1 + $0x7e4] sm:$0xf]  ;;  %v5609_v30 = vld [vmem:[%s8714_s1 + $0x7f0] sm:$0xf0]  ;;  %v5608_v24 = vor.u32 %v5943_v14, %v5607_v55 }
 0x3fa   : > { %v3647_v58 = vpop.f32.mrf.mxu2  ;;  %v8441_v43 = vpop.f32.mrf.mxu0  ;;  %v5612_v62 = vor.u32 %v5941_v42, %v5609_v30 }
 0x3fb   : > { %v3648_v13 = vadd.f32 %v3647_v58, %v3319_v25  ;;  %v3976_v1 = vpop.f32.mrf.mxu3  ;;  %v8445_v3 = vpop.f32.mrf.mxu1  ;;  %v5944_v25 = vld [vmem:[%s8714_s1 + $0x7f4] sm:$0xf0]  ;;  %v5942_v58 = vld [vmem:[%s8714_s1 + $0x7ec] sm:$0xf] }
 0x3fc   : > { %v5616_v61 = vor.u32 %v5944_v25, %v5615_v4 }
 0x3fd   : > { %v8443_v52 = vadd.f32 %v3976_v1, %v3648_v13  ;;  %v5617_v13 = vld [vmem:[%s8714_s1 + $0x7f8] sm:$0xf0] }
 0x3fe   : > { %v5620_v40 = vor.u32 %v5942_v58, %v5617_v13  ;;  %v2992_v58 = vadd.f32 %v8441_v43, %v8162_v26 }
 0x400   : > { %v3321_v26 = vadd.f32 %v8445_v3, %v2992_v58 }
 0x402   : > { %v8471_v16 = vpop.f32.mrf.mxu2  ;;  %v8473_v17 = vpop.f32.mrf.mxu0 }
 0x403   : > { %v8475_v32 = vpop.f32.mrf.mxu3  ;;  %v8477_v23 = vpop.f32.mrf.mxu1 }
 0x405   : > { %3033 = vmatmul.bf16.gmra.mxu0 %v5576_v47 }
 0x406   : > { %3362 = vmatmul.bf16.gmra.mxu1 %v5580_v48 }
 0x407   : > { %3691 = vmatmul.bf16.gmra.mxu2 %v5584_v44 }
 0x408   : > { %4020 = vmatmul.bf16.gmra.mxu3 %v5588_v33 }
 0x40a   : > { %v8479_v36 = vpop.f32.mrf.mxu2  ;;  %v2996_v11 = vpop.f32.mrf.mxu0 }
 0x40b   : > { %v8481_v28 = vpop.f32.mrf.mxu3  ;;  %v8483_v53 = vpop.f32.mrf.mxu1  ;;  %v2997_v6 = vadd.f32 %v2996_v11, %v8210_v0  ;;  %v2995_v0 = vadd.f32 %v8473_v17, %v8139_v31 }
 0x40d   : > { %v3326_v55 = vadd.f32 %v8483_v53, %v2997_v6 }
 0x412   : > { %v8509_v20 = vpop.f32.mrf.mxu2  ;;  %v2999_v59 = vpop.f32.mrf.mxu0 }
 0x413   : > { %v8511_v38 = vpop.f32.mrf.mxu3  ;;  %v3328_v41 = vpop.f32.mrf.mxu1  ;;  %v3000_v9 = vadd.f32 %v2999_v59, %v8082_v19  ;;  %v5631_v19 = vld [vmem:[%s8716_s3 + $0x8] sm:$0xf] }
 0x415   : > { %3038 = vmatmul.bf16.gmra.mxu0 %v5592_v49  ;;  %v5623_v49 = vld [vmem:[%s8716_s3] sm:$0xf]  ;;  %v3329_v11 = vadd.f32 %v3328_v41, %v3000_v9 }
 0x416   : > { %3367 = vmatmul.bf16.gmra.mxu1 %v5596_v46  ;;  %v5625_v46 = vld [vmem:[%s8716_s3 + $0x20] sm:$0xf0] }
 0x417   : > { %3696 = vmatmul.bf16.gmra.mxu2 %v5600_v18 }
 0x418   : > { %4025 = vmatmul.bf16.gmra.mxu3 %v5604_v21  ;;  %v5946_v21 = vld [vmem:[%s8716_s3 + $0xc] sm:$0xf] }
 0x41a   : > { %v3657_v50 = vpop.f32.mrf.mxu2  ;;  %v3001_v10 = vpop.f32.mrf.mxu0 }
 0x41b   : > { %v8513_v39 = vpop.f32.mrf.mxu3  ;;  %v3330_v7 = vpop.f32.mrf.mxu1  ;;  %v3002_v48 = vadd.f32 %v3001_v10, %v8148_v60  ;;  %v5945_v60 = vld [vmem:[%s8716_s3 + $0x4] sm:$0xf]  ;;  %v5633_v10 = vld [vmem:[%s8716_s3 + $0x28] sm:$0xf0]  ;;  %v3658_v17 = vadd.f32 %v3657_v50, %v3329_v11 }
 0x41d   : > { %v3331_v56 = vadd.f32 %v3330_v7, %v3002_v48  ;;  %v1363_v7 = vpop.permute.xlu0 %1362 }
 0x422   : > { %v3659_v1 = vpop.f32.mrf.mxu2  ;;  %v3004_v15 = vpop.f32.mrf.mxu0 }
 0x423   : > { %v3988_v45 = vpop.f32.mrf.mxu3  ;;  %v3333_v57 = vpop.f32.mrf.mxu1  ;;  %v3005_v47 = vadd.f32 %v3004_v15, %v8035_v51  ;;  %v5949_v51 = vld [vmem:[%s8716_s3 + $0x1c] sm:$0xf0]  ;;  %v3660_v59 = vadd.f32 %v3659_v1, %v3331_v56  ;;  %v5628_v1 = vor.u32 %v5945_v60, %v5625_v46  ;;  %v3324_v15 = vadd.f32 %v8477_v23, %v2995_v0  ;;  %v5953_v60 = vld [vmem:[%s8716_s3 + $0x44] sm:$0xf]  ;;  %v5954_v46 = vld [vmem:[%s8716_s3 + $0x4c] sm:$0xf] }
 0x424   : > { %v5624_v31 = vor.u32 %v5949_v51, %v5623_v49  ;;  %v5657_v0 = vld [vmem:[%s8716_s3 + $0x60] sm:$0xf0] }
 0x425   : > { %3043 = vmatmul.bf16.gmra.mxu0 %v5608_v24  ;;  %v3334_v34 = vadd.f32 %v3333_v57, %v3005_v47  ;;  %v5636_v24 = vor.u32 %v5946_v21, %v5633_v10  ;;  %v3653_v50 = vadd.f32 %v8479_v36, %v3324_v15  ;;  %v3987_v47 = vadd.f32 %v8513_v39, %v3658_v17  ;;  %v5665_v21 = vld [vmem:[%s8716_s3 + $0x68] sm:$0xf0] }
 0x426   : > { %3372 = vmatmul.bf16.gmra.mxu1 %v5612_v62  ;;  %v3989_v62 = vadd.f32 %v3988_v45, %v3660_v59  ;;  %v1368_v45 = vpop.permute.xlu1 %1367 }
 0x427   : > { %3701 = vmatmul.bf16.gmra.mxu2 %v5616_v61  ;;  %v3655_v61 = vadd.f32 %v8509_v20, %v3326_v55  ;;  %v3982_v9 = vadd.f32 %v8481_v28, %v3653_v50  ;;  %v4144_v36 = vmax.f32 %v3987_v47, 0.0  ;;  %v5957_v28 = vld [vmem:[%s8716_s3 + $0x5c] sm:$0xf0]  ;;  %v5639_v50 = vld [vmem:[%s8716_s3 + $0x10] sm:$0xf] }
 0x428   : > { %4030 = vmatmul.bf16.gmra.mxu3 %v5620_v40  ;;  %v4145_v23 = vmax.f32 %v3989_v62, 0.0  ;;  %v5951_v47 = vld [vmem:[%s8716_s3 + $0x2c] sm:$0xf0] }
 0x429   : > { %v3984_v43 = vadd.f32 %v8511_v38, %v3655_v61  ;;  %v4142_v51 = vmax.f32 %v3982_v9, 0.0 }
 0x42a   : > { %v3662_v44 = vpop.f32.mrf.mxu2  ;;  %v3006_v33 = vpop.f32.mrf.mxu0 }
 0x42b   : > { %v3991_v27 = vpop.f32.mrf.mxu3  ;;  %v3007_v29 = vadd.f32 %v3006_v33, %v8105_v63  ;;  %v3335_v22 = vpop.f32.mrf.mxu1  ;;  %v3663_v37 = vadd.f32 %v3662_v44, %v3334_v34  ;;  %v5950_v63 = vld [vmem:[%s8716_s3 + $0x24] sm:$0xf0]  ;;  %v3650_v33 = vadd.f32 %v8471_v16, %v3321_v26  ;;  %v4143_v6 = vmax.f32 %v3984_v43, 0.0  ;;  %v5655_v16 = vld [vmem:[%s8716_s3 + $0x40] sm:$0xf] }
 0x42c   : > { %v5632_v30 = vor.u32 %v5950_v63, %v5631_v19  ;;  %v5663_v19 = vld [vmem:[%s8716_s3 + $0x48] sm:$0xf] }
 0x42d   : > { %v3336_v18 = vadd.f32 %v3335_v22, %v3007_v29  ;;  %v3992_v41 = vadd.f32 %v3991_v27, %v3663_v37  ;;  %v4234_v37 = vpack.c.bf16 %v4145_v23, %v4144_v36  ;;  %v3979_v38 = vadd.f32 %v8475_v32, %v3650_v33  ;;  %v5958_v63 = vld [vmem:[%s8716_s3 + $0x64] sm:$0xf0] }
 0x42e   : > { %v4233_v32 = vpack.c.bf16 %v4143_v6, %v4142_v51 }
 0x42f   : > { %v4146_v44 = vmax.f32 %v3992_v41, 0.0  ;;  %v4141_v11 = vmax.f32 %v3979_v38, 0.0  ;;  %v5660_v41 = vor.u32 %v5953_v60, %v5657_v0  ;;  %v8732_v38 = vld [vmem:[#allocation12_spill] sm:$0xff] }
 0x432   : > { %v3664_v14 = vpop.f32.mrf.mxu2  ;;  %v3009_v25 = vpop.f32.mrf.mxu0 }
 0x433   : > { %v3665_v4 = vadd.f32 %v3664_v14, %v3336_v18  ;;  %v3993_v42 = vpop.f32.mrf.mxu3  ;;  %v3010_v13 = vadd.f32 %v3009_v25, %v1363_v7  ;;  %v3338_v40 = vpop.f32.mrf.mxu1  ;;  %v5656_v18 = vor.u32 %v5957_v28, %v5655_v16  ;;  %v5664_v14 = vor.u32 %v5958_v63, %v5663_v19  ;;  %v5671_v19 = vld [vmem:[%s8716_s3 + $0x50] sm:$0xf]  ;;  %v5955_v63 = vld [vmem:[%s8716_s3 + $0x54] sm:$0xf] }
 0x435   : > { %v3994_v53 = vadd.f32 %v3993_v42, %v3665_v4  ;;  %v3339_v57 = vadd.f32 %v3338_v40, %v3010_v13  ;;  %4356 = vmatmul.bf16.vlgmr.msrb.gmra.mxu0 %v5624_v31  ;;  %v4140_v31 = vmax.f32 %v8443_v52, 0.0  ;;  %v5668_v42 = vor.u32 %v5954_v46, %v5665_v21  ;;  %v8733_v46 = vld [vmem:[#allocation13_spill] sm:$0xff] }
 0x436   : > { %4375 = vmatmul.bf16.vlgmr.msrb.gmra.mxu1 %v5628_v1 }
 0x437   : > { %v4147_v48 = vmax.f32 %v3994_v53, 0.0  ;;  %4394 = vmatmul.bf16.vlgmr.msrb.gmra.mxu2 %v5632_v30  ;;  %v4232_v58 = vpack.c.bf16 %v4141_v11, %v4140_v31 }
 0x438   : > { %4413 = vmatmul.bf16.vlgmr.msrb.gmra.mxu3 %v5636_v24 }
 0x439   : > { %v4235_v20 = vpack.c.bf16 %v4147_v48, %v4146_v44  ;;  %v5947_v44 = vld [vmem:[%s8716_s3 + $0x14] sm:$0xf]  ;;  %v5640_v48 = vor.u32 %v5951_v47, %v5639_v50 }
 0x43a   : > { %v3667_v27 = vpop.f32.mrf.mxu2  ;;  %v3011_v39 = vpop.f32.mrf.mxu0  ;;  %v8735_v47 = vld [vmem:[#allocation8_spill] sm:$0xff] }
 0x43b   : > { %v3668_v34 = vadd.f32 %v3667_v27, %v3339_v57  ;;  %4462 = vmatpush.bf16.msra.mxu2 %v4235_v20  ;;  %v3996_v29 = vpop.f32.mrf.mxu3  ;;  %v3012_v22 = vadd.f32 %v3011_v39, %v1368_v45  ;;  %v3340_v56 = vpop.f32.mrf.mxu1  ;;  %v8731_v20 = vld [vmem:[#allocation10_spill] sm:$0xff]  ;;  %v5952_v27 = vld [vmem:[%s8716_s3 + $0x34] sm:$0xf0] }
 0x43d   : > { %v3997_v3 = vadd.f32 %v3996_v29, %v3668_v34  ;;  %v3341_v49 = vadd.f32 %v3340_v56, %v3012_v22 }
 0x43f   : > { %4463 = vmatpush.bf16.msra.mxu2 %v4234_v37  ;;  %v4148_v13 = vmax.f32 %v3997_v3, 0.0 }
 0x442   : > { %v3669_v59 = vpop.f32.mrf.mxu2  ;;  %v3014_v7 = vpop.f32.mrf.mxu0 }
 0x443   : > { %v3670_v10 = vadd.f32 %v3669_v59, %v3341_v49  ;;  %4464 = vmatpush.bf16.msra.mxu2 %v4233_v32  ;;  %v3998_v55 = vpop.f32.mrf.mxu3  ;;  %v3015_v17 = vadd.f32 %v3014_v7, %v8290_v35  ;;  %v3343_v25 = vpop.f32.mrf.mxu1  ;;  %v5673_v32 = vld [vmem:[%s8716_s3 + $0x70] sm:$0xf0]  ;;  %v5679_v7 = vld [vmem:[%s8716_s3 + $0x58] sm:$0xf] }
 0x445   : > { %v3999_v4 = vadd.f32 %v3998_v55, %v3670_v10  ;;  %v3344_v30 = vadd.f32 %v3343_v25, %v3015_v17  ;;  %4361 = vmatmul.bf16.gmra.mxu0 %v5656_v18  ;;  %v5676_v10 = vor.u32 %v5955_v63, %v5673_v32  ;;  %v5960_v55 = vld [vmem:[%s8716_s3 + $0x74] sm:$0xf0] }
 0x446   : > { %4380 = vmatmul.bf16.gmra.mxu1 %v5660_v41  ;;  %v5680_v25 = vor.u32 %v5960_v55, %v5679_v7  ;;  %v8738_v55 = vld [vmem:[#allocation4_spill] sm:$0xff] }
 0x447   : > { %v4149_v1 = vmax.f32 %v3999_v4, 0.0  ;;  %4399 = vmatmul.bf16.gmra.mxu2 %v5664_v14 }
 0x448   : > { %4465 = vmatpush.bf16.msra.mxu2 %v4232_v58  ;;  %4418 = vmatmul.bf16.gmra.mxu3 %v5668_v42 }
 0x449   : > { %v8610_v24 = vpack.c.bf16 %v4149_v1, %v4148_v13 }
 0x44a   : > { %v3672_v15 = vpop.f32.mrf.mxu2  ;;  %v3016_v52 = vpop.f32.mrf.mxu0 }
 0x44b   : > { %v3673_v61 = vadd.f32 %v3672_v15, %v3344_v30  ;;  %v4001_v62 = vpop.f32.mrf.mxu3  ;;  %v3017_v35 = vadd.f32 %v3016_v52, %v8539_v2  ;;  %v3345_v40 = vpop.f32.mrf.mxu1  ;;  %v8734_v15 = vld [vmem:[#allocation9_spill] sm:$0xff] }
 0x44c   : > { %4466 = vmatpush.bf16.msra.mxu2 %v8439_v54  ;;  %v5641_v54 = vld [vmem:[%s8716_s3 + $0x30] sm:$0xf0] }
 0x44d   : > { %v4002_v53 = vadd.f32 %v4001_v62, %v3673_v61  ;;  %v3346_v57 = vadd.f32 %v3345_v40, %v3017_v35  ;;  %v5644_v33 = vor.u32 %v5947_v44, %v5641_v54 }
 0x44f   : > { %v4150_v39 = vmax.f32 %v4002_v53, 0.0 }
 0x450   : > { %4467 = vmatpush.bf16.msra.mxu2 %v8411_v5  ;;  %v5647_v5 = vld [vmem:[%s8716_s3 + $0x18] sm:$0xf] }
 0x451   : > { %v5648_v22 = vor.u32 %v5952_v27, %v5647_v5 }
 0x452   : > { %v3674_v2 = vpop.f32.mrf.mxu2  ;;  %v3019_v43 = vpop.f32.mrf.mxu0 }
 0x453   : > { %v3675_v26 = vadd.f32 %v3674_v2, %v3346_v57  ;;  %v4003_v23 = vpop.f32.mrf.mxu3  ;;  %v3020_v45 = vadd.f32 %v3019_v43, %v8731_v20  ;;  %v3348_v36 = vpop.f32.mrf.mxu1 }
 0x454   : > { %4468 = vmatpush.bf16.msra.mxu2 %v8383_v12 }
 0x455   : > { %v4004_v9 = vadd.f32 %v4003_v23, %v3675_v26  ;;  %v3349_v34 = vadd.f32 %v3348_v36, %v3020_v45  ;;  %4432 = vmatmul.bf16.vlgmr.msra.gmra.mxu0 %v5640_v48 }
 0x456   : > { %4451 = vmatmul.bf16.vlgmr.msra.gmra.mxu1 %v5644_v33 }
 0x457   : > { %v4151_v29 = vmax.f32 %v4004_v9, 0.0 }
 0x458   : > { %4469 = vmatpush.bf16.msra.mxu2 %v8351_v8  ;;  %v5959_v8 = vld [vmem:[%s8716_s3 + $0x6c] sm:$0xf0] }
 0x459   : > { %v8636_v12 = vpack.c.bf16 %v4151_v29, %v4150_v39  ;;  %v5672_v0 = vor.u32 %v5959_v8, %v5671_v19 }
 0x45a   : > { %v3677_v6 = vpop.f32.mrf.mxu2  ;;  %v3021_v56 = vpop.f32.mrf.mxu0 }
 0x45b   : > { %v3678_v3 = vadd.f32 %v3677_v6, %v3349_v34  ;;  %4470 = vmatmul.bf16.vlgmr.msra.gmra.mxu2 %v5648_v22  ;;  %v4006_v37 = vpop.f32.mrf.mxu3  ;;  %v3022_v49 = vadd.f32 %v3021_v56, %v8732_v38  ;;  %v3350_v16 = vpop.f32.mrf.mxu1 }
 0x45d   : > { %v4007_v51 = vadd.f32 %v4006_v37, %v3678_v3  ;;  %v3351_v28 = vadd.f32 %v3350_v16, %v3022_v49 }
 0x45f   : > { %v4152_v41 = vmax.f32 %v4007_v51, 0.0 }
 0x462   : > { %v3679_v60 = vpop.f32.mrf.mxu2  ;;  %v3024_v59 = vpop.f32.mrf.mxu0 }
 0x463   : > { %v3680_v11 = vadd.f32 %v3679_v60, %v3351_v28  ;;  %v4008_v18 = vpop.f32.mrf.mxu3  ;;  %v3025_v21 = vadd.f32 %v3024_v59, %v8733_v46  ;;  %v3353_v31 = vpop.f32.mrf.mxu1  ;;  %v8737_v46 = vld [vmem:[#allocation5_spill] sm:$0xff] }
 0x465   : > { %v4009_v14 = vadd.f32 %v4008_v18, %v3680_v11  ;;  %v3354_v17 = vadd.f32 %v3353_v31, %v3025_v21  ;;  %4437 = vmatmul.bf16.gmra.mxu0 %v5672_v0  ;;  %v8736_v11 = vld [vmem:[#allocation2_spill] sm:$0xff] }
 0x466   : > { %4456 = vmatmul.bf16.gmra.mxu1 %v5676_v10 }
 0x467   : > { %v4153_v4 = vmax.f32 %v4009_v14, 0.0 }
 0x469   : > { %v8658_v42 = vpack.c.bf16 %v4153_v4, %v4152_v41  ;;  %v8740_v4 = vld [vmem:[#allocation7_spill] sm:$0xff] }
 0x46a   : > { %v3682_v30 = vpop.f32.mrf.mxu2  ;;  %v3026_v13 = vpop.f32.mrf.mxu0 }
 0x46b   : > { %v3683_v58 = vadd.f32 %v3682_v30, %v3354_v17  ;;  %4475 = vmatmul.bf16.gmra.mxu2 %v5680_v25  ;;  %v4011_v1 = vpop.f32.mrf.mxu3  ;;  %v3027_v61 = vadd.f32 %v3026_v13, %v8734_v15  ;;  %v3355_v62 = vpop.f32.mrf.mxu1  ;;  %v8739_v17 = vld [vmem:[#allocation3_spill] sm:$0xff] }
 0x46d   : > { %v4012_v52 = vadd.f32 %v4011_v1, %v3683_v58  ;;  %v3356_v35 = vadd.f32 %v3355_v62, %v3027_v61  ;;  %v8741_v1 = vld [vmem:[#allocation6_spill] sm:$0xff] }
 0x46f   : > { %v4154_v26 = vmax.f32 %v4012_v52, 0.0 }
 0x472   : > { %v3684_v53 = vpop.f32.mrf.mxu2  ;;  %v3029_v57 = vpop.f32.mrf.mxu0 }
 0x473   : > { %v3685_v40 = vadd.f32 %v3684_v53, %v3356_v35  ;;  %v4013_v50 = vpop.f32.mrf.mxu3  ;;  %v3030_v44 = vadd.f32 %v3029_v57, %v8735_v47  ;;  %v3358_v2 = vpop.f32.mrf.mxu1  ;;  %v8742_v35 = vld [vmem:[#allocation11_spill] sm:$0xff] }
 0x475   : > { %v4014_v54 = vadd.f32 %v4013_v50, %v3685_v40  ;;  %v3359_v48 = vadd.f32 %v3358_v2, %v3030_v44 }
 0x477   : > { %v4155_v43 = vmax.f32 %v4014_v54, 0.0 }
 0x479   : > { %v8662_v23 = vpack.c.bf16 %v4155_v43, %v4154_v26 }
 0x47a   : > { %v3687_v20 = vpop.f32.mrf.mxu2  ;;  %v3031_v33 = vpop.f32.mrf.mxu0 }
 0x47b   : > { %v3688_v45 = vadd.f32 %v3687_v20, %v3359_v48  ;;  %v4016_v5 = vpop.f32.mrf.mxu3  ;;  %v3360_v9 = vpop.f32.mrf.mxu1  ;;  %v3032_v53 = vadd.f32 %v3031_v33, %v8742_v35 }
 0x47d   : > { %v8664_v27 = vadd.f32 %v4016_v5, %v3688_v45  ;;  %v3361_v20 = vadd.f32 %v3360_v9, %v3032_v53 }
 0x47f   : > { %v4156_v9 = vmax.f32 %v8664_v27, 0.0 }
 0x482   : > { %v3689_v36 = vpop.f32.mrf.mxu2  ;;  %v3034_v34 = vpop.f32.mrf.mxu0 }
 0x483   : > { %v4018_v39 = vpop.f32.mrf.mxu3  ;;  %v3363_v29 = vpop.f32.mrf.mxu1  ;;  %v3035_v15 = vadd.f32 %v3034_v34, %v8741_v1 }
 0x485   : > { %v3364_v2 = vadd.f32 %v3363_v29, %v3035_v15 }
 0x48a   : > { %v3692_v22 = vpop.f32.mrf.mxu2  ;;  %v3036_v6 = vpop.f32.mrf.mxu0 }
 0x48b   : > { %v4021_v3 = vpop.f32.mrf.mxu3  ;;  %v3365_v56 = vpop.f32.mrf.mxu1  ;;  %v3037_v25 = vadd.f32 %v3036_v6, %v8740_v4  ;;  %v3693_v45 = vadd.f32 %v3692_v22, %v3364_v2 }
 0x48d   : > { %v3366_v57 = vadd.f32 %v3365_v56, %v3037_v25  ;;  %v4022_v33 = vadd.f32 %v4021_v3, %v3693_v45 }
 0x492   : > { %v3694_v37 = vpop.f32.mrf.mxu2  ;;  %v3039_v38 = vpop.f32.mrf.mxu0 }
 0x493   : > { %v4023_v49 = vpop.f32.mrf.mxu3  ;;  %v3368_v51 = vpop.f32.mrf.mxu1  ;;  %v3040_v14 = vadd.f32 %v3039_v38, %v8738_v55  ;;  %v3695_v48 = vadd.f32 %v3694_v37, %v3366_v57  ;;  %v3690_v38 = vadd.f32 %v3689_v36, %v3361_v20  ;;  %v5948_v36 = vld [vmem:[%s8716_s3 + $0x1c] sm:$0xf] }
 0x494   : > { %v4261_v57 = vpop.permute.xlu1 %4260 }
 0x495   : > { %v3369_v61 = vadd.f32 %v3368_v51, %v3040_v14  ;;  %v4024_v51 = vadd.f32 %v4023_v49, %v3695_v48  ;;  %v4019_v56 = vadd.f32 %v4018_v39, %v3690_v38  ;;  %v5649_v39 = vld [vmem:[%s8716_s3 + $0x38] sm:$0xf0]  ;;  %v4251_v14 = vpop.permute.xlu2 %4250 }
 0x496   : > { %v5652_v3 = vor.u32 %v5948_v36, %v5649_v39 }
 0x497   : > { %v4157_v29 = vmax.f32 %v4019_v56, 0.0 }
 0x499   : > { %v4240_v22 = vpack.c.bf16 %v4157_v29, %v4156_v9 }
 0x49a   : > { %v3697_v16 = vpop.f32.mrf.mxu2  ;;  %v3041_v28 = vpop.f32.mrf.mxu0 }
 0x49b   : > { %v4026_v19 = vpop.f32.mrf.mxu3  ;;  %v3370_v8 = vpop.f32.mrf.mxu1  ;;  %v3042_v21 = vadd.f32 %v3041_v28, %v8737_v46  ;;  %v3698_v50 = vadd.f32 %v3697_v16, %v3369_v61  ;;  %v4159_v16 = vmax.f32 %v4024_v51, 0.0 }
 0x49d   : > { %v3371_v30 = vadd.f32 %v3370_v8, %v3042_v21  ;;  %v4027_v5 = vadd.f32 %v4026_v19, %v3698_v50 }
 0x4a2   : > { %v3699_v63 = vpop.f32.mrf.mxu2  ;;  %v3044_v32 = vpop.f32.mrf.mxu0 }
 0x4a3   : > { %v4028_v60 = vpop.f32.mrf.mxu3  ;;  %v3373_v0 = vpop.f32.mrf.mxu1  ;;  %v3045_v59 = vadd.f32 %v3044_v32, %v8736_v11  ;;  %v3700_v52 = vadd.f32 %v3699_v63, %v3371_v30  ;;  %v4160_v63 = vmax.f32 %v4027_v5, 0.0 }
 0x4a5   : > { %v3374_v31 = vadd.f32 %v3373_v0, %v3045_v59  ;;  %v4029_v26 = vadd.f32 %v4028_v60, %v3700_v52  ;;  %v4158_v0 = vmax.f32 %v4022_v33, 0.0 }
 0x4a7   : > { %v4161_v28 = vmax.f32 %v4029_v26, 0.0  ;;  %v4241_v37 = vpack.c.bf16 %v4159_v16, %v4158_v0 }
 0x4a9   : > { %v4242_v32 = vpack.c.bf16 %v4161_v28, %v4160_v63 }
 0x4aa   : > { %v3702_v18 = vpop.f32.mrf.mxu2  ;;  %v3046_v10 = vpop.f32.mrf.mxu0 }
 0x4ab   : > { %v4031_v7 = vpop.f32.mrf.mxu3  ;;  %v3047_v41 = vadd.f32 %v3046_v10, %v8739_v17  ;;  %v3703_v58 = vadd.f32 %v3702_v18, %v3374_v31  ;;  %v3375_v13 = vpop.f32.mrf.mxu1 }
 0x4ad   : > { %v3376_v62 = vadd.f32 %v3375_v13, %v3047_v41  ;;  %v4032_v47 = vadd.f32 %v4031_v7, %v3703_v58  ;;  %v4256_v58 = vpop.permute.xlu0 %4255 }
 0x4af   : > { %v4162_v6 = vmax.f32 %v4032_v47, 0.0 }
 0x4b2   : > { %v3704_v40 = vpop.f32.mrf.mxu2  ;;  %v4357_v27 = vpop.f32.mrf.mxu0 }
 0x4b3   : > { %v3705_v44 = vadd.f32 %v3704_v40, %v3376_v62  ;;  %v4033_v54 = vpop.f32.mrf.mxu3  ;;  %v4376_v49 = vpop.f32.mrf.mxu1  ;;  %v4358_v31 = vadd.f32 %v4357_v27, %v4251_v14 }
 0x4b5   : > { %v4034_v43 = vadd.f32 %v4033_v54, %v3705_v44  ;;  %v4377_v25 = vadd.f32 %v4376_v49, %v4358_v31 }
 0x4b7   : > { %v4163_v34 = vmax.f32 %v4034_v43, 0.0 }
 0x4b9   : > { %v4243_v8 = vpack.c.bf16 %v4163_v34, %v4162_v6  ;;  %v4266_v6 = vpop.permute.xlu2 %4265 }
 0x4ba   : > { %v4395_v19 = vpop.f32.mrf.mxu2  ;;  %v4359_v60 = vpop.f32.mrf.mxu0 }
 0x4bb   : > { %4481 = vmatpush.bf16.msra.mxu3 %v4243_v8  ;;  %v4378_v11 = vpop.f32.mrf.mxu1  ;;  %v4414_v59 = vpop.f32.mrf.mxu3  ;;  %v4396_v30 = vadd.f32 %v4395_v19, %v4377_v25  ;;  %v4360_v1 = vadd.f32 %v4359_v60, %v4256_v58 }
 0x4bd   : > { %v4415_v61 = vadd.f32 %v4414_v59, %v4396_v30  ;;  %v4379_v62 = vadd.f32 %v4378_v11, %v4360_v1 }
 0x4bf   : > { %4482 = vmatpush.bf16.msra.mxu3 %v4242_v32 }
 0x4c2   : > { %v4397_v18 = vpop.f32.mrf.mxu2  ;;  %v4362_v46 = vpop.f32.mrf.mxu0 }
 0x4c3   : > { %4483 = vmatpush.bf16.msra.mxu3 %v4241_v37  ;;  %v4416_v21 = vpop.f32.mrf.mxu3  ;;  %v4398_v40 = vadd.f32 %v4397_v18, %v4379_v62  ;;  %v4363_v50 = vadd.f32 %v4362_v46, %v4261_v57 }
 0x4c5   : > { %v4417_v54 = vadd.f32 %v4416_v21, %v4398_v40 }
 0x4c7   : > { %4484 = vmatpush.bf16.msra.mxu3 %v4240_v22 }
 0x4ca   : > { %v4400_v10 = vpop.f32.mrf.mxu2  ;;  %v4364_v7 = vpop.f32.mrf.mxu0 }
 0x4cb   : > { %4485 = vmatpush.bf16.msra.mxu3 %v8662_v23  ;;  %v5956_v23 = vld [vmem:[%s8716_s3 + $0x5c] sm:$0xf]  ;;  %v4419_v17 = vpop.f32.mrf.mxu3  ;;  %v4365_v38 = vadd.f32 %v4364_v7, %v4266_v6 }
 0x4cf   : > { %4486 = vmatpush.bf16.msra.mxu3 %v8658_v42 }
 0x4d2   : > { %v4402_v41 = vpop.f32.mrf.mxu2  ;;  %v4433_v4 = vpop.f32.mrf.mxu0 }
 0x4d3   : > { %4487 = vmatpush.bf16.msra.mxu3 %v8636_v12  ;;  %v5681_v12 = vld [vmem:[%s8716_s3 + $0x78] sm:$0xf0]  ;;  %v4421_v52 = vpop.f32.mrf.mxu3  ;;  %v4434_v35 = vadd.f32 %v4433_v4, %v4415_v61 }
 0x4d4   : > { %v5684_v42 = vor.u32 %v5956_v23, %v5681_v12 }
 0x4d7   : > { %4488 = vmatpush.bf16.msra.mxu3 %v8610_v24  ;;  %v4381_v24 = vpop.f32.mrf.mxu1 }
 0x4d8   : > { %v4382_v43 = vadd.f32 %v4381_v24, %v4363_v50 }
 0x4da   : > { %4489 = vmatmul.bf16.vlgmr.msra.gmra.mxu3 %v5652_v3  ;;  %v4435_v53 = vpop.f32.mrf.mxu0  ;;  %v4401_v5 = vadd.f32 %v4400_v10, %v4382_v43 }
 0x4db   : > { %v4436_v20 = vadd.f32 %v4435_v53, %v4417_v54 }
 0x4dc   : > { %v4420_v28 = vadd.f32 %v4419_v17, %v4401_v5 }
 0x4de   : > { %v4471_v15 = vpop.f32.mrf.mxu2 }
 0x4df   : > { %v4383_v55 = vpop.f32.mrf.mxu1 }
 0x4e0   : > { %v4384_v56 = vadd.f32 %v4383_v55, %v4365_v38 }
 0x4e2   : > { %v4438_v34 = vpop.f32.mrf.mxu0  ;;  %v4403_v29 = vadd.f32 %v4402_v41, %v4384_v56 }
 0x4e3   : > { %v4439_v16 = vadd.f32 %v4438_v34, %v4420_v28 }
 0x4e4   : > { %v4422_v22 = vadd.f32 %v4421_v52, %v4403_v29 }
 0x4e6   : > { %v4473_v48 = vpop.f32.mrf.mxu2 }
 0x4e7   : > { %v4452_v13 = vpop.f32.mrf.mxu1 }
 0x4e8   : > { %v4453_v47 = vadd.f32 %v4452_v13, %v4434_v35 }
 0x4ea   : > { %4494 = vmatmul.bf16.gmra.mxu3 %v5684_v42  ;;  %v4472_v2 = vadd.f32 %v4471_v15, %v4453_v47  ;;  %v4440_v9 = vpop.f32.mrf.mxu0 }
 0x4eb   : > { %v4441_v3 = vadd.f32 %v4440_v9, %v4422_v22 }
 0x4ee   : > { %v4476_v0 = vpop.f32.mrf.mxu2 }
 0x4ef   : > { %v4454_v44 = vpop.f32.mrf.mxu1 }
 0x4f0   : > { %v4455_v51 = vadd.f32 %v4454_v44, %v4436_v20 }
 0x4f2   : > { %v4474_v8 = vadd.f32 %v4473_v48, %v4455_v51 }
 0x4f6   : > { %v4478_v42 = vpop.f32.mrf.mxu2 }
 0x4f7   : > { %v4457_v33 = vpop.f32.mrf.mxu1 }
 0x4f8   : > { %v4458_v37 = vadd.f32 %v4457_v33, %v4439_v16 }
 0x4fa   : > { %v4477_v36 = vadd.f32 %v4476_v0, %v4458_v37 }
 0x4ff   : > { %v4459_v12 = vpop.f32.mrf.mxu1 }
 0x500   : > { %v4460_v27 = vadd.f32 %v4459_v12, %v4441_v3 }
 0x502   : > { %v4479_v49 = vadd.f32 %v4478_v42, %v4460_v27 }
 0x55d   : > { %v4490_v26 = vpop.f32.mrf.mxu3 }
 0x55e   : > { %v4491_v45 = vadd.f32 %v4490_v26, %v4472_v2 }
 0x560   : > { %4501 = vst.msk [vmem:[%s8694_s12] sm:$0xff] %vm4500_vm0, %v4491_v45 }
 0x565   : > { %v4492_v63 = vpop.f32.mrf.mxu3 }
 0x566   : > { %v4493_v32 = vadd.f32 %v4492_v63, %v4474_v8 }
 0x568   : > { %4502 = vst.msk [vmem:[%s8694_s12 + $0x8] sm:$0xff] %vm4500_vm0, %v4493_v32 }
 0x56d   : > { %v4495_v39 = vpop.f32.mrf.mxu3 }
 0x56e   : > { %v4496_v23 = vadd.f32 %v4495_v39, %v4477_v36 }
 0x570   : > { %4503 = vst.msk [vmem:[%s8694_s12 + $0x10] sm:$0xff] %vm4500_vm0, %v4496_v23 }
 0x575   : > { %v4497_v19 = vpop.f32.mrf.mxu3 }
 0x576   : > { %v4498_v60 = vadd.f32 %v4497_v19, %v4479_v49 }
 0x578   : > { %4504 = vst.msk [vmem:[%s8694_s12 + $0x18] sm:$0xff] %vm4500_vm0, %v4498_v60 }
 0x579 PF: > { %s15_s20 = sadd.s32 1, %s6011_s20   ;;  %s8743_s18 = smov %s6007_s19 }
 0x57a   : > { %p12_p5 = scmp.ge.s32.totalorder %s15_s20, 4   ;;  %s8744_s19 = smov %s8746_s21 }
 0x57c   :  { %14 = sbr.rel (!%p12_p5) target bundleno = 2 (0x2), region = 70 }

</bundles_post_ra>
